<compile_context>
chip_gen: v7x
topology: tpu7x:2x2x1
jax: 0.10.0
libtpu: 0.0.40
codegen_flags: <defaults>
</compile_context>

<pallas_src>
import math

import jax
import jax.numpy as jnp
from jax import lax
from jax.experimental import pallas as pl
from jax.experimental.pallas import tpu as pltpu


def _round_up(v, m):
    return ((v + m - 1) // m) * m


def _vmem_capacity_bytes():
    """Physical per-core VMEM; conservative 64 MiB (v7x) fallback."""
    try:
        return int(pltpu.get_tpu_info().vmem_capacity_bytes)
    except Exception:
        return 64 * 1024 * 1024


# ---------------------------------------------------------------------------
# Pallas kernel: per grid step, project one time chunk for both directions
# (one big MXU matmul each) into VMEM, then run the fused fwd+bwd recurrence.
# All refs are 2-D (rows = time*batch flattened, cols = features/gates).
# ---------------------------------------------------------------------------
def _make_kernel(rnn_type, n_in, Tc, T_real, n_chunks, N_pad, Hp, G, unroll):
    GH = G * Hp
    R = Tc * N_pad                         # rows per chunk (flattened t*batch)
    T_pad = Tc * n_chunks
    needs_tail_fix = T_pad != T_real       # zero-padded tail timesteps exist
    is_gru = rnn_type == "GRU"

    def kernel(*refs):
        it = iter(refs)
        xf = [next(it) for _ in range(n_in)]           # fwd-order input chunks
        xb = [next(it) for _ in range(n_in)]           # bwd-order input chunks
        wih_f = [next(it) for _ in range(n_in)]
        wih_b = [next(it) for _ in range(n_in)]
        whh_f = next(it)
        whh_b = next(it)
        bias_f = next(it)
        bias_b = next(it)
        if is_gru:
            bhn_f_ref = next(it)
            bhn_b_ref = next(it)
        out_f = next(it)
        out_b = next(it)
        gif = next(it)                                  # (R, GH) gi scratch fwd
        gib = next(it)                                  # (R, GH) gi scratch bwd
        hf = next(it)
        hb = next(it)
        if not is_gru:
            cf = next(it)
            cb = next(it)

        i = pl.program_id(0)

        @pl.when(i == 0)
        def _init_state():
            z = jnp.zeros((N_pad, Hp), jnp.float32)
            hf[...] = z
            hb[...] = z
            if not is_gru:
                cf[...] = z
                cb[...] = z

        # ---- fused input projection for this chunk (no gi tensor in HBM) ----
        def project(x_refs, w_refs, b_ref):
            acc = None
            for xr, wr in zip(x_refs, w_refs):
                term = jnp.dot(xr[...], wr[...],
                               preferred_element_type=jnp.float32)
                acc = term if acc is None else acc + term
            return acc + b_ref[...]

        gif[...] = project(xf, wih_f, bias_f)
        gib[...] = project(xb, wih_b, bias_b)

        # ---- make padded tail timesteps self-neutralizing for the bwd dir ----
        # (bwd starts at the tail with zero state; forcing z=1 (GRU) / i=0
        #  (LSTM) keeps it exactly/≈ zero through the padding — no per-step
        #  selects on the serial critical path.)
        if needs_tail_fix:
            pad_row0 = (T_real - (n_chunks - 1) * Tc) * N_pad   # static
            col0 = Hp if is_gru else 0        # GRU z-gate / LSTM i-gate cols
            val = 30.0 if is_gru else -30.0

            @pl.when(i == 0)                  # only the tail chunk has padding
            def _neutralize_padded_tail():
                gib[pad_row0:, col0:col0 + Hp] = jnp.full(
                    (R - pad_row0, Hp), val, jnp.float32)

        if is_gru:
            # Hoisted broadcast of the GRU n-gate hidden bias.
            bhn_f = jnp.broadcast_to(bhn_f_ref[...], (N_pad, Hp))
            bhn_b = jnp.broadcast_to(bhn_b_ref[...], (N_pad, Hp))

        def gru_cell(gi, gh, h, bhn):
            # PyTorch gate order: r, z, n (lane-aligned Hp-wide slices)
            r = jax.nn.sigmoid(gi[:, 0:Hp] + gh[:, 0:Hp])
            z = jax.nn.sigmoid(gi[:, Hp:2 * Hp] + gh[:, Hp:2 * Hp])
            n = jnp.tanh(gi[:, 2 * Hp:3 * Hp] + r * (gh[:, 2 * Hp:3 * Hp] + bhn))
            return (1.0 - z) * n + z * h

        def lstm_cell(gi, gh, h, c):
            # PyTorch gate order: i, f, g, o
            g = gi + gh
            i_g = jax.nn.sigmoid(g[:, 0:Hp])
            f_g = jax.nn.sigmoid(g[:, Hp:2 * Hp])
            g_g = jnp.tanh(g[:, 2 * Hp:3 * Hp])
            o_g = jax.nn.sigmoid(g[:, 3 * Hp:4 * Hp])
            c_new = f_g * c + i_g * g_g
            return o_g * jnp.tanh(c_new), c_new

        def step(lt, carry):
            row_f = pl.multiple_of(lt * N_pad, N_pad)
            ltb = Tc - 1 - lt
            row_b = pl.multiple_of(ltb * N_pad, N_pad)
            gi_f = gif[pl.ds(row_f, N_pad), :]
            gi_b = gib[pl.ds(row_b, N_pad), :]
            if is_gru:
                h_f, h_b = carry
                gh_f = jnp.dot(h_f, whh_f[...],
                               preferred_element_type=jnp.float32)
                gh_b = jnp.dot(h_b, whh_b[...],
                               preferred_element_type=jnp.float32)
                h_f = gru_cell(gi_f, gh_f, h_f, bhn_f)
                h_b = gru_cell(gi_b, gh_b, h_b, bhn_b)
                out_f[pl.ds(row_f, N_pad), :] = h_f
                out_b[pl.ds(row_b, N_pad), :] = h_b
                return (h_f, h_b)
            h_f, c_f, h_b, c_b = carry
            gh_f = jnp.dot(h_f, whh_f[...], preferred_element_type=jnp.float32)
            gh_b = jnp.dot(h_b, whh_b[...], preferred_element_type=jnp.float32)
            h_f, c_f = lstm_cell(gi_f, gh_f, h_f, c_f)
            h_b, c_b = lstm_cell(gi_b, gh_b, h_b, c_b)
            out_f[pl.ds(row_f, N_pad), :] = h_f
            out_b[pl.ds(row_b, N_pad), :] = h_b
            return (h_f, c_f, h_b, c_b)

        if is_gru:
            carry0 = (hf[...], hb[...])
        else:
            carry0 = (hf[...], cf[...], hb[...], cb[...])
        carry = lax.fori_loop(0, Tc, step, carry0, unroll=min(unroll, Tc))
        if is_gru:
            hf[...], hb[...] = carry
        else:
            hf[...], cf[...], hb[...], cb[...] = carry

    return kernel


# ---------------------------------------------------------------------------
# One bidirectional layer: shape/VMEM-aware time chunking + pallas_call.
# ---------------------------------------------------------------------------
def _run_layer(ins, fwd_p, bwd_p, *, rnn_type, T_real, tc_max, unroll,
               vmem_cap):
    """ins: list of (T_real, N_pad, D_a) float32 arrays (layer inputs)."""
    N_pad = int(ins[0].shape[1])
    din_pads = [int(a.shape[2]) for a in ins]
    Hp = int(fwd_p["whh"].shape[0])
    G = 3 if rnn_type == "GRU" else 4
    GH = G * Hp
    n_in = len(ins)
    n_state = 1 if rnn_type == "GRU" else 2

    # ---- shape/generation-aware time chunk & VMEM limit --------------------
    sum_d = sum(din_pads)
    bytes_per_t = 4 * N_pad * (2 * 2 * sum_d       # input streams (2 dir, dbl)
                               + 2 * GH            # gi scratch (2 dir)
                               + 2 * 2 * Hp)       # outputs (2 dir, dbl)
    bytes_fixed = 4 * (2 * 2 * (sum_d + Hp) * GH   # resident weights (dbl buf)
                       + 2 * n_state * N_pad * Hp  # carried state scratch
                       + 2 * (GH + Hp))            # biases
    budget = (vmem_cap * 45) // 100
    tc_fit = (budget - bytes_fixed) // bytes_per_t if budget > bytes_fixed else 1
    Tc = int(max(1, min(int(tc_max), int(T_real), int(tc_fit))))
    n_chunks = -(-T_real // Tc)
    T_pad = n_chunks * Tc

    if T_pad != T_real:
        ins = [jnp.pad(a, ((0, T_pad - T_real), (0, 0), (0, 0))) for a in ins]
    # Flatten (time, batch) -> rows; free row-major reshape, keeps everything
    # 2-D and lane-dense inside the kernel.
    flat = [a.reshape(T_pad * N_pad, a.shape[2]) for a in ins]

    kernel = _make_kernel(rnn_type, n_in, Tc, T_real, n_chunks, N_pad, Hp, G,
                          unroll)

    R = Tc * N_pad

    def x_f_spec(d):
        return pl.BlockSpec((R, d), lambda i: (i, 0))

    def x_b_spec(d):
        return pl.BlockSpec((R, d), lambda i: (n_chunks - 1 - i, 0))

    def res_spec(shape):                     # VMEM-resident (constant index)
        return pl.BlockSpec(shape, lambda i: (0, 0))

    in_specs = ([x_f_spec(d) for d in din_pads]
                + [x_b_spec(d) for d in din_pads]
                + [res_spec((d, GH)) for d in din_pads]     # W_ih fwd
                + [res_spec((d, GH)) for d in din_pads]     # W_ih bwd
                + [res_spec((Hp, GH)), res_spec((Hp, GH))]  # W_hh fwd/bwd
                + [res_spec((1, GH)), res_spec((1, GH))])   # folded biases
    inputs = (flat + flat
              + list(fwd_p["wih"]) + list(bwd_p["wih"])
              + [fwd_p["whh"], bwd_p["whh"], fwd_p["bias"], bwd_p["bias"]])
    if rnn_type == "GRU":
        in_specs += [res_spec((1, Hp)), res_spec((1, Hp))]
        inputs += [fwd_p["bhn"], bwd_p["bhn"]]

    out_specs = (pl.BlockSpec((R, Hp), lambda i: (i, 0)),
                 pl.BlockSpec((R, Hp), lambda i: (n_chunks - 1 - i, 0)))
    out_shape = (jax.ShapeDtypeStruct((T_pad * N_pad, Hp), jnp.float32),
                 jax.ShapeDtypeStruct((T_pad * N_pad, Hp), jnp.float32))

    scratch = [pltpu.VMEM((R, GH), jnp.float32),     # gi fwd
               pltpu.VMEM((R, GH), jnp.float32)]     # gi bwd
    scratch += [pltpu.VMEM((N_pad, Hp), jnp.float32)
                for _ in range(2 * n_state)]         # h (and c) state

    need = bytes_fixed + bytes_per_t * Tc
    vmem_limit = int(min(max(48 << 20, need * 5 // 4 + (4 << 20)),
                         (vmem_cap * 9) // 10))

    flops = int(2 * 2 * T_pad * N_pad * GH * (sum_d + Hp))
    transc = int(2 * T_pad * N_pad * (G + (1 if rnn_type == "LSTM" else 0)) * Hp)
    bytes_acc = int(4 * (2 * T_pad * N_pad * sum_d
                         + 2 * T_pad * N_pad * Hp
                         + 2 * (sum_d + Hp) * GH + 2 * GH))

    out_f, out_b = pl.pallas_call(
        kernel,
        grid=(n_chunks,),
        in_specs=in_specs,
        out_specs=out_specs,
        out_shape=out_shape,
        scratch_shapes=scratch,
        compiler_params=pltpu.CompilerParams(
            dimension_semantics=("arbitrary",),      # serial recurrence
            vmem_limit_bytes=vmem_limit),
        cost_estimate=pl.CostEstimate(flops=flops, transcendentals=transc,
                                      bytes_accessed=bytes_acc),
    )(*inputs)
    out_f = out_f.reshape(T_pad, N_pad, Hp)
    out_b = out_b.reshape(T_pad, N_pad, Hp)
    return out_f, out_b


# ---------------------------------------------------------------------------
# Module wrapper with deterministic parameter initialization.
# ---------------------------------------------------------------------------
class BiRNNPv1Pallas:
    def __init__(self, input_size, hidden_size, rnn_type, num_base_layers=1,
                 subsample=(), num_sub_layers=1, dropout=0.0, key=None,
                 time_chunk=128, unroll=4):
        self.rnn_type = rnn_type.upper()
        assert self.rnn_type in ("GRU", "LSTM")
        self.input_size = input_size
        self.hidden_size = hidden_size
        self.subsample = tuple(subsample)
        self.dropout = dropout
        self.ctx_size = 2 * hidden_size
        self.time_chunk = max(1, int(time_chunk))
        self.unroll = max(1, int(unroll))
        self.G = 3 if self.rnn_type == "GRU" else 4
        self.Hp = _round_up(hidden_size, 128)    # lane-aligned hidden size
        self.Fp = _round_up(input_size, 128)     # lane-aligned feature size
        self.vmem_cap = _vmem_capacity_bytes()

        G, H = self.G, hidden_size
        k = 1.0 / math.sqrt(H)
        if key is None:
            key = jax.random.PRNGKey(0)

        def init_dir(key, in_dim):
            k1, k2, k3, k4 = jax.random.split(key, 4)
            wih_t = jax.random.uniform(k1, (in_dim, G * H), jnp.float32, -k, k)
            whh_t = jax.random.uniform(k2, (H, G * H), jnp.float32, -k, k)
            bih = jax.random.uniform(k3, (G * H,), jnp.float32, -k, k)
            bhh = jax.random.uniform(k4, (G * H,), jnp.float32, -k, k)
            return (wih_t, whh_t, bih, bhh)

        def init_stack(key, first_in, n_layers):
            layers = []
            for l in range(n_layers):
                key, kf, kb = jax.random.split(key, 3)
                in_dim = first_in if l == 0 else 2 * H
                layers.append({"fwd": init_dir(kf, in_dim),
                               "bwd": init_dir(kb, in_dim)})
            return key, layers

        key, self.base_layers_real = init_stack(key, input_size, num_base_layers)
        self.sub_stacks_real = []
        for _ in range(len(self.subsample)):
            key, st = init_stack(key, self.ctx_size, num_sub_layers)
            self.sub_stacks_real.append(st)

        # Derived, padded, bias-folded fast-path parameters.
        self.base_layers_fast = self._derive_stack(self.base_layers_real, True)
        self.sub_stacks_fast = [self._derive_stack(st, False)
                                for st in self.sub_stacks_real]

    # -------------------- parameter padding / folding ----------------------
    def _derive_stack(self, stack, first_is_raw):
        out = []
        for li, layer in enumerate(stack):
            raw = first_is_raw and li == 0
            out.append({name: self._derive_dir(*layer[name], raw_input=raw)
                        for name in ("fwd", "bwd")})
        return out

    def _derive_dir(self, wih_t, whh_t, bih, bhh, raw_input):
        G, H, Hp = self.G, self.hidden_size, self.Hp

        def pad_gate_cols(w):                       # (D, G*H) -> (D, G*Hp)
            D = w.shape[0]
            w3 = w.reshape(D, G, H)
            w3 = jnp.pad(w3, ((0, 0), (0, 0), (0, Hp - H)))
            return w3.reshape(D, G * Hp)

        def pad_gate_vec(b):                        # (G*H,) -> (G*Hp,)
            return jnp.pad(b.reshape(G, H),
                           ((0, 0), (0, Hp - H))).reshape(G * Hp)

        whh_p = jnp.pad(pad_gate_cols(whh_t), ((0, Hp - H), (0, 0)))

        if self.rnn_type == "GRU":
            # fold b_ih fully + b_hh for r,z; keep b_hn separate (r*(..+b_hn))
            b_fold = bih + jnp.concatenate(
                [bhh[:2 * H], jnp.zeros((H,), jnp.float32)])
            bhn = jnp.pad(bhh[2 * H:3 * H], (0, Hp - H)).reshape(1, Hp)
        else:
            b_fold = bih + bhh                      # LSTM: fold everything
            bhn = None
        bias_p = pad_gate_vec(b_fold).reshape(1, G * Hp)

        if raw_input:
            wih = pad_gate_cols(wih_t)
            wihs = [jnp.pad(wih, ((0, self.Fp - wih_t.shape[0]), (0, 0)))]
        else:
            # input is [prev_fwd (.., Hp), prev_bwd (.., Hp)] — split W_ih rows
            wf = jnp.pad(pad_gate_cols(wih_t[:H]), ((0, Hp - H), (0, 0)))
            wb = jnp.pad(pad_gate_cols(wih_t[H:2 * H]), ((0, Hp - H), (0, 0)))
            wihs = [wf, wb]
        return dict(wih=wihs, whh=whh_p, bias=bias_p, bhn=bhn)

    # ------------------------------ forward --------------------------------
    def _run_stack(self, ins, stack_fast):
        for layer in stack_fast:
            T = ins[0].shape[0]
            out_f, out_b = _run_layer(
                ins, layer["fwd"], layer["bwd"], rnn_type=self.rnn_type,
                T_real=T, tc_max=self.time_chunk, unroll=self.unroll,
                vmem_cap=self.vmem_cap)
            ins = [out_f[:T], out_b[:T]]
        return ins

    def __call__(self, x):
        # x: (T, N, F).  F.pad(x, (0,0,0,0,0,1)) appends one zero timestep.
        T, N, F = x.shape
        x = jnp.pad(x, ((0, 1), (0, 0), (0, 0)))
        Np = _round_up(N, 8)                        # sublane-aligned batch
        x = jnp.pad(x, ((0, 0), (0, Np - N), (0, self.Fp - F)))

        ins = [x]
        ins = self._run_stack(ins, self.base_layers_fast)
        for s, stack in zip(self.subsample, self.sub_stacks_fast):
            ins = [a[::s] for a in ins]
            ins = self._run_stack(ins, stack)

        out_f, out_b = ins
        H = self.hidden_size
        hs = jnp.concatenate([out_f[:, :N, :H], out_b[:, :N, :H]], axis=-1)
        # TODO(synk): dropout path (self.dropout > 0) not implemented — module
        #             is instantiated with dropout=0.
        return hs, None


# ---------------------------------------------------------------------------
# Pure-JAX reference (lax.scan, unpadded real params) for correctness check.
# ---------------------------------------------------------------------------
def _ref_dir(x, wih_t, whh_t, bih, bhh, rnn_type, reverse):
    T, N, _ = x.shape
    H = whh_t.shape[0]
    xs = x[::-1] if reverse else x

    def cell(carry, x_t):
        h, c = carry
        gi = jnp.dot(x_t, wih_t, precision=lax.Precision.HIGHEST) + bih
        gh = jnp.dot(h, whh_t, precision=lax.Precision.HIGHEST) + bhh
        if rnn_type == "GRU":
            r = jax.nn.sigmoid(gi[:, :H] + gh[:, :H])
            z = jax.nn.sigmoid(gi[:, H:2 * H] + gh[:, H:2 * H])
            n = jnp.tanh(gi[:, 2 * H:] + r * gh[:, 2 * H:])
            h_new = (1 - z) * n + z * h
            c_new = c
        else:
            i_g = jax.nn.sigmoid(gi[:, :H] + gh[:, :H])
            f_g = jax.nn.sigmoid(gi[:, H:2 * H] + gh[:, H:2 * H])
            g_g = jnp.tanh(gi[:, 2 * H:3 * H] + gh[:, 2 * H:3 * H])
            o_g = jax.nn.sigmoid(gi[:, 3 * H:] + gh[:, 3 * H:])
            c_new = f_g * c + i_g * g_g
            h_new = o_g * jnp.tanh(c_new)
        return (h_new, c_new), h_new

    h0 = jnp.zeros((N, H), jnp.float32)
    _, ys = lax.scan(cell, (h0, h0), xs)
    return ys[::-1] if reverse else ys


def _ref_forward(model, x):
    x = jnp.pad(x, ((0, 1), (0, 0), (0, 0)))

    def stack(hs, layers):
        for layer in layers:
            f = _ref_dir(hs, *layer["fwd"], model.rnn_type, False)
            b = _ref_dir(hs, *layer["bwd"], model.rnn_type, True)
            hs = jnp.concatenate([f, b], axis=-1)
        return hs

    hs = stack(x, model.base_layers_real)
    for s, st in zip(model.subsample, model.sub_stacks_real):
        hs = stack(hs[::s], st)
    return hs


if __name__ == "__main__":
    key = jax.random.PRNGKey(0)
    k_x, k_gru, k_lstm = jax.random.split(key, 3)

    T, N, F, H = 8, 2, 16, 32
    x = jax.random.normal(k_x, (T, N, F), jnp.float32)

    for rnn_type, k_p in (("GRU", k_gru), ("LSTM", k_lstm)):
        # time_chunk=4 deliberately exercises the chunked grid + the
        # self-neutralizing padded tail (gi poisoning) path.
        model = BiRNNPv1Pallas(input_size=F, hidden_size=H, rnn_type=rnn_type,
                               num_base_layers=1, subsample=(2,),
                               num_sub_layers=1, dropout=0.0, key=k_p,
                               time_chunk=4, unroll=4)
        hs, mask = model(x)
        hs = jax.block_until_ready(hs)

        # Base sees T+1=9 steps; subsample by 2 -> 5 steps; ctx = 2H.
        assert hs.shape == (5, N, 2 * H), (rnn_type, hs.shape)
        assert mask is None

        ref = jax.block_until_ready(_ref_forward(model, x))
        err = float(jnp.max(jnp.abs(hs - ref)))
        assert err < 5e-4, (rnn_type, err)

    print("KERNEL_OK")
</pallas_src>

<mosaic_0001>
module attributes {stable_mosaic.version = 11 : i64} {
  func.func @kernel(%arg0: i32, %arg1: memref<32x128xf32, #tpu.memory_space<vmem>>, %arg2: memref<32x128xf32, #tpu.memory_space<vmem>>, %arg3: memref<128x384xf32, #tpu.memory_space<vmem>>, %arg4: memref<128x384xf32, #tpu.memory_space<vmem>>, %arg5: memref<128x384xf32, #tpu.memory_space<vmem>>, %arg6: memref<128x384xf32, #tpu.memory_space<vmem>>, %arg7: memref<1x384xf32, #tpu.memory_space<vmem>>, %arg8: memref<1x384xf32, #tpu.memory_space<vmem>>, %arg9: memref<1x128xf32, #tpu.memory_space<vmem>>, %arg10: memref<1x128xf32, #tpu.memory_space<vmem>>, %arg11: memref<32x128xf32, #tpu.memory_space<vmem>>, %arg12: memref<32x128xf32, #tpu.memory_space<vmem>>, %arg13: memref<32x384xf32, #tpu.memory_space<vmem>>, %arg14: memref<32x384xf32, #tpu.memory_space<vmem>>, %arg15: memref<8x128xf32, #tpu.memory_space<vmem>>, %arg16: memref<8x128xf32, #tpu.memory_space<vmem>>) attributes {dimension_semantics = [#tpu.dimension_semantics<arbitrary>], iteration_bounds = array<i64: 3>, scalar_prefetch = 0 : i64, scratch_operands = 4 : i64, tpu.core_type = #tpu.core_type<tc>, window_params = [{transform_indices = @transform_0, window_bounds = array<i64: 32, 128>}, {transform_indices = @transform_1, window_bounds = array<i64: 32, 128>}, {pipeline_mode = #tpu.pipeline_mode<synchronous>, transform_indices = @transform_2, window_bounds = array<i64: 128, 384>}, {pipeline_mode = #tpu.pipeline_mode<synchronous>, transform_indices = @transform_3, window_bounds = array<i64: 128, 384>}, {pipeline_mode = #tpu.pipeline_mode<synchronous>, transform_indices = @transform_4, window_bounds = array<i64: 128, 384>}, {pipeline_mode = #tpu.pipeline_mode<synchronous>, transform_indices = @transform_5, window_bounds = array<i64: 128, 384>}, {pipeline_mode = #tpu.pipeline_mode<synchronous>, transform_indices = @transform_6, window_bounds = array<i64: 1, 384>}, {pipeline_mode = #tpu.pipeline_mode<synchronous>, transform_indices = @transform_7, window_bounds = array<i64: 1, 384>}, {pipeline_mode = #tpu.pipeline_mode<synchronous>, transform_indices = @transform_8, window_bounds = array<i64: 1, 128>}, {pipeline_mode = #tpu.pipeline_mode<synchronous>, transform_indices = @transform_9, window_bounds = array<i64: 1, 128>}, {transform_indices = @transform_10, window_bounds = array<i64: 32, 128>}, {transform_indices = @transform_11, window_bounds = array<i64: 32, 128>}]} {
    %c0_i32 = arith.constant 0 : i32
    %0 = arith.cmpi eq, %arg0, %c0_i32 : i32
    %1 = arith.extui %0 : i1 to i32
    %c0_i32_0 = arith.constant 0 : i32
    %2 = arith.cmpi ne, %1, %c0_i32_0 : i32
    scf.if %2 {
      %cst_107 = arith.constant 0.000000e+00 : f32
      %314 = vector.broadcast %cst_107 : f32 to vector<8x128xf32>
      %c0_108 = arith.constant 0 : index
      %c0_109 = arith.constant 0 : index
      %315 = vector.load %arg15[%c0_108, %c0_109] : memref<8x128xf32, #tpu.memory_space<vmem>>, vector<8x128xf32>
      tpu.vector_store %arg15[%c0_108, %c0_109], %314 {strides = array<i32>} : memref<8x128xf32, #tpu.memory_space<vmem>>, vector<8x128xf32>,
      %c0_110 = arith.constant 0 : index
      %c0_111 = arith.constant 0 : index
      %316 = vector.load %arg16[%c0_110, %c0_111] : memref<8x128xf32, #tpu.memory_space<vmem>>, vector<8x128xf32>
      tpu.vector_store %arg16[%c0_110, %c0_111], %314 {strides = array<i32>} : memref<8x128xf32, #tpu.memory_space<vmem>>, vector<8x128xf32>,
    } else {
    }
    %c0 = arith.constant 0 : index
    %c0_1 = arith.constant 0 : index
    %3 = vector.load %arg1[%c0, %c0_1] : memref<32x128xf32, #tpu.memory_space<vmem>>, vector<32x128xf32>
    %c0_2 = arith.constant 0 : index
    %c0_3 = arith.constant 0 : index
    %4 = vector.load %arg3[%c0_2, %c0_3] : memref<128x384xf32, #tpu.memory_space<vmem>>, vector<128x384xf32>
    %cst = arith.constant dense<0.000000e+00> : vector<32x384xf32>
    %5 = tpu.matmul %3, %4, %cst {dimension_numbers = #tpu.dot_dimension_numbers<[1], [0], [0], [1], [0, 0, 1, 1], [], []>} : vector<32x128xf32>, vector<128x384xf32>, vector<32x384xf32> -> vector<32x384xf32>
    %c0_4 = arith.constant 0 : index
    %c0_5 = arith.constant 0 : index
    %6 = vector.load %arg7[%c0_4, %c0_5] : memref<1x384xf32, #tpu.memory_space<vmem>>, vector<1x384xf32>
    %7 = vector.broadcast %6 : vector<1x384xf32> to vector<32x384xf32>
    %8 = arith.addf %5, %7 : vector<32x384xf32>
    %c0_6 = arith.constant 0 : index
    %c0_7 = arith.constant 0 : index
    %9 = vector.load %arg13[%c0_6, %c0_7] : memref<32x384xf32, #tpu.memory_space<vmem>>, vector<32x384xf32>
    tpu.vector_store %arg13[%c0_6, %c0_7], %8 {strides = array<i32>} : memref<32x384xf32, #tpu.memory_space<vmem>>, vector<32x384xf32>,
    %c0_8 = arith.constant 0 : index
    %c0_9 = arith.constant 0 : index
    %10 = vector.load %arg2[%c0_8, %c0_9] : memref<32x128xf32, #tpu.memory_space<vmem>>, vector<32x128xf32>
    %c0_10 = arith.constant 0 : index
    %c0_11 = arith.constant 0 : index
    %11 = vector.load %arg4[%c0_10, %c0_11] : memref<128x384xf32, #tpu.memory_space<vmem>>, vector<128x384xf32>
    %cst_12 = arith.constant dense<0.000000e+00> : vector<32x384xf32>
    %12 = tpu.matmul %10, %11, %cst_12 {dimension_numbers = #tpu.dot_dimension_numbers<[1], [0], [0], [1], [0, 0, 1, 1], [], []>} : vector<32x128xf32>, vector<128x384xf32>, vector<32x384xf32> -> vector<32x384xf32>
    %c0_13 = arith.constant 0 : index
    %c0_14 = arith.constant 0 : index
    %13 = vector.load %arg8[%c0_13, %c0_14] : memref<1x384xf32, #tpu.memory_space<vmem>>, vector<1x384xf32>
    %14 = vector.broadcast %13 : vector<1x384xf32> to vector<32x384xf32>
    %15 = arith.addf %12, %14 : vector<32x384xf32>
    %c0_15 = arith.constant 0 : index
    %c0_16 = arith.constant 0 : index
    %16 = vector.load %arg14[%c0_15, %c0_16] : memref<32x384xf32, #tpu.memory_space<vmem>>, vector<32x384xf32>
    tpu.vector_store %arg14[%c0_15, %c0_16], %15 {strides = array<i32>} : memref<32x384xf32, #tpu.memory_space<vmem>>, vector<32x384xf32>,
    %c0_i32_17 = arith.constant 0 : i32
    %17 = arith.cmpi eq, %arg0, %c0_i32_17 : i32
    %18 = arith.extui %17 : i1 to i32
    %c0_i32_18 = arith.constant 0 : i32
    %19 = arith.cmpi ne, %18, %c0_i32_18 : i32
    scf.if %19 {
      %cst_107 = arith.constant 3.000000e+01 : f32
      %314 = vector.broadcast %cst_107 : f32 to vector<24x128xf32>
      %c8 = arith.constant 8 : index
      %c128 = arith.constant 128 : index
      %315 = vector.load %arg14[%c8, %c128] : memref<32x384xf32, #tpu.memory_space<vmem>>, vector<24x128xf32>
      tpu.vector_store %arg14[%c8, %c128], %314 {strides = array<i32>} : memref<32x384xf32, #tpu.memory_space<vmem>>, vector<24x128xf32>,
    } else {
    }
    %c0_19 = arith.constant 0 : index
    %c0_20 = arith.constant 0 : index
    %20 = vector.load %arg9[%c0_19, %c0_20] : memref<1x128xf32, #tpu.memory_space<vmem>>, vector<1x128xf32>
    %21 = vector.shape_cast %20 : vector<1x128xf32> to vector<1x128xf32>
    %22 = vector.broadcast %21 : vector<1x128xf32> to vector<8x128xf32>
    %c0_21 = arith.constant 0 : index
    %c0_22 = arith.constant 0 : index
    %23 = vector.load %arg10[%c0_21, %c0_22] : memref<1x128xf32, #tpu.memory_space<vmem>>, vector<1x128xf32>
    %24 = vector.shape_cast %23 : vector<1x128xf32> to vector<1x128xf32>
    %25 = vector.broadcast %24 : vector<1x128xf32> to vector<8x128xf32>
    %c0_23 = arith.constant 0 : index
    %c0_24 = arith.constant 0 : index
    %26 = vector.load %arg15[%c0_23, %c0_24] : memref<8x128xf32, #tpu.memory_space<vmem>>, vector<8x128xf32>
    %c0_25 = arith.constant 0 : index
    %c0_26 = arith.constant 0 : index
    %27 = vector.load %arg16[%c0_25, %c0_26] : memref<8x128xf32, #tpu.memory_space<vmem>>, vector<8x128xf32>
    %c0_i32_27 = arith.constant 0 : i32
    %c8_i32 = arith.constant 8 : i32
    %28 = arith.muli %c0_i32_27, %c8_i32 : i32
    %29 = tpu.assume_multiple %28, 8 : i32
    %c3_i32 = arith.constant 3 : i32
    %30 = arith.subi %c3_i32, %c0_i32_27 : i32
    %c8_i32_28 = arith.constant 8 : i32
    %31 = arith.muli %30, %c8_i32_28 : i32
    %32 = tpu.assume_multiple %31, 8 : i32
    %33 = arith.index_cast %29 : i32 to index
    %c0_29 = arith.constant 0 : index
    %34 = vector.load %arg13[%33, %c0_29] : memref<32x384xf32, #tpu.memory_space<vmem>>, vector<8x384xf32>
    %35 = arith.index_cast %32 : i32 to index
    %c0_30 = arith.constant 0 : index
    %36 = vector.load %arg14[%35, %c0_30] : memref<32x384xf32, #tpu.memory_space<vmem>>, vector<8x384xf32>
    %c0_31 = arith.constant 0 : index
    %c0_32 = arith.constant 0 : index
    %37 = vector.load %arg5[%c0_31, %c0_32] : memref<128x384xf32, #tpu.memory_space<vmem>>, vector<128x384xf32>
    %cst_33 = arith.constant dense<0.000000e+00> : vector<8x384xf32>
    %38 = tpu.matmul %26, %37, %cst_33 {dimension_numbers = #tpu.dot_dimension_numbers<[1], [0], [0], [1], [0, 0, 1, 1], [], []>} : vector<8x128xf32>, vector<128x384xf32>, vector<8x384xf32> -> vector<8x384xf32>
    %c0_34 = arith.constant 0 : index
    %c0_35 = arith.constant 0 : index
    %39 = vector.load %arg6[%c0_34, %c0_35] : memref<128x384xf32, #tpu.memory_space<vmem>>, vector<128x384xf32>
    %cst_36 = arith.constant dense<0.000000e+00> : vector<8x384xf32>
    %40 = tpu.matmul %27, %39, %cst_36 {dimension_numbers = #tpu.dot_dimension_numbers<[1], [0], [0], [1], [0, 0, 1, 1], [], []>} : vector<8x128xf32>, vector<128x384xf32>, vector<8x384xf32> -> vector<8x384xf32>
    %41 = vector.extract_strided_slice %34 {offsets = [0, 0], sizes = [8, 128], strides = [1, 1]} : vector<8x384xf32> to vector<8x128xf32>
    %42 = vector.extract_strided_slice %38 {offsets = [0, 0], sizes = [8, 128], strides = [1, 1]} : vector<8x384xf32> to vector<8x128xf32>
    %43 = arith.addf %41, %42 : vector<8x128xf32>
    %44 = arith.negf %43 : vector<8x128xf32>
    %45 = math.exp %44 : vector<8x128xf32>
    %cst_37 = arith.constant 1.000000e+00 : f32
    %46 = vector.broadcast %cst_37 : f32 to vector<8x128xf32>
    %47 = arith.addf %46, %45 : vector<8x128xf32>
    %48 = arith.divf %46, %47 : vector<8x128xf32>
    %49 = vector.extract_strided_slice %34 {offsets = [0, 128], sizes = [8, 128], strides = [1, 1]} : vector<8x384xf32> to vector<8x128xf32>
    %50 = vector.extract_strided_slice %38 {offsets = [0, 128], sizes = [8, 128], strides = [1, 1]} : vector<8x384xf32> to vector<8x128xf32>
    %51 = arith.addf %49, %50 : vector<8x128xf32>
    %52 = arith.negf %51 : vector<8x128xf32>
    %53 = math.exp %52 : vector<8x128xf32>
    %cst_38 = arith.constant 1.000000e+00 : f32
    %54 = vector.broadcast %cst_38 : f32 to vector<8x128xf32>
    %55 = arith.addf %54, %53 : vector<8x128xf32>
    %56 = arith.divf %54, %55 : vector<8x128xf32>
    %57 = vector.extract_strided_slice %34 {offsets = [0, 256], sizes = [8, 128], strides = [1, 1]} : vector<8x384xf32> to vector<8x128xf32>
    %58 = vector.extract_strided_slice %38 {offsets = [0, 256], sizes = [8, 128], strides = [1, 1]} : vector<8x384xf32> to vector<8x128xf32>
    %59 = arith.addf %58, %22 : vector<8x128xf32>
    %60 = arith.mulf %48, %59 : vector<8x128xf32>
    %61 = arith.addf %57, %60 : vector<8x128xf32>
    %62 = math.tanh %61 : vector<8x128xf32>
    %cst_39 = arith.constant 1.000000e+00 : f32
    %63 = vector.broadcast %cst_39 : f32 to vector<8x128xf32>
    %64 = arith.subf %63, %56 : vector<8x128xf32>
    %65 = arith.mulf %64, %62 : vector<8x128xf32>
    %66 = arith.mulf %56, %26 : vector<8x128xf32>
    %67 = arith.addf %65, %66 : vector<8x128xf32>
    %68 = vector.extract_strided_slice %36 {offsets = [0, 0], sizes = [8, 128], strides = [1, 1]} : vector<8x384xf32> to vector<8x128xf32>
    %69 = vector.extract_strided_slice %40 {offsets = [0, 0], sizes = [8, 128], strides = [1, 1]} : vector<8x384xf32> to vector<8x128xf32>
    %70 = arith.addf %68, %69 : vector<8x128xf32>
    %71 = arith.negf %70 : vector<8x128xf32>
    %72 = math.exp %71 : vector<8x128xf32>
    %cst_40 = arith.constant 1.000000e+00 : f32
    %73 = vector.broadcast %cst_40 : f32 to vector<8x128xf32>
    %74 = arith.addf %73, %72 : vector<8x128xf32>
    %75 = arith.divf %73, %74 : vector<8x128xf32>
    %76 = vector.extract_strided_slice %36 {offsets = [0, 128], sizes = [8, 128], strides = [1, 1]} : vector<8x384xf32> to vector<8x128xf32>
    %77 = vector.extract_strided_slice %40 {offsets = [0, 128], sizes = [8, 128], strides = [1, 1]} : vector<8x384xf32> to vector<8x128xf32>
    %78 = arith.addf %76, %77 : vector<8x128xf32>
    %79 = arith.negf %78 : vector<8x128xf32>
    %80 = math.exp %79 : vector<8x128xf32>
    %cst_41 = arith.constant 1.000000e+00 : f32
    %81 = vector.broadcast %cst_41 : f32 to vector<8x128xf32>
    %82 = arith.addf %81, %80 : vector<8x128xf32>
    %83 = arith.divf %81, %82 : vector<8x128xf32>
    %84 = vector.extract_strided_slice %36 {offsets = [0, 256], sizes = [8, 128], strides = [1, 1]} : vector<8x384xf32> to vector<8x128xf32>
    %85 = vector.extract_strided_slice %40 {offsets = [0, 256], sizes = [8, 128], strides = [1, 1]} : vector<8x384xf32> to vector<8x128xf32>
    %86 = arith.addf %85, %25 : vector<8x128xf32>
    %87 = arith.mulf %75, %86 : vector<8x128xf32>
    %88 = arith.addf %84, %87 : vector<8x128xf32>
    %89 = math.tanh %88 : vector<8x128xf32>
    %cst_42 = arith.constant 1.000000e+00 : f32
    %90 = vector.broadcast %cst_42 : f32 to vector<8x128xf32>
    %91 = arith.subf %90, %83 : vector<8x128xf32>
    %92 = arith.mulf %91, %89 : vector<8x128xf32>
    %93 = arith.mulf %83, %27 : vector<8x128xf32>
    %94 = arith.addf %92, %93 : vector<8x128xf32>
    %95 = arith.index_cast %29 : i32 to index
    %c0_43 = arith.constant 0 : index
    %96 = vector.load %arg11[%95, %c0_43] : memref<32x128xf32, #tpu.memory_space<vmem>>, vector<8x128xf32>
    tpu.vector_store %arg11[%95, %c0_43], %67 {strides = array<i32>} : memref<32x128xf32, #tpu.memory_space<vmem>>, vector<8x128xf32>,
    %97 = arith.index_cast %32 : i32 to index
    %c0_44 = arith.constant 0 : index
    %98 = vector.load %arg12[%97, %c0_44] : memref<32x128xf32, #tpu.memory_space<vmem>>, vector<8x128xf32>
    tpu.vector_store %arg12[%97, %c0_44], %94 {strides = array<i32>} : memref<32x128xf32, #tpu.memory_space<vmem>>, vector<8x128xf32>,
    %c1_i32 = arith.constant 1 : i32
    %c8_i32_45 = arith.constant 8 : i32
    %99 = arith.muli %c1_i32, %c8_i32_45 : i32
    %100 = tpu.assume_multiple %99, 8 : i32
    %c3_i32_46 = arith.constant 3 : i32
    %101 = arith.subi %c3_i32_46, %c1_i32 : i32
    %c8_i32_47 = arith.constant 8 : i32
    %102 = arith.muli %101, %c8_i32_47 : i32
    %103 = tpu.assume_multiple %102, 8 : i32
    %104 = arith.index_cast %100 : i32 to index
    %c0_48 = arith.constant 0 : index
    %105 = vector.load %arg13[%104, %c0_48] : memref<32x384xf32, #tpu.memory_space<vmem>>, vector<8x384xf32>
    %106 = arith.index_cast %103 : i32 to index
    %c0_49 = arith.constant 0 : index
    %107 = vector.load %arg14[%106, %c0_49] : memref<32x384xf32, #tpu.memory_space<vmem>>, vector<8x384xf32>
    %c0_50 = arith.constant 0 : index
    %c0_51 = arith.constant 0 : index
    %108 = vector.load %arg5[%c0_50, %c0_51] : memref<128x384xf32, #tpu.memory_space<vmem>>, vector<128x384xf32>
    %cst_52 = arith.constant dense<0.000000e+00> : vector<8x384xf32>
    %109 = tpu.matmul %67, %108, %cst_52 {dimension_numbers = #tpu.dot_dimension_numbers<[1], [0], [0], [1], [0, 0, 1, 1], [], []>} : vector<8x128xf32>, vector<128x384xf32>, vector<8x384xf32> -> vector<8x384xf32>
    %c0_53 = arith.constant 0 : index
    %c0_54 = arith.constant 0 : index
    %110 = vector.load %arg6[%c0_53, %c0_54] : memref<128x384xf32, #tpu.memory_space<vmem>>, vector<128x384xf32>
    %cst_55 = arith.constant dense<0.000000e+00> : vector<8x384xf32>
    %111 = tpu.matmul %94, %110, %cst_55 {dimension_numbers = #tpu.dot_dimension_numbers<[1], [0], [0], [1], [0, 0, 1, 1], [], []>} : vector<8x128xf32>, vector<128x384xf32>, vector<8x384xf32> -> vector<8x384xf32>
    %112 = vector.extract_strided_slice %105 {offsets = [0, 0], sizes = [8, 128], strides = [1, 1]} : vector<8x384xf32> to vector<8x128xf32>
    %113 = vector.extract_strided_slice %109 {offsets = [0, 0], sizes = [8, 128], strides = [1, 1]} : vector<8x384xf32> to vector<8x128xf32>
    %114 = arith.addf %112, %113 : vector<8x128xf32>
    %115 = arith.negf %114 : vector<8x128xf32>
    %116 = math.exp %115 : vector<8x128xf32>
    %cst_56 = arith.constant 1.000000e+00 : f32
    %117 = vector.broadcast %cst_56 : f32 to vector<8x128xf32>
    %118 = arith.addf %117, %116 : vector<8x128xf32>
    %119 = arith.divf %117, %118 : vector<8x128xf32>
    %120 = vector.extract_strided_slice %105 {offsets = [0, 128], sizes = [8, 128], strides = [1, 1]} : vector<8x384xf32> to vector<8x128xf32>
    %121 = vector.extract_strided_slice %109 {offsets = [0, 128], sizes = [8, 128], strides = [1, 1]} : vector<8x384xf32> to vector<8x128xf32>
    %122 = arith.addf %120, %121 : vector<8x128xf32>
    %123 = arith.negf %122 : vector<8x128xf32>
    %124 = math.exp %123 : vector<8x128xf32>
    %cst_57 = arith.constant 1.000000e+00 : f32
    %125 = vector.broadcast %cst_57 : f32 to vector<8x128xf32>
    %126 = arith.addf %125, %124 : vector<8x128xf32>
    %127 = arith.divf %125, %126 : vector<8x128xf32>
    %128 = vector.extract_strided_slice %105 {offsets = [0, 256], sizes = [8, 128], strides = [1, 1]} : vector<8x384xf32> to vector<8x128xf32>
    %129 = vector.extract_strided_slice %109 {offsets = [0, 256], sizes = [8, 128], strides = [1, 1]} : vector<8x384xf32> to vector<8x128xf32>
    %130 = arith.addf %129, %22 : vector<8x128xf32>
    %131 = arith.mulf %119, %130 : vector<8x128xf32>
    %132 = arith.addf %128, %131 : vector<8x128xf32>
    %133 = math.tanh %132 : vector<8x128xf32>
    %cst_58 = arith.constant 1.000000e+00 : f32
    %134 = vector.broadcast %cst_58 : f32 to vector<8x128xf32>
    %135 = arith.subf %134, %127 : vector<8x128xf32>
    %136 = arith.mulf %135, %133 : vector<8x128xf32>
    %137 = arith.mulf %127, %67 : vector<8x128xf32>
    %138 = arith.addf %136, %137 : vector<8x128xf32>
    %139 = vector.extract_strided_slice %107 {offsets = [0, 0], sizes = [8, 128], strides = [1, 1]} : vector<8x384xf32> to vector<8x128xf32>
    %140 = vector.extract_strided_slice %111 {offsets = [0, 0], sizes = [8, 128], strides = [1, 1]} : vector<8x384xf32> to vector<8x128xf32>
    %141 = arith.addf %139, %140 : vector<8x128xf32>
    %142 = arith.negf %141 : vector<8x128xf32>
    %143 = math.exp %142 : vector<8x128xf32>
    %cst_59 = arith.constant 1.000000e+00 : f32
    %144 = vector.broadcast %cst_59 : f32 to vector<8x128xf32>
    %145 = arith.addf %144, %143 : vector<8x128xf32>
    %146 = arith.divf %144, %145 : vector<8x128xf32>
    %147 = vector.extract_strided_slice %107 {offsets = [0, 128], sizes = [8, 128], strides = [1, 1]} : vector<8x384xf32> to vector<8x128xf32>
    %148 = vector.extract_strided_slice %111 {offsets = [0, 128], sizes = [8, 128], strides = [1, 1]} : vector<8x384xf32> to vector<8x128xf32>
    %149 = arith.addf %147, %148 : vector<8x128xf32>
    %150 = arith.negf %149 : vector<8x128xf32>
    %151 = math.exp %150 : vector<8x128xf32>
    %cst_60 = arith.constant 1.000000e+00 : f32
    %152 = vector.broadcast %cst_60 : f32 to vector<8x128xf32>
    %153 = arith.addf %152, %151 : vector<8x128xf32>
    %154 = arith.divf %152, %153 : vector<8x128xf32>
    %155 = vector.extract_strided_slice %107 {offsets = [0, 256], sizes = [8, 128], strides = [1, 1]} : vector<8x384xf32> to vector<8x128xf32>
    %156 = vector.extract_strided_slice %111 {offsets = [0, 256], sizes = [8, 128], strides = [1, 1]} : vector<8x384xf32> to vector<8x128xf32>
    %157 = arith.addf %156, %25 : vector<8x128xf32>
    %158 = arith.mulf %146, %157 : vector<8x128xf32>
    %159 = arith.addf %155, %158 : vector<8x128xf32>
    %160 = math.tanh %159 : vector<8x128xf32>
    %cst_61 = arith.constant 1.000000e+00 : f32
    %161 = vector.broadcast %cst_61 : f32 to vector<8x128xf32>
    %162 = arith.subf %161, %154 : vector<8x128xf32>
    %163 = arith.mulf %162, %160 : vector<8x128xf32>
    %164 = arith.mulf %154, %94 : vector<8x128xf32>
    %165 = arith.addf %163, %164 : vector<8x128xf32>
    %166 = arith.index_cast %100 : i32 to index
    %c0_62 = arith.constant 0 : index
    %167 = vector.load %arg11[%166, %c0_62] : memref<32x128xf32, #tpu.memory_space<vmem>>, vector<8x128xf32>
    tpu.vector_store %arg11[%166, %c0_62], %138 {strides = array<i32>} : memref<32x128xf32, #tpu.memory_space<vmem>>, vector<8x128xf32>,
    %168 = arith.index_cast %103 : i32 to index
    %c0_63 = arith.constant 0 : index
    %169 = vector.load %arg12[%168, %c0_63] : memref<32x128xf32, #tpu.memory_space<vmem>>, vector<8x128xf32>
    tpu.vector_store %arg12[%168, %c0_63], %165 {strides = array<i32>} : memref<32x128xf32, #tpu.memory_space<vmem>>, vector<8x128xf32>,
    %c2_i32 = arith.constant 2 : i32
    %c8_i32_64 = arith.constant 8 : i32
    %170 = arith.muli %c2_i32, %c8_i32_64 : i32
    %171 = tpu.assume_multiple %170, 8 : i32
    %c3_i32_65 = arith.constant 3 : i32
    %172 = arith.subi %c3_i32_65, %c2_i32 : i32
    %c8_i32_66 = arith.constant 8 : i32
    %173 = arith.muli %172, %c8_i32_66 : i32
    %174 = tpu.assume_multiple %173, 8 : i32
    %175 = arith.index_cast %171 : i32 to index
    %c0_67 = arith.constant 0 : index
    %176 = vector.load %arg13[%175, %c0_67] : memref<32x384xf32, #tpu.memory_space<vmem>>, vector<8x384xf32>
    %177 = arith.index_cast %174 : i32 to index
    %c0_68 = arith.constant 0 : index
    %178 = vector.load %arg14[%177, %c0_68] : memref<32x384xf32, #tpu.memory_space<vmem>>, vector<8x384xf32>
    %c0_69 = arith.constant 0 : index
    %c0_70 = arith.constant 0 : index
    %179 = vector.load %arg5[%c0_69, %c0_70] : memref<128x384xf32, #tpu.memory_space<vmem>>, vector<128x384xf32>
    %cst_71 = arith.constant dense<0.000000e+00> : vector<8x384xf32>
    %180 = tpu.matmul %138, %179, %cst_71 {dimension_numbers = #tpu.dot_dimension_numbers<[1], [0], [0], [1], [0, 0, 1, 1], [], []>} : vector<8x128xf32>, vector<128x384xf32>, vector<8x384xf32> -> vector<8x384xf32>
    %c0_72 = arith.constant 0 : index
    %c0_73 = arith.constant 0 : index
    %181 = vector.load %arg6[%c0_72, %c0_73] : memref<128x384xf32, #tpu.memory_space<vmem>>, vector<128x384xf32>
    %cst_74 = arith.constant dense<0.000000e+00> : vector<8x384xf32>
    %182 = tpu.matmul %165, %181, %cst_74 {dimension_numbers = #tpu.dot_dimension_numbers<[1], [0], [0], [1], [0, 0, 1, 1], [], []>} : vector<8x128xf32>, vector<128x384xf32>, vector<8x384xf32> -> vector<8x384xf32>
    %183 = vector.extract_strided_slice %176 {offsets = [0, 0], sizes = [8, 128], strides = [1, 1]} : vector<8x384xf32> to vector<8x128xf32>
    %184 = vector.extract_strided_slice %180 {offsets = [0, 0], sizes = [8, 128], strides = [1, 1]} : vector<8x384xf32> to vector<8x128xf32>
    %185 = arith.addf %183, %184 : vector<8x128xf32>
    %186 = arith.negf %185 : vector<8x128xf32>
    %187 = math.exp %186 : vector<8x128xf32>
    %cst_75 = arith.constant 1.000000e+00 : f32
    %188 = vector.broadcast %cst_75 : f32 to vector<8x128xf32>
    %189 = arith.addf %188, %187 : vector<8x128xf32>
    %190 = arith.divf %188, %189 : vector<8x128xf32>
    %191 = vector.extract_strided_slice %176 {offsets = [0, 128], sizes = [8, 128], strides = [1, 1]} : vector<8x384xf32> to vector<8x128xf32>
    %192 = vector.extract_strided_slice %180 {offsets = [0, 128], sizes = [8, 128], strides = [1, 1]} : vector<8x384xf32> to vector<8x128xf32>
    %193 = arith.addf %191, %192 : vector<8x128xf32>
    %194 = arith.negf %193 : vector<8x128xf32>
    %195 = math.exp %194 : vector<8x128xf32>
    %cst_76 = arith.constant 1.000000e+00 : f32
    %196 = vector.broadcast %cst_76 : f32 to vector<8x128xf32>
    %197 = arith.addf %196, %195 : vector<8x128xf32>
    %198 = arith.divf %196, %197 : vector<8x128xf32>
    %199 = vector.extract_strided_slice %176 {offsets = [0, 256], sizes = [8, 128], strides = [1, 1]} : vector<8x384xf32> to vector<8x128xf32>
    %200 = vector.extract_strided_slice %180 {offsets = [0, 256], sizes = [8, 128], strides = [1, 1]} : vector<8x384xf32> to vector<8x128xf32>
    %201 = arith.addf %200, %22 : vector<8x128xf32>
    %202 = arith.mulf %190, %201 : vector<8x128xf32>
    %203 = arith.addf %199, %202 : vector<8x128xf32>
    %204 = math.tanh %203 : vector<8x128xf32>
    %cst_77 = arith.constant 1.000000e+00 : f32
    %205 = vector.broadcast %cst_77 : f32 to vector<8x128xf32>
    %206 = arith.subf %205, %198 : vector<8x128xf32>
    %207 = arith.mulf %206, %204 : vector<8x128xf32>
    %208 = arith.mulf %198, %138 : vector<8x128xf32>
    %209 = arith.addf %207, %208 : vector<8x128xf32>
    %210 = vector.extract_strided_slice %178 {offsets = [0, 0], sizes = [8, 128], strides = [1, 1]} : vector<8x384xf32> to vector<8x128xf32>
    %211 = vector.extract_strided_slice %182 {offsets = [0, 0], sizes = [8, 128], strides = [1, 1]} : vector<8x384xf32> to vector<8x128xf32>
    %212 = arith.addf %210, %211 : vector<8x128xf32>
    %213 = arith.negf %212 : vector<8x128xf32>
    %214 = math.exp %213 : vector<8x128xf32>
    %cst_78 = arith.constant 1.000000e+00 : f32
    %215 = vector.broadcast %cst_78 : f32 to vector<8x128xf32>
    %216 = arith.addf %215, %214 : vector<8x128xf32>
    %217 = arith.divf %215, %216 : vector<8x128xf32>
    %218 = vector.extract_strided_slice %178 {offsets = [0, 128], sizes = [8, 128], strides = [1, 1]} : vector<8x384xf32> to vector<8x128xf32>
    %219 = vector.extract_strided_slice %182 {offsets = [0, 128], sizes = [8, 128], strides = [1, 1]} : vector<8x384xf32> to vector<8x128xf32>
    %220 = arith.addf %218, %219 : vector<8x128xf32>
    %221 = arith.negf %220 : vector<8x128xf32>
    %222 = math.exp %221 : vector<8x128xf32>
    %cst_79 = arith.constant 1.000000e+00 : f32
    %223 = vector.broadcast %cst_79 : f32 to vector<8x128xf32>
    %224 = arith.addf %223, %222 : vector<8x128xf32>
    %225 = arith.divf %223, %224 : vector<8x128xf32>
    %226 = vector.extract_strided_slice %178 {offsets = [0, 256], sizes = [8, 128], strides = [1, 1]} : vector<8x384xf32> to vector<8x128xf32>
    %227 = vector.extract_strided_slice %182 {offsets = [0, 256], sizes = [8, 128], strides = [1, 1]} : vector<8x384xf32> to vector<8x128xf32>
    %228 = arith.addf %227, %25 : vector<8x128xf32>
    %229 = arith.mulf %217, %228 : vector<8x128xf32>
    %230 = arith.addf %226, %229 : vector<8x128xf32>
    %231 = math.tanh %230 : vector<8x128xf32>
    %cst_80 = arith.constant 1.000000e+00 : f32
    %232 = vector.broadcast %cst_80 : f32 to vector<8x128xf32>
    %233 = arith.subf %232, %225 : vector<8x128xf32>
    %234 = arith.mulf %233, %231 : vector<8x128xf32>
    %235 = arith.mulf %225, %165 : vector<8x128xf32>
    %236 = arith.addf %234, %235 : vector<8x128xf32>
    %237 = arith.index_cast %171 : i32 to index
    %c0_81 = arith.constant 0 : index
    %238 = vector.load %arg11[%237, %c0_81] : memref<32x128xf32, #tpu.memory_space<vmem>>, vector<8x128xf32>
    tpu.vector_store %arg11[%237, %c0_81], %209 {strides = array<i32>} : memref<32x128xf32, #tpu.memory_space<vmem>>, vector<8x128xf32>,
    %239 = arith.index_cast %174 : i32 to index
    %c0_82 = arith.constant 0 : index
    %240 = vector.load %arg12[%239, %c0_82] : memref<32x128xf32, #tpu.memory_space<vmem>>, vector<8x128xf32>
    tpu.vector_store %arg12[%239, %c0_82], %236 {strides = array<i32>} : memref<32x128xf32, #tpu.memory_space<vmem>>, vector<8x128xf32>,
    %c3_i32_83 = arith.constant 3 : i32
    %c8_i32_84 = arith.constant 8 : i32
    %241 = arith.muli %c3_i32_83, %c8_i32_84 : i32
    %242 = tpu.assume_multiple %241, 8 : i32
    %c3_i32_85 = arith.constant 3 : i32
    %243 = arith.subi %c3_i32_85, %c3_i32_83 : i32
    %c8_i32_86 = arith.constant 8 : i32
    %244 = arith.muli %243, %c8_i32_86 : i32
    %245 = tpu.assume_multiple %244, 8 : i32
    %246 = arith.index_cast %242 : i32 to index
    %c0_87 = arith.constant 0 : index
    %247 = vector.load %arg13[%246, %c0_87] : memref<32x384xf32, #tpu.memory_space<vmem>>, vector<8x384xf32>
    %248 = arith.index_cast %245 : i32 to index
    %c0_88 = arith.constant 0 : index
    %249 = vector.load %arg14[%248, %c0_88] : memref<32x384xf32, #tpu.memory_space<vmem>>, vector<8x384xf32>
    %c0_89 = arith.constant 0 : index
    %c0_90 = arith.constant 0 : index
    %250 = vector.load %arg5[%c0_89, %c0_90] : memref<128x384xf32, #tpu.memory_space<vmem>>, vector<128x384xf32>
    %cst_91 = arith.constant dense<0.000000e+00> : vector<8x384xf32>
    %251 = tpu.matmul %209, %250, %cst_91 {dimension_numbers = #tpu.dot_dimension_numbers<[1], [0], [0], [1], [0, 0, 1, 1], [], []>} : vector<8x128xf32>, vector<128x384xf32>, vector<8x384xf32> -> vector<8x384xf32>
    %c0_92 = arith.constant 0 : index
    %c0_93 = arith.constant 0 : index
    %252 = vector.load %arg6[%c0_92, %c0_93] : memref<128x384xf32, #tpu.memory_space<vmem>>, vector<128x384xf32>
    %cst_94 = arith.constant dense<0.000000e+00> : vector<8x384xf32>
    %253 = tpu.matmul %236, %252, %cst_94 {dimension_numbers = #tpu.dot_dimension_numbers<[1], [0], [0], [1], [0, 0, 1, 1], [], []>} : vector<8x128xf32>, vector<128x384xf32>, vector<8x384xf32> -> vector<8x384xf32>
    %254 = vector.extract_strided_slice %247 {offsets = [0, 0], sizes = [8, 128], strides = [1, 1]} : vector<8x384xf32> to vector<8x128xf32>
    %255 = vector.extract_strided_slice %251 {offsets = [0, 0], sizes = [8, 128], strides = [1, 1]} : vector<8x384xf32> to vector<8x128xf32>
    %256 = arith.addf %254, %255 : vector<8x128xf32>
    %257 = arith.negf %256 : vector<8x128xf32>
    %258 = math.exp %257 : vector<8x128xf32>
    %cst_95 = arith.constant 1.000000e+00 : f32
    %259 = vector.broadcast %cst_95 : f32 to vector<8x128xf32>
    %260 = arith.addf %259, %258 : vector<8x128xf32>
    %261 = arith.divf %259, %260 : vector<8x128xf32>
    %262 = vector.extract_strided_slice %247 {offsets = [0, 128], sizes = [8, 128], strides = [1, 1]} : vector<8x384xf32> to vector<8x128xf32>
    %263 = vector.extract_strided_slice %251 {offsets = [0, 128], sizes = [8, 128], strides = [1, 1]} : vector<8x384xf32> to vector<8x128xf32>
    %264 = arith.addf %262, %263 : vector<8x128xf32>
    %265 = arith.negf %264 : vector<8x128xf32>
    %266 = math.exp %265 : vector<8x128xf32>
    %cst_96 = arith.constant 1.000000e+00 : f32
    %267 = vector.broadcast %cst_96 : f32 to vector<8x128xf32>
    %268 = arith.addf %267, %266 : vector<8x128xf32>
    %269 = arith.divf %267, %268 : vector<8x128xf32>
    %270 = vector.extract_strided_slice %247 {offsets = [0, 256], sizes = [8, 128], strides = [1, 1]} : vector<8x384xf32> to vector<8x128xf32>
    %271 = vector.extract_strided_slice %251 {offsets = [0, 256], sizes = [8, 128], strides = [1, 1]} : vector<8x384xf32> to vector<8x128xf32>
    %272 = arith.addf %271, %22 : vector<8x128xf32>
    %273 = arith.mulf %261, %272 : vector<8x128xf32>
    %274 = arith.addf %270, %273 : vector<8x128xf32>
    %275 = math.tanh %274 : vector<8x128xf32>
    %cst_97 = arith.constant 1.000000e+00 : f32
    %276 = vector.broadcast %cst_97 : f32 to vector<8x128xf32>
    %277 = arith.subf %276, %269 : vector<8x128xf32>
    %278 = arith.mulf %277, %275 : vector<8x128xf32>
    %279 = arith.mulf %269, %209 : vector<8x128xf32>
    %280 = arith.addf %278, %279 : vector<8x128xf32>
    %281 = vector.extract_strided_slice %249 {offsets = [0, 0], sizes = [8, 128], strides = [1, 1]} : vector<8x384xf32> to vector<8x128xf32>
    %282 = vector.extract_strided_slice %253 {offsets = [0, 0], sizes = [8, 128], strides = [1, 1]} : vector<8x384xf32> to vector<8x128xf32>
    %283 = arith.addf %281, %282 : vector<8x128xf32>
    %284 = arith.negf %283 : vector<8x128xf32>
    %285 = math.exp %284 : vector<8x128xf32>
    %cst_98 = arith.constant 1.000000e+00 : f32
    %286 = vector.broadcast %cst_98 : f32 to vector<8x128xf32>
    %287 = arith.addf %286, %285 : vector<8x128xf32>
    %288 = arith.divf %286, %287 : vector<8x128xf32>
    %289 = vector.extract_strided_slice %249 {offsets = [0, 128], sizes = [8, 128], strides = [1, 1]} : vector<8x384xf32> to vector<8x128xf32>
    %290 = vector.extract_strided_slice %253 {offsets = [0, 128], sizes = [8, 128], strides = [1, 1]} : vector<8x384xf32> to vector<8x128xf32>
    %291 = arith.addf %289, %290 : vector<8x128xf32>
    %292 = arith.negf %291 : vector<8x128xf32>
    %293 = math.exp %292 : vector<8x128xf32>
    %cst_99 = arith.constant 1.000000e+00 : f32
    %294 = vector.broadcast %cst_99 : f32 to vector<8x128xf32>
    %295 = arith.addf %294, %293 : vector<8x128xf32>
    %296 = arith.divf %294, %295 : vector<8x128xf32>
    %297 = vector.extract_strided_slice %249 {offsets = [0, 256], sizes = [8, 128], strides = [1, 1]} : vector<8x384xf32> to vector<8x128xf32>
    %298 = vector.extract_strided_slice %253 {offsets = [0, 256], sizes = [8, 128], strides = [1, 1]} : vector<8x384xf32> to vector<8x128xf32>
    %299 = arith.addf %298, %25 : vector<8x128xf32>
    %300 = arith.mulf %288, %299 : vector<8x128xf32>
    %301 = arith.addf %297, %300 : vector<8x128xf32>
    %302 = math.tanh %301 : vector<8x128xf32>
    %cst_100 = arith.constant 1.000000e+00 : f32
    %303 = vector.broadcast %cst_100 : f32 to vector<8x128xf32>
    %304 = arith.subf %303, %296 : vector<8x128xf32>
    %305 = arith.mulf %304, %302 : vector<8x128xf32>
    %306 = arith.mulf %296, %236 : vector<8x128xf32>
    %307 = arith.addf %305, %306 : vector<8x128xf32>
    %308 = arith.index_cast %242 : i32 to index
    %c0_101 = arith.constant 0 : index
    %309 = vector.load %arg11[%308, %c0_101] : memref<32x128xf32, #tpu.memory_space<vmem>>, vector<8x128xf32>
    tpu.vector_store %arg11[%308, %c0_101], %280 {strides = array<i32>} : memref<32x128xf32, #tpu.memory_space<vmem>>, vector<8x128xf32>,
    %310 = arith.index_cast %245 : i32 to index
    %c0_102 = arith.constant 0 : index
    %311 = vector.load %arg12[%310, %c0_102] : memref<32x128xf32, #tpu.memory_space<vmem>>, vector<8x128xf32>
    tpu.vector_store %arg12[%310, %c0_102], %307 {strides = array<i32>} : memref<32x128xf32, #tpu.memory_space<vmem>>, vector<8x128xf32>,
    %c4_i32 = arith.constant 4 : i32
    %c0_103 = arith.constant 0 : index
    %c0_104 = arith.constant 0 : index
    %312 = vector.load %arg15[%c0_103, %c0_104] : memref<8x128xf32, #tpu.memory_space<vmem>>, vector<8x128xf32>
    tpu.vector_store %arg15[%c0_103, %c0_104], %280 {strides = array<i32>} : memref<8x128xf32, #tpu.memory_space<vmem>>, vector<8x128xf32>,
    %c0_105 = arith.constant 0 : index
    %c0_106 = arith.constant 0 : index
    %313 = vector.load %arg16[%c0_105, %c0_106] : memref<8x128xf32, #tpu.memory_space<vmem>>, vector<8x128xf32>
    tpu.vector_store %arg16[%c0_105, %c0_106], %307 {strides = array<i32>} : memref<8x128xf32, #tpu.memory_space<vmem>>, vector<8x128xf32>,
    return
  }
  func.func @transform_0(%arg0: i32) -> (i32, i32) {
    %c0_i32 = arith.constant 0 : i32
    %c0_i32_0 = arith.constant 0 : i32
    return %arg0, %c0_i32 : i32, i32
  }
  func.func @transform_1(%arg0: i32) -> (i32, i32) {
    %c2_i32 = arith.constant 2 : i32
    %0 = arith.subi %c2_i32, %arg0 : i32
    %c0_i32 = arith.constant 0 : i32
    %c0_i32_0 = arith.constant 0 : i32
    return %0, %c0_i32 : i32, i32
  }
  func.func @transform_2(%arg0: i32) -> (i32, i32) {
    %c0_i32 = arith.constant 0 : i32
    %c0_i32_0 = arith.constant 0 : i32
    %c0_i32_1 = arith.constant 0 : i32
    return %c0_i32, %c0_i32_0 : i32, i32
  }
  func.func @transform_3(%arg0: i32) -> (i32, i32) {
    %c0_i32 = arith.constant 0 : i32
    %c0_i32_0 = arith.constant 0 : i32
    %c0_i32_1 = arith.constant 0 : i32
    return %c0_i32, %c0_i32_0 : i32, i32
  }
  func.func @transform_4(%arg0: i32) -> (i32, i32) {
    %c0_i32 = arith.constant 0 : i32
    %c0_i32_0 = arith.constant 0 : i32
    %c0_i32_1 = arith.constant 0 : i32
    return %c0_i32, %c0_i32_0 : i32, i32
  }
  func.func @transform_5(%arg0: i32) -> (i32, i32) {
    %c0_i32 = arith.constant 0 : i32
    %c0_i32_0 = arith.constant 0 : i32
    %c0_i32_1 = arith.constant 0 : i32
    return %c0_i32, %c0_i32_0 : i32, i32
  }
  func.func @transform_6(%arg0: i32) -> (i32, i32) {
    %c0_i32 = arith.constant 0 : i32
    %c0_i32_0 = arith.constant 0 : i32
    %c0_i32_1 = arith.constant 0 : i32
    return %c0_i32, %c0_i32_0 : i32, i32
  }
  func.func @transform_7(%arg0: i32) -> (i32, i32) {
    %c0_i32 = arith.constant 0 : i32
    %c0_i32_0 = arith.constant 0 : i32
    %c0_i32_1 = arith.constant 0 : i32
    return %c0_i32, %c0_i32_0 : i32, i32
  }
  func.func @transform_8(%arg0: i32) -> (i32, i32) {
    %c0_i32 = arith.constant 0 : i32
    %c0_i32_0 = arith.constant 0 : i32
    %c0_i32_1 = arith.constant 0 : i32
    return %c0_i32, %c0_i32_0 : i32, i32
  }
  func.func @transform_9(%arg0: i32) -> (i32, i32) {
    %c0_i32 = arith.constant 0 : i32
    %c0_i32_0 = arith.constant 0 : i32
    %c0_i32_1 = arith.constant 0 : i32
    return %c0_i32, %c0_i32_0 : i32, i32
  }
  func.func @transform_10(%arg0: i32) -> (i32, i32) {
    %c0_i32 = arith.constant 0 : i32
    %c0_i32_0 = arith.constant 0 : i32
    return %arg0, %c0_i32 : i32, i32
  }
  func.func @transform_11(%arg0: i32) -> (i32, i32) {
    %c2_i32 = arith.constant 2 : i32
    %0 = arith.subi %c2_i32, %arg0 : i32
    %c0_i32 = arith.constant 0 : i32
    %c0_i32_0 = arith.constant 0 : i32
    return %0, %c0_i32 : i32, i32
  }
}

</mosaic_0001>

<bundles_post_ra>
// kernel: tpu_custom_call.1
= control target key start
LH: loop header
LB: loop body
LE: loop exit
PB: predicated region body
PF: predicated region fallthrough
CT: control target
= control target key end

     0   :  { %s5817_s0 = inlined_call_operand.hbm [shape: f32[96,128], index: 0, kind: input, shape index: {}]   ;;  %s5818_s1 = inlined_call_operand.hbm [shape: f32[96,128], index: 1, kind: input, shape index: {}]   ;;  %s5819_s2 = inlined_call_operand.hbm [shape: f32[128,384], index: 2, kind: input, shape index: {}]   ;;  %s5820_s3 = inlined_call_operand.hbm [shape: f32[128,384], index: 3, kind: input, shape index: {}]   ;;  %s5821_s4 = inlined_call_operand.hbm [shape: f32[128,384], index: 4, kind: input, shape index: {}]   ;;  %s5822_s5 = inlined_call_operand.hbm [shape: f32[128,384], index: 5, kind: input, shape index: {}]   ;;  %s5823_s6 = inlined_call_operand.vmem [shape: f32[1,384], index: 6, kind: input, shape index: {}]   ;;  %s5824_s7 = inlined_call_operand.vmem [shape: f32[1,384], index: 7, kind: input, shape index: {}]   ;;  %s5825_s8 = inlined_call_operand.vmem [shape: f32[1,128], index: 8, kind: input, shape index: {}]   ;;  %s5826_s9 = inlined_call_operand.vmem [shape: f32[1,128], index: 9, kind: input, shape index: {}]   ;;  %s5827_s10 = inlined_call_operand.hbm [shape: f32[96,128], index: 10, kind: output, shape index: {0}]   ;;  %s5828_s11 = inlined_call_operand.hbm [shape: f32[96,128], index: 11, kind: output, shape index: {1}]  }
   0x1   :  { %5844 = sst [smem:[#allocation28_spill]] %s5817_s0 }
   0x2   :  { %5845 = sst [smem:[#allocation29_spill]] %s5819_s2 }
   0x3   :  { %5846 = sst [smem:[#allocation30_spill]] %s5820_s3 }
   0x4   :  { %5847 = sst [smem:[#allocation31_spill]] %s5821_s4 }
   0x5   :  { %5848 = sst [smem:[#allocation32_spill]] %s5823_s6 }
   0x6   :  { %5849 = sst [smem:[#allocation33_spill]] %s5824_s7 }
   0x7   :  { %5850 = sst [smem:[#allocation34_spill]] %s5825_s8 }
   0x8   :  { %5851 = sst [smem:[#allocation35_spill]] %s5826_s9 }
   0x9   :  { %5852 = sst [smem:[#allocation36_spill]] %s5827_s10 }
   0xa   :  { %5853 = sst [smem:[#allocation37_spill]] %s5828_s11 }
   0xb   :  { %17 = vsyncpa [#allocation7], 0 }
   0xc   :  { %19 = vsyncpa [#allocation7 + $0x1], 0 }
   0xd   :  { %20 = vsyncpa [#allocation10], 0 }
   0xe   :  { %22 = vsyncpa [#allocation10 + $0x1], 0 }
   0xf   :  { %23 = vsyncpa [#allocation13], 0 }
  0x10   :  { %24 = vsyncpa [#allocation16], 0 }
  0x11   :  { %25 = vsyncpa [#allocation8], 0 }
  0x12   :  { %27 = vsyncpa [#allocation8 + $0x1], 0 }
  0x13   :  { %28 = vsyncpa [#allocation19], 0 }
  0x14   :  { %30 = vsyncpa [#allocation19 + $0x1], 0  ;;  %s4831_s17 = smov 0   ;;  %s4833_s18 = smov 0  }
  0x15   :  { %s4835_s19 = smov 0   ;;  %s4837_s20 = smov 0  }
  0x16   :  { %s4839_s21 = smov 0   ;;  %s4841_s22 = smov 0  }
  0x17   :  { %s4843_s23 = smov 0  }
  0x18 LB: > { %s4867_s24 = sadd.s32 4294967295, %s4750_s23   ;;  %p5831_p0 = scmp.ne.s32.totalorder %s4730_s18, %s4726_s17  ;;  %s4750_s23 = sphi %s4843_s23, %s5906_s23   ;;  %s4746_s22 = sphi %s4841_s22, %s5905_s22   ;;  %s4742_s21 = sphi %s4839_s21, %s5904_s21   ;;  %s4738_s20 = sphi %s4837_s20, %s5903_s20   ;;  %s4734_s19 = sphi %s4835_s19, %s5902_s19   ;;  %s4730_s18 = sphi %s4833_s18, %s5901_s18   ;;  %s4726_s17 = sphi %s4831_s17, %s5900_s17  }
  0x19   : > { %p5832_p1 = scmp.eq.s32.totalorder %s4867_s24, 0  ;;  %p3020_p3 = scmp.ge.s32.totalorder %s4750_s23, 1 }
  0x1a   : > { %p317_p4 = scmp.lt.s32.totalorder %s4750_s23, 4  ;;  %s4752_s27 = smov [#allocation11]  }
  0x1b   : > { %p4880_p5 = por %p5831_p0, %p5832_p1  ;;  %s329_s28 = sshll.u32 %s4752_s27, 4  ;;  %s330_s28 = int_to_ptr.vmem [resolvable:$true] %s329_s28 }
  0x1c   : > { %p4885_p7 = pnand %p3020_p3, %p317_p4  ;;  %s4753_s30 = smov [#allocation12]  }
  0x1d   : > { %s5854_s25 = scalar_select %p4880_p5, 1, 0 }
  0x1e   : > { %s5856_s26 = scalar_select %p4885_p7, 1, 0 }
  0x1f   : > { %5855 = sst [smem:[#allocation27_spill]] %s5854_s25  ;;  %p4251_p8 = pneg %p4885_p7 }
  0x20   : > { %s342_s12 = sshll.u32 %s4753_s30, 4  ;;  %s5858_s2 = sld [smem:[#allocation29_spill]]  ;;  %s4897_s12 = int_to_ptr.vmem [resolvable:$true] %s342_s12 }
  0x21   : > { %p4893_p9 = pnand %p4251_p8, %p5832_p1 }
  0x23   : > { %p4907_p11 = pneg %p4893_p9 }
  0x26   : > { %s4440_s15 = scalar_lea.hbm %s5858_s2, 6144 }
  0x27   : > { %p4441_p10 = scmp.ne.s32.totalorder %s5858_s2, %s4440_s15  ;;  %p4447_p3 = scmp.lt.u32.totalorder %s4440_s15, %s5858_s2 }
  0x29   : > { %p4443_p12 = pnand %p4907_p11, %p4441_p10 }
  0x2b   : > { %p4444_p13 = pneg %p4443_p12 }
  0x2d   : > { %p4449_p4 = pnand %p4447_p3, %p4444_p13 }
  0x2f   : > { %4452 = shalt.err (!%p4449_p4)
}
  0x30   : > { %s4453_s13 = scalar_lea.vmem %s330_s28, 6144  ;;  %p4461_p1 = scmp.lt.s32.totalorder %s330_s28, %s330_s28 }
  0x31   : > { %p4454_p8 = scmp.ne.s32.totalorder %s330_s28, %s4453_s13  ;;  %p4462_p2 = scmp.lt.s32.totalorder %s4453_s13, %s4453_s13 }
  0x33   : > { %p4456_p6 = pnand %p4454_p8, %p4907_p11  ;;  %p4463_p5 = por %p4462_p2, %p4461_p1 }
  0x35   : > { %p4457_p0 = pneg %p4456_p6 }
  0x37   : > { %p4464_p7 = pnand %p4463_p5, %p4457_p0 }
  0x39   : > { %4467 = shalt.err (!%p4464_p7)
}
  0x3a   : > { %s4754_s11 = smov 384   ;;  %s4755_s14 = smov 24  }
  0x3b   : > { %4254 = dma.hbm_to_vmem [thread:$0]  (!%p4893_p9), %s5858_s2, 6144, %s330_s28, [#allocation10], %s4754_s11, %s4754_s11, %s4755_s14  }
  0x3c   : > { %s5860_s3 = sld [smem:[#allocation30_spill]] }
  0x42   : > { %s4468_s9 = scalar_lea.hbm %s5860_s3, 6144 }
  0x43   : > { %p4469_p0 = scmp.ne.s32.totalorder %s5860_s3, %s4468_s9  ;;  %p4475_p5 = scmp.lt.u32.totalorder %s4468_s9, %s5860_s3 }
  0x45   : > { %p4471_p1 = pnand %p4469_p0, %p4907_p11 }
  0x47   : > { %p4472_p2 = pneg %p4471_p1 }
  0x49   : > { %p4477_p6 = pnand %p4475_p5, %p4472_p2 }
  0x4b   : > { %4480 = shalt.err (!%p4477_p6)
}
  0x4c   : > { %s4481_s28 = scalar_lea.vmem %s4897_s12, 6144  ;;  %p4489_p13 = scmp.lt.s32.totalorder %s4897_s12, %s4897_s12 }
  0x4d   : > { %p4482_p7 = scmp.ne.s32.totalorder %s4897_s12, %s4481_s28  ;;  %p4490_p3 = scmp.lt.s32.totalorder %s4481_s28, %s4481_s28 }
  0x4f   : > { %p4484_p10 = pnand %p4482_p7, %p4907_p11  ;;  %p4491_p4 = por %p4490_p3, %p4489_p13 }
  0x51   : > { %p4485_p12 = pneg %p4484_p10 }
  0x53   : > { %p4492_p8 = pnand %p4491_p4, %p4485_p12 }
  0x55   : > { %4495 = shalt.err (!%p4492_p8)
}
  0x56   : > { %4257 = dma.hbm_to_vmem [thread:$0]  (!%p4893_p9), %s5860_s3, 6144, %s4897_s12, [#allocation13], %s4754_s11, %s4754_s11, %s4755_s14  }
  0x57   : > { %s4756_s8 = smov [#allocation14]   ;;  %s4757_s10 = smov [#allocation15]  }
  0x58   : > { %s355_s9 = sshll.u32 %s4756_s8, 4  ;;  %s368_s15 = sshll.u32 %s4757_s10, 4  ;;  %s356_s9 = int_to_ptr.vmem [resolvable:$true] %s355_s9  ;;  %s369_s15 = int_to_ptr.vmem [resolvable:$true] %s368_s15 }
  0x59   : > { %s5861_s4 = sld [smem:[#allocation31_spill]] }
  0x5f   : > { %s4496_s13 = scalar_lea.hbm %s5861_s4, 6144 }
  0x60   : > { %p4497_p0 = scmp.ne.s32.totalorder %s5861_s4, %s4496_s13  ;;  %p4503_p5 = scmp.lt.u32.totalorder %s4496_s13, %s5861_s4 }
  0x62   : > { %p4499_p1 = pnand %p4497_p0, %p4907_p11 }
  0x64   : > { %p4500_p2 = pneg %p4499_p1 }
  0x66   : > { %p4505_p6 = pnand %p4503_p5, %p4500_p2 }
  0x68   : > { %4508 = shalt.err (!%p4505_p6)
}
  0x69   : > { %s4509_s12 = scalar_lea.vmem %s356_s9, 6144  ;;  %p4517_p13 = scmp.lt.s32.totalorder %s356_s9, %s356_s9 }
  0x6a   : > { %p4510_p7 = scmp.ne.s32.totalorder %s356_s9, %s4509_s12  ;;  %p4518_p3 = scmp.lt.s32.totalorder %s4509_s12, %s4509_s12 }
  0x6c   : > { %p4512_p10 = pnand %p4510_p7, %p4907_p11  ;;  %p4519_p4 = por %p4518_p3, %p4517_p13 }
  0x6e   : > { %p4513_p12 = pneg %p4512_p10 }
  0x70   : > { %p4520_p8 = pnand %p4519_p4, %p4513_p12 }
  0x72   : > { %4523 = shalt.err (!%p4520_p8)
}
  0x73   : > { %4260 = dma.hbm_to_vmem [thread:$0]  (!%p4893_p9), %s5861_s4, 6144, %s356_s9, [#allocation13], %s4754_s11, %s4754_s11, %s4755_s14  }
  0x74   : > { %s4524_s10 = scalar_lea.hbm %s5822_s5, 6144 }
  0x75   : > { %p4525_p0 = scmp.ne.s32.totalorder %s5822_s5, %s4524_s10  ;;  %p4531_p5 = scmp.lt.u32.totalorder %s4524_s10, %s5822_s5 }
  0x77   : > { %p4527_p1 = pnand %p4525_p0, %p4907_p11 }
  0x79   : > { %p4528_p2 = pneg %p4527_p1 }
  0x7b   : > { %p4533_p6 = pnand %p4531_p5, %p4528_p2 }
  0x7d   : > { %4536 = shalt.err (!%p4533_p6)
}
  0x7e   : > { %s4537_s6 = scalar_lea.vmem %s369_s15, 6144  ;;  %p4545_p13 = scmp.lt.s32.totalorder %s369_s15, %s369_s15 }
  0x7f   : > { %p4538_p7 = scmp.ne.s32.totalorder %s369_s15, %s4537_s6  ;;  %p4546_p3 = scmp.lt.s32.totalorder %s4537_s6, %s4537_s6 }
  0x81   : > { %p4540_p10 = pnand %p4538_p7, %p4907_p11  ;;  %p4547_p4 = por %p4546_p3, %p4545_p13 }
  0x83   : > { %p4541_p12 = pneg %p4540_p10 }
  0x85   : > { %p4548_p8 = pnand %p4547_p4, %p4541_p12 }
  0x87   : > { %4551 = shalt.err (!%p4548_p8)
}
  0x88   : > { %4263 = dma.hbm_to_vmem [thread:$0]  (!%p4893_p9), %s5822_s5, 6144, %s369_s15, [#allocation16], %s4754_s11, %s4754_s11, %s4755_s14  }
  0x89   : > { %s3019_s29 = sadd.s32 4294967294, %s4750_s23   ;;  %s43_s27 = sadd.s32 1, %s4746_s22 }
  0x8a   : > { %p50_p11 = scmp.ne.s32.totalorder %s4746_s22, %s4742_s21  ;;  %p5839_p0 = scmp.eq.s32.totalorder %s4750_s23, 0 }
  0x8b   : > { %p56_p1 = scmp.ne.s32.totalorder %s4742_s21, %s4738_s20  ;;  %p5862_p2 = scmp.eq.s32.totalorder %s4867_s24, 2 }
  0x8c   : > { %p282_p6 = scmp.eq.s32.totalorder %s3019_s29, 2  ;;  %p52_p7 = por %p5839_p0, %p50_p11 }
  0x8d   : > { %p5003_p5 = por %p5862_p2, %p50_p11  ;;  %p5864_p10 = scmp.eq.s32.totalorder %s4867_s24, 0 }
  0x8e   : > { %p5015_p9 = por %p282_p6, %p56_p1  ;;  %p5867_p13 = scmp.ne.s32.totalorder %s4730_s18, %s4726_s17 }
  0x8f   : > { %s5863_s2 = scalar_select %p5003_p5, 1, 0 }
  0x90   : > { %p5011_p12 = por %p5864_p10, %p56_p1  ;;  %p5022_p3 = por %p282_p6, %p5867_p13 }
  0x91   : > { %s5866_s11 = scalar_select %p5015_p9, 1, 0 }
  0x92   : > { %s5868_s14 = scalar_select %p5022_p3, 1, 0 }
  0x93   : > { %p5838_p4 = scmp.lt.s32.totalorder %s4750_s23, 3  ;;  %s394_s15 = sand.u32 1, %s4746_s22  }
  0x94   : > { %s3026_s7 = sshll.u32 %s394_s15, 5  ;;  %s3075_s8 = sshll.u32 %s4750_s23, 9 }
  0x95   : > { %s5869_s0 = sld [smem:[#allocation28_spill]]  ;;  %s398_s13 = scalar_lea.vmem [#allocation6], %s3026_s7 }
  0x96   : > { %s405_s28 = sshll.u32 %s398_s13, 4  ;;  %p5038_p8 = pnand %p5838_p4, %p52_p7  ;;  %s5034_s28 = int_to_ptr.vmem [resolvable:$true] %s405_s28 }
  0x97   : > { %s5042_s9 = scalar_lea.sflag [#allocation7], %s394_s15 }
  0x98   : > { %p4554_p1 = pneg %p5038_p8 }
  0x9b   : > { %s5032_s30 = scalar_lea.hbm %s5869_s0, %s3075_s8  ;;  %s4557_s8 = scalar_lea.hbm %s5869_s0, 1536 }
  0x9c   : > { %s4552_s12 = scalar_lea.hbm %s5032_s30, 512  ;;  %p4558_p7 = scmp.lt.u32.totalorder %s5032_s30, %s5869_s0 }
  0x9d   : > { %p4553_p11 = scmp.ne.s32.totalorder %s5032_s30, %s4552_s12  ;;  %p4559_p10 = scmp.lt.u32.totalorder %s4557_s8, %s4552_s12 }
  0x9e   : > { %p4561_p4 = scmp.lt.u32.totalorder %s4552_s12, %s5032_s30 }
  0x9f   : > { %p4555_p2 = pnand %p4554_p1, %p4553_p11  ;;  %p4560_p13 = por %p4559_p10, %p4558_p7 }
  0xa1   : > { %p4556_p6 = pneg %p4555_p2  ;;  %p4562_p0 = por %p4561_p4, %p4560_p13 }
  0xa3   : > { %p4563_p3 = pnand %p4562_p0, %p4556_p6 }
  0xa5   : > { %4566 = shalt.err (!%p4563_p3)
}
  0xa6   : > { %s4567_s15 = scalar_lea.vmem %s5034_s28, 512  ;;  %s4758_s13 = smov [#allocation6]  }
  0xa7   : > { %p4568_p11 = scmp.ne.s32.totalorder %s5034_s28, %s4567_s15  ;;  %s4572_s29 = sshll.u32 %s4758_s13, 4  ;;  %s4573_s29 = int_to_ptr.vmem [resolvable:$false] %s4572_s29 }
  0xa8   : > { %s4574_s7 = scalar_lea.vmem %s4573_s29, 1024  ;;  %p4575_p5 = scmp.lt.s32.totalorder %s5034_s28, %s4573_s29 }
  0xa9   : > { %p4570_p2 = pnand %p4568_p11, %p4554_p1  ;;  %p4576_p7 = scmp.lt.s32.totalorder %s4574_s7, %s4567_s15 }
  0xab   : > { %p4571_p9 = pneg %p4570_p2  ;;  %p4577_p10 = por %p4576_p7, %p4575_p5 }
  0xad   : > { %p4578_p4 = pnand %p4577_p10, %p4571_p9 }
  0xaf   : > { %4581 = shalt.err (!%p4578_p4)
}
  0xb0   : > { %s5841_s12 = smov 128   ;;  %s4760_s8 = smov 8  }
  0xb1   : > { %4267 = dma.hbm_to_vmem [thread:$0]  (!%p5038_p8), %s5032_s30, 512, %s5034_s28, %s5042_s9, %s5841_s12, %s5841_s12, %s4760_s8  }
  0xb2   : > { %s5074_s10 = sadd.s32 1, %s4750_s23   ;;  %s66_s15 = ssub.s32 2, %s4750_s23 }
  0xb3   : > { %s40_s16 = ssub.s32 %s4750_s23, %s5074_s10  ;;  %s67_s13 = ssub.s32 2, %s5074_s10 }
  0xb4   : > { %p41_p0 = scmp.eq.s32.totalorder %s40_s16, 0  ;;  %s68_s29 = ssub.s32 %s66_s15, %s67_s13 }
  0xb5   : > { %s71_s7 = sadd.s32 1, %s4734_s19  ;;  %p69_p5 = scmp.eq.s32.totalorder %s68_s29, 0 }
  0xb6   : > { %s5084_s0 = scalar_select %p41_p0, %s4746_s22, %s43_s27  }
  0xb7   : > { %p78_p9 = scmp.ne.s32.totalorder %s4734_s19, %s4730_s18  ;;  %s415_s6 = sand.u32 1, %s4750_s23  }
  0xb8   : > { %s417_s3 = sand.u32 1, %s4734_s19   ;;  %p5871_p3 = scmp.eq.s32.totalorder %s4750_s23, 0 }
  0xb9   : > { %s5091_s4 = scalar_select %p69_p5, %s4734_s19, %s71_s7  }
  0xba   : > { %p80_p8 = por %p78_p9, %p5871_p3  ;;  %p5872_p1 = scmp.eq.s32.totalorder %s4867_s24, 2 }
  0xbb   : > { %s3029_s28 = sshll.u32 %s417_s3, 5  ;;  %s3076_s9 = sshll.u32 %s66_s15, 9 }
  0xbc   : > { %p5097_p6 = por %p5872_p1, %p78_p9  ;;  %s5104_s27 = scalar_lea.hbm %s5818_s1, %s3076_s9 }
  0xbd   : > { %s419_s29 = scalar_lea.vmem [#allocation9], %s3029_s28  ;;  %p5874_p13 = scmp.lt.s32.totalorder %s4750_s23, 3 }
  0xbe   : > { %s5873_s30 = scalar_select %p5097_p6, 1, 0 }
  0xbf   : > { %s427_s7 = sshll.u32 %s419_s29, 4  ;;  %p5110_p11 = pnand %p5874_p13, %p80_p8  ;;  %s5106_s7 = int_to_ptr.vmem [resolvable:$true] %s427_s7 }
  0xc0   : > { %s5114_s3 = scalar_lea.sflag [#allocation10], %s415_s6  ;;  %s4582_s15 = scalar_lea.hbm %s5104_s27, 512 }
  0xc1   : > { %p4583_p2 = scmp.ne.s32.totalorder %s5104_s27, %s4582_s15  ;;  %p4584_p7 = pneg %p5110_p11 }
  0xc2   : > { %s4587_s16 = scalar_lea.hbm %s5818_s1, 1536  ;;  %p4588_p0 = scmp.lt.u32.totalorder %s5104_s27, %s5818_s1 }
  0xc3   : > { %p4585_p10 = pnand %p4584_p7, %p4583_p2  ;;  %p4589_p5 = scmp.lt.u32.totalorder %s4587_s16, %s4582_s15 }
  0xc4   : > { %p4591_p3 = scmp.lt.u32.totalorder %s4582_s15, %s5104_s27 }
  0xc5   : > { %p4586_p4 = pneg %p4585_p10  ;;  %p4590_p9 = por %p4589_p5, %p4588_p0 }
  0xc7   : > { %p4592_p8 = por %p4591_p3, %p4590_p9 }
  0xc9   : > { %p4593_p1 = pnand %p4592_p8, %p4586_p4 }
  0xcb   : > { %4596 = shalt.err (!%p4593_p1)
}
  0xcc   : > { %s4597_s6 = scalar_lea.vmem %s5106_s7, 512  ;;  %s4761_s28 = smov [#allocation9]  }
  0xcd   : > { %p4598_p13 = scmp.ne.s32.totalorder %s5106_s7, %s4597_s6  ;;  %s4602_s9 = sshll.u32 %s4761_s28, 4  ;;  %s4603_s9 = int_to_ptr.vmem [resolvable:$false] %s4602_s9 }
  0xce   : > { %s4604_s13 = scalar_lea.vmem %s4603_s9, 1024  ;;  %p4605_p6 = scmp.lt.s32.totalorder %s5106_s7, %s4603_s9 }
  0xcf   : > { %p4600_p2 = pnand %p4598_p13, %p4584_p7  ;;  %p4606_p0 = scmp.lt.s32.totalorder %s4604_s13, %s4597_s6 }
  0xd1   : > { %p4601_p10 = pneg %p4600_p2  ;;  %p4607_p5 = por %p4606_p0, %p4605_p6 }
  0xd3   : > { %p4608_p9 = pnand %p4607_p5, %p4601_p10 }
  0xd5   : > { %4611 = shalt.err (!%p4608_p9)
}
  0xd6   : > { %s5876_s15 = smov 128   ;;  %p5877_p7 = scmp.ne.s32.totalorder %s5856_s26, 0 }
  0xd7   : > { %4270 = dma.hbm_to_vmem [thread:$0]  (!%p5110_p11), %s5104_s27, 512, %s5106_s7, %s5114_s3, %s5876_s15, %s5876_s15, %s4760_s8  }
  0xd8   : > { %439 = sbr.rel (%p5877_p7) target bundleno = 1677 (0x68d), region = 60  ;;  %s5148_s16 = sand.u32 (!%p5877_p7), 1, %s4742_s21  }
  0xd9   : > { %s3033_s29 = sshll.u32 (!%p5877_p7), %s5148_s16, 5  ;;  %s442_s6 = scalar_lea.sflag (!%p5877_p7), [#allocation7], %s5148_s16 }
  0xda   : > { %s5152_s28 = scalar_lea.vmem (!%p5877_p7), [#allocation6], %s3033_s29 }
  0xdf   : > { %4697 = dma.done.wait (%p5011_p12), %s442_s6, 512  }
  0xe0   : > { %4699 = vsyncadd (%p5011_p12), %s442_s6, 4294966784  ;;  %s5878_s26 = sld [smem:[#allocation27_spill]]  ;;  %s450_s12 = sand.u32 1, %s4867_s24  }
  0xe1   : > { %s5843_s8 = sand.u32 1, %s4730_s18   ;;  %s451_s7 = scalar_lea.sflag [#allocation10], %s450_s12 }
  0xe2   : > { %s3034_s27 = sshll.u32 %s5843_s8, 5 }
  0xe3   : > { %s5162_s3 = scalar_lea.vmem [#allocation9], %s3034_s27 }
  0xe6   : > { %p5879_p6 = scmp.ne.s32.totalorder %s5878_s26, 0 }
  0xe8   : > { %4701 = dma.done.wait (%p5879_p6), %s451_s7, 512  }
  0xe9   : > { %4703 = vsyncadd (%p5879_p6), %s451_s7, 4294966784  ;;  %p5880_p11 = scmp.eq.s32.totalorder %s4867_s24, 0 }
  0xeb   : > { %4705 = dma.done.wait (%p5880_p11), [#allocation10], 6144   ;;  %p5881_p12 = pmov %p5880_p11 }
  0xec   : > { %p5882_p4 = pmov %p5880_p11 }
  0xed   : > { %4707 = vsyncadd (%p5881_p12), [#allocation10], 4294961152 }
  0xee   : > { %4709 = dma.done.wait (%p5882_p4), [#allocation13], 12288   ;;  %p5883_p3 = pmov %p5882_p4 }
  0xf0   : > { %4711 = vsyncadd (%p5883_p3), [#allocation13], 4294955008  ;;  %p5884_p8 = pmov %p5883_p3 }
  0xf1   : > { %p5885_p1 = pmov %p5883_p3 }
  0xf2   : > { %4713 = dma.done.wait (%p5884_p8), [#allocation16], 6144  }
  0xf3   : > { %4715 = vsyncadd (%p5885_p1), [#allocation16], 4294961152  ;;  %s5180_s25 = scalar_lea.vmem [#allocation17], %s3033_s29  ;;  %s5182_s9 = scalar_lea.vmem [#allocation18], %s3034_s27 }
  0xf4   : > { %p5886_p13 = scmp.ne.s32.totalorder %s4867_s24, 0 }
  0xf5   : > { %v4762_v0 = vmov (!%p5886_p13), 0.0  }
  0xf6   : > { %528 = sbr.rel (%p5886_p13) target bundleno = 253 (0xfd), region = 88  ;;  %529 = vst [vmem:[#allocation4] sm:$0xff] (!%p5886_p13), %v4762_v0  ;;  %530 = vst [vmem:[#allocation5] sm:$0xff] (!%p5886_p13), %v4762_v0 }
  0xfd PF: > { %v536_v1 = vld [vmem:[#allocation11 + $0x8] sm:$0xff]  ;;  %v539_v2 = vld [vmem:[#allocation11 + $0x20] sm:$0xff]  ;;  %v538_v5 = vld [vmem:[#allocation11 + $0x18] sm:$0xff]  ;;  %v4763_v8 = vmov 0.0   ;;  %s5887_s29 = sld [smem:[#allocation33_spill]]  ;;  %s5888_s26 = sld [smem:[#allocation32_spill]] }
  0xfe   : > { %v535_v3 = vld [vmem:[#allocation11] sm:$0xff]  ;;  %v3611_v4 = vpack.c.bf16 %v539_v2, %v536_v1  ;;  %v542_v6 = vld [vmem:[#allocation11 + $0x38] sm:$0xff]  ;;  %v545_v7 = vld [vmem:[#allocation11 + $0x50] sm:$0xff]  ;;  %664 = vmatprep.mubr.f32.mxu0 %v4763_v8  ;;  %p5889_p2 = scmp.ne.s32.totalorder %s4867_s24, 0 }
  0xff   : > { %v3613_v9 = vpack.c.bf16 %v538_v5, %v535_v3  ;;  %v3615_v10 = vpack.c.bf16 %v545_v7, %v542_v6  ;;  %v541_v11 = vld [vmem:[#allocation11 + $0x30] sm:$0xff]  ;;  %v544_v12 = vld [vmem:[#allocation11 + $0x48] sm:$0xff]  ;;  %v551_v16 = vld [vmem:[#allocation11 + $0x80] sm:$0xff] }
 0x100   : > { %v537_v13 = vld [vmem:[#allocation11 + $0x10] sm:$0xff]  ;;  %3612 = vmatprep.subr.bf16.mxu0 %v3611_v4  ;;  %v540_v14 = vld [vmem:[#allocation11 + $0x28] sm:$0xff]  ;;  %v3617_v17 = vpack.c.bf16 %v544_v12, %v541_v11  ;;  %v543_v19 = vld [vmem:[#allocation11 + $0x40] sm:$0xff] }
 0x101   : > { %v548_v15 = vld [vmem:[#allocation11 + $0x68] sm:$0xff]  ;;  %3614 = vmatpush1.bf16.msra.mxu0 %v3613_v9  ;;  %v3643_v18 = vpack.c.bf16 %v540_v14, %v537_v13  ;;  %v547_v21 = vld [vmem:[#allocation11 + $0x60] sm:$0xff]  ;;  %v550_v22 = vld [vmem:[#allocation11 + $0x78] sm:$0xff] }
 0x102   : > { %3616 = vmatprep.subr.bf16.mxu0 %v3615_v10  ;;  %v3619_v20 = vpack.c.bf16 %v551_v16, %v548_v15  ;;  %v546_v23 = vld [vmem:[#allocation11 + $0x58] sm:$0xff]  ;;  %v557_v26 = vld [vmem:[#allocation11 + $0xb0] sm:$0xff]  ;;  %v552_v28 = vld [vmem:[#allocation11 + $0x88] sm:$0xff]  ;;  %v3621_v29 = vpack.c.bf16 %v550_v22, %v547_v21 }
 0x103   : > { %3644 = vmatprep.subr.bf16.mxu1 %v3643_v18  ;;  %v3647_v24 = vpack.c.bf16 %v546_v23, %v543_v19  ;;  %v554_v25 = vld [vmem:[#allocation11 + $0x98] sm:$0xff]  ;;  %v549_v27 = vld [vmem:[#allocation11 + $0x70] sm:$0xff]  ;;  %v556_v33 = vld [vmem:[#allocation11 + $0xa8] sm:$0xff] }
 0x104   : > { %3646 = vmatpush3.bf16.msra.mxu1 %v3643_v18  ;;  %v553_v30 = vld [vmem:[#allocation11 + $0x90] sm:$0xff]  ;;  %v3651_v31 = vpack.c.bf16 %v552_v28, %v549_v27  ;;  %v3623_v32 = vpack.c.bf16 %v557_v26, %v554_v25  ;;  %v555_v34 = vld [vmem:[#allocation11 + $0xa0] sm:$0xff]  ;;  %v558_v35 = vld [vmem:[#allocation11 + $0xb8] sm:$0xff] }
 0x105   : > { %3618 = vmatpush1.bf16.msra.mxu0 %v3617_v17  ;;  %3648 = vmatprep.subr.bf16.mxu1 %v3647_v24  ;;  %v560_v36 = vld [vmem:[#allocation11 + $0xc8] sm:$0xff]  ;;  %v563_v37 = vld [vmem:[#allocation11 + $0xe0] sm:$0xff]  ;;  %v3625_v38 = vpack.c.bf16 %v556_v33, %v553_v30  ;;  %v3655_v40 = vpack.c.bf16 %v558_v35, %v555_v34  ;;  %v562_v42 = vld [vmem:[#allocation11 + $0xd8] sm:$0xff] }
 0x106   : > { %3620 = vmatprep.subr.bf16.mxu0 %v3619_v20  ;;  %v559_v39 = vld [vmem:[#allocation11 + $0xc0] sm:$0xff]  ;;  %v3627_v41 = vpack.c.bf16 %v563_v37, %v560_v36  ;;  %v561_v43 = vld [vmem:[#allocation11 + $0xd0] sm:$0xff]  ;;  %v564_v44 = vld [vmem:[#allocation11 + $0xe8] sm:$0xff] }
 0x107   : > { %v566_v45 = vld [vmem:[#allocation11 + $0xf8] sm:$0xff]  ;;  %v569_v46 = vld [vmem:[#allocation11 + $0x110] sm:$0xff]  ;;  %v3629_v47 = vpack.c.bf16 %v562_v42, %v559_v39  ;;  %v3659_v49 = vpack.c.bf16 %v564_v44, %v561_v43  ;;  %v531_v50 = vld [vmem:[%s5152_s28] sm:$0xff] }
 0x108   : > { %3650 = vmatpush3.bf16.msra.mxu1 %v3647_v24  ;;  %v565_v48 = vld [vmem:[#allocation11 + $0xf0] sm:$0xff]  ;;  %v3631_v51 = vpack.c.bf16 %v569_v46, %v566_v45  ;;  %v568_v52 = vld [vmem:[#allocation11 + $0x108] sm:$0xff]  ;;  %v567_v53 = vld [vmem:[#allocation11 + $0x100] sm:$0xff]  ;;  %3287 = vmatprep.mubr.f32.mxu1 %v531_v50 }
 0x109   : > { %3622 = vmatpush1.bf16.msra.mxu0 %v3621_v29  ;;  %3652 = vmatprep.subr.bf16.mxu1 %v3651_v31  ;;  %v570_v54 = vld [vmem:[#allocation11 + $0x118] sm:$0xff]  ;;  %v572_v55 = vld [vmem:[#allocation11 + $0x128] sm:$0xff]  ;;  %v575_v56 = vld [vmem:[#allocation11 + $0x140] sm:$0xff]  ;;  %v3633_v57 = vpack.c.bf16 %v568_v52, %v565_v48 }
 0x10a   : > { %3624 = vmatprep.subr.bf16.mxu0 %v3623_v32  ;;  %v571_v58 = vld [vmem:[#allocation11 + $0x120] sm:$0xff]  ;;  %v3663_v59 = vpack.c.bf16 %v570_v54, %v567_v53  ;;  %v3635_v60 = vpack.c.bf16 %v575_v56, %v572_v55  ;;  %v574_v61 = vld [vmem:[#allocation11 + $0x138] sm:$0xff]  ;;  %v573_v62 = vld [vmem:[#allocation11 + $0x130] sm:$0xff] }
 0x10b   : > { %v576_v63 = vld [vmem:[#allocation11 + $0x148] sm:$0xff]  ;;  %v578_v0 = vld [vmem:[#allocation11 + $0x158] sm:$0xff]  ;;  %v581_v1 = vld [vmem:[#allocation11 + $0x170] sm:$0xff]  ;;  %v3637_v2 = vpack.c.bf16 %v574_v61, %v571_v58 }
 0x10c   : > { %3654 = vmatpush3.bf16.msra.mxu1 %v3651_v31  ;;  %v577_v3 = vld [vmem:[#allocation11 + $0x150] sm:$0xff]  ;;  %v3667_v4 = vpack.c.bf16 %v576_v63, %v573_v62  ;;  %v3639_v5 = vpack.c.bf16 %v581_v1, %v578_v0  ;;  %v580_v6 = vld [vmem:[#allocation11 + $0x168] sm:$0xff]  ;;  %v579_v7 = vld [vmem:[#allocation11 + $0x160] sm:$0xff] }
 0x10d   : > { %3626 = vmatpush1.bf16.msra.mxu0 %v3625_v38  ;;  %3656 = vmatprep.subr.bf16.mxu1 %v3655_v40  ;;  %v582_v9 = vld [vmem:[#allocation11 + $0x178] sm:$0xff]  ;;  %v791_v10 = vld [vmem:[#allocation12 + $0x8] sm:$0xff]  ;;  %v794_v11 = vld [vmem:[#allocation12 + $0x20] sm:$0xff]  ;;  %v3641_v12 = vpack.c.bf16 %v580_v6, %v577_v3 }
 0x10e   : > { %3628 = vmatprep.subr.bf16.mxu0 %v3627_v41  ;;  %v790_v13 = vld [vmem:[#allocation12] sm:$0xff]  ;;  %v3671_v14 = vpack.c.bf16 %v582_v9, %v579_v7  ;;  %v3675_v15 = vpack.c.bf16 %v794_v11, %v791_v10  ;;  %v793_v16 = vld [vmem:[#allocation12 + $0x18] sm:$0xff]  ;;  %v792_v17 = vld [vmem:[#allocation12 + $0x10] sm:$0xff] }
 0x10f   : > { %v795_v18 = vld [vmem:[#allocation12 + $0x28] sm:$0xff]  ;;  %v797_v19 = vld [vmem:[#allocation12 + $0x38] sm:$0xff]  ;;  %v800_v20 = vld [vmem:[#allocation12 + $0x50] sm:$0xff]  ;;  %v3677_v21 = vpack.c.bf16 %v793_v16, %v790_v13 }
 0x110   : > { %3658 = vmatpush3.bf16.msra.mxu1 %v3655_v40  ;;  %v796_v22 = vld [vmem:[#allocation12 + $0x30] sm:$0xff]  ;;  %v3707_v23 = vpack.c.bf16 %v795_v18, %v792_v17  ;;  %v3679_v24 = vpack.c.bf16 %v800_v20, %v797_v19  ;;  %v799_v25 = vld [vmem:[#allocation12 + $0x48] sm:$0xff]  ;;  %v798_v26 = vld [vmem:[#allocation12 + $0x40] sm:$0xff] }
 0x111   : > { %3630 = vmatpush1.bf16.msra.mxu0 %v3629_v47  ;;  %3660 = vmatprep.subr.bf16.mxu1 %v3659_v49  ;;  %v801_v27 = vld [vmem:[#allocation12 + $0x58] sm:$0xff]  ;;  %v803_v28 = vld [vmem:[#allocation12 + $0x68] sm:$0xff]  ;;  %v806_v29 = vld [vmem:[#allocation12 + $0x80] sm:$0xff]  ;;  %v3681_v31 = vpack.c.bf16 %v799_v25, %v796_v22 }
 0x112   : > { %3632 = vmatprep.subr.bf16.mxu0 %v3631_v51  ;;  %v532_v30 = vld [vmem:[%s5152_s28 + $0x8] sm:$0xff]  ;;  %v802_v32 = vld [vmem:[#allocation12 + $0x60] sm:$0xff]  ;;  %v3711_v33 = vpack.c.bf16 %v801_v27, %v798_v26  ;;  %v3683_v34 = vpack.c.bf16 %v806_v29, %v803_v28  ;;  %v805_v35 = vld [vmem:[#allocation12 + $0x78] sm:$0xff]  ;;  %v585_v28 = vlaneseq }
 0x113   : > { %v804_v36 = vld [vmem:[#allocation12 + $0x70] sm:$0xff]  ;;  %v807_v37 = vld [vmem:[#allocation12 + $0x88] sm:$0xff]  ;;  %v809_v38 = vld [vmem:[#allocation12 + $0x98] sm:$0xff]  ;;  %v3685_v40 = vpack.c.bf16 %v805_v35, %v802_v32 }
 0x114   : > { %3662 = vmatpush3.bf16.msra.mxu1 %v3659_v49  ;;  %v812_v39 = vld [vmem:[#allocation12 + $0xb0] sm:$0xff]  ;;  %v3715_v42 = vpack.c.bf16 %v807_v37, %v804_v36  ;;  %v811_v45 = vld [vmem:[#allocation12 + $0xa8] sm:$0xff]  ;;  %v810_v46 = vld [vmem:[#allocation12 + $0xa0] sm:$0xff]  ;;  %v586_v29 = vshrl.u32 %v585_v28, 7 }
 0x115   : > { %3634 = vmatpush1.bf16.msra.mxu0 %v3633_v57  ;;  %3664 = vmatprep.subr.bf16.mxu1 %v3663_v59  ;;  %v808_v41 = vld [vmem:[#allocation12 + $0x90] sm:$0xff]  ;;  %v3687_v44 = vpack.c.bf16 %v812_v39, %v809_v38  ;;  %v813_v47 = vld [vmem:[#allocation12 + $0xb8] sm:$0xff]  ;;  %v815_v48 = vld [vmem:[#allocation12 + $0xc8] sm:$0xff] }
 0x116   : > { %3636 = vmatprep.subr.bf16.mxu0 %v3635_v60  ;;  %v533_v43 = vld [vmem:[%s5152_s28 + $0x10] sm:$0xff]  ;;  %v818_v49 = vld [vmem:[#allocation12 + $0xe0] sm:$0xff]  ;;  %v3719_v52 = vpack.c.bf16 %v813_v47, %v810_v46  ;;  %v534_v53 = vld [vmem:[%s5152_s28 + $0x18] sm:$0xff]  ;;  %v591_v35 = vsub.s32 1, %v586_v29  ;;  %v595_v38 = vsub.s32 2, %v586_v29 }
 0x117   : > { %v814_v51 = vld [vmem:[#allocation12 + $0xc0] sm:$0xff]  ;;  %v3691_v54 = vpack.c.bf16 %v818_v49, %v815_v48  ;;  %v817_v55 = vld [vmem:[#allocation12 + $0xd8] sm:$0xff]  ;;  %v816_v56 = vld [vmem:[#allocation12 + $0xd0] sm:$0xff] }
 0x118   : > { %3666 = vmatpush3.bf16.msra.mxu1 %v3663_v59  ;;  %v819_v57 = vld [vmem:[#allocation12 + $0xe8] sm:$0xff]  ;;  %v821_v58 = vld [vmem:[#allocation12 + $0xf8] sm:$0xff]  ;;  %v824_v59 = vld [vmem:[#allocation12 + $0x110] sm:$0xff]  ;;  %v3693_v60 = vpack.c.bf16 %v817_v55, %v814_v51 }
 0x119   : > { %3638 = vmatpush1.bf16.msra.mxu0 %v3637_v2  ;;  %3668 = vmatprep.subr.bf16.mxu1 %v3667_v4  ;;  %v820_v61 = vld [vmem:[#allocation12 + $0xf0] sm:$0xff]  ;;  %v823_v62 = vld [vmem:[#allocation12 + $0x108] sm:$0xff]  ;;  %v3723_v63 = vpack.c.bf16 %v819_v57, %v816_v56  ;;  %v3695_v0 = vpack.c.bf16 %v824_v59, %v821_v58  ;;  %v822_v1 = vld [vmem:[#allocation12 + $0x100] sm:$0xff] }
 0x11a   : > { %3640 = vmatprep.subr.bf16.mxu0 %v3639_v5  ;;  %v825_v2 = vld [vmem:[#allocation12 + $0x118] sm:$0xff]  ;;  %v786_v3 = vld [vmem:[%s5162_s3] sm:$0xff]  ;;  %v3697_v6 = vpack.c.bf16 %v823_v62, %v820_v61  ;;  %v831_v13 = vld [vmem:[#allocation12 + $0x148] sm:$0xff] }
 0x11b   : > { %v830_v5 = vld [vmem:[#allocation12 + $0x140] sm:$0xff]  ;;  %v3727_v9 = vpack.c.bf16 %v825_v2, %v822_v1  ;;  %v829_v11 = vld [vmem:[#allocation12 + $0x138] sm:$0xff]  ;;  %v832_v17 = vld [vmem:[#allocation12 + $0x150] sm:$0xff] }
 0x11c   : > { %3670 = vmatpush3.bf16.msra.mxu1 %v3667_v4  ;;  %v827_v4 = vld [vmem:[#allocation12 + $0x128] sm:$0xff]  ;;  %v826_v7 = vld [vmem:[#allocation12 + $0x120] sm:$0xff]  ;;  %v837_v22 = vld [vmem:[#allocation12 + $0x178] sm:$0xff] }
 0x11d   : > { %3642 = vmatpush1.bf16.msra.mxu0 %v3641_v12  ;;  %3672 = vmatprep.subr.bf16.mxu1 %v3671_v14  ;;  %v3699_v10 = vpack.c.bf16 %v830_v5, %v827_v4  ;;  %v828_v12 = vld [vmem:[#allocation12 + $0x130] sm:$0xff]  ;;  %v3701_v16 = vpack.c.bf16 %v829_v11, %v826_v7  ;;  %v835_v20 = vld [vmem:[#allocation12 + $0x168] sm:$0xff]  ;;  %v789_v27 = vld [vmem:[%s5162_s3 + $0x18] sm:$0xff]  ;;  %v4764_v5 = vmov (!%p5889_p2), 30.0  }
 0x11e   : > { %3676 = vmatprep.subr.bf16.mxu0 %v3675_v15  ;;  %v836_v15 = vld [vmem:[#allocation12 + $0x170] sm:$0xff]  ;;  %v3731_v18 = vpack.c.bf16 %v831_v13, %v828_v12  ;;  %v787_v25 = vld [vmem:[%s5162_s3 + $0x8] sm:$0xff] }
 0x11f   : > { %v788_v26 = vld [vmem:[%s5162_s3 + $0x10] sm:$0xff] }
 0x120   : > { %665 = vmatmul.mubr.f32.vlgmr.msra.gmra.mrb[0].mxu0 %v531_v50  ;;  %3674 = vmatpush3.bf16.msra.mxu1 %v3671_v14  ;;  %v3689_v50 = vpack.c.bf16 %v811_v45, %v808_v41  ;;  %v833_v14 = vld [vmem:[#allocation12 + $0x158] sm:$0xff]  ;;  %v583_v32 = vld [vmem:[%s5888_s26] sm:$0x7] }
 0x121   : > { %3678 = vmatpush1.bf16.msra.mxu0 %v3677_v21  ;;  %3708 = vmatprep.subr.bf16.mxu1 %v3707_v23  ;;  %v3703_v19 = vpack.c.bf16 %v836_v15, %v833_v14  ;;  %v834_v21 = vld [vmem:[#allocation12 + $0x160] sm:$0xff]  ;;  %v592_v37 = vrot.slane %v583_v32, %v591_v35  ;;  %v596_v39 = vrot.slane %v583_v32, %v595_v38 }
 0x122   : > { %3680 = vmatprep.subr.bf16.mxu0 %v3679_v24  ;;  %670 = vmatprep.mubr.f32.mxu0 %v4763_v8  ;;  %v3735_v24 = vpack.c.bf16 %v837_v22, %v834_v21 }
 0x123   : > { %3288 = vmatmul.mubr.f32.vlgmr.msra.gmra.mrb[0].mxu1 %v532_v30  ;;  %4190 = vst [vmem:[#allocation2 + $0x8] sm:$0xff] %v592_v37  ;;  %4196 = vst [vmem:[#allocation2 + $0x20] sm:$0xff] %v592_v37 }
 0x124   : > { %3710 = vmatpush3.bf16.msra.mxu1 %v3707_v23  ;;  %671 = vmatmul.mubr.f32.gmra.mrb[2].mxu0 %v532_v30  ;;  %v3705_v23 = vpack.c.bf16 %v835_v20, %v832_v17  ;;  %v587_v30 = vsub.s32 0, %v586_v29  ;;  %4202 = vst [vmem:[#allocation2 + $0x38] sm:$0xff] %v592_v37  ;;  %4208 = vst [vmem:[#allocation2 + $0x50] sm:$0xff] %v592_v37 }
 0x125   : > { %3682 = vmatpush1.bf16.msra.mxu0 %v3681_v31  ;;  %3712 = vmatprep.subr.bf16.mxu1 %v3711_v33  ;;  %v838_v31 = vld [vmem:[%s5887_s29] sm:$0x7] }
 0x126   : > { %3684 = vmatprep.subr.bf16.mxu0 %v3683_v34  ;;  %676 = vmatprep.mubr.f32.mxu0 %v4763_v8  ;;  %v843_v34 = vrot.slane %v838_v31, %v587_v30  ;;  %v847_v36 = vrot.slane %v838_v31, %v591_v35  ;;  %v851_v48 = vrot.slane %v838_v31, %v595_v38 }
 0x127   : > { %3290 = vmatprep.mubr.f32.mxu1 %v533_v43 }
 0x128   : > { %3714 = vmatpush3.bf16.msra.mxu1 %v3711_v33  ;;  %677 = vmatmul.mubr.f32.gmra.mrb[4].mxu0 %v533_v43  ;;  %v588_v33 = vrot.slane %v583_v32, %v587_v30  ;;  %4211 = vst [vmem:[#allocation3] sm:$0xff] %v843_v34  ;;  %4214 = vst [vmem:[#allocation3 + $0x8] sm:$0xff] %v847_v36 }
 0x129   : > { %3686 = vmatpush1.bf16.msra.mxu0 %v3685_v40  ;;  %3716 = vmatprep.subr.bf16.mxu1 %v3715_v42 }
 0x12a   : > { %3688 = vmatprep.subr.bf16.mxu0 %v3687_v44  ;;  %682 = vmatprep.mubr.f32.mxu0 %v4763_v8  ;;  %4187 = vst [vmem:[#allocation2] sm:$0xff] %v588_v33  ;;  %4193 = vst [vmem:[#allocation2 + $0x18] sm:$0xff] %v588_v33 }
 0x12b   : > { %3291 = vmatmul.mubr.f32.gmra.mrb[2].mxu1 %v534_v53  ;;  %4199 = vst [vmem:[#allocation2 + $0x30] sm:$0xff] %v588_v33  ;;  %4205 = vst [vmem:[#allocation2 + $0x48] sm:$0xff] %v588_v33 }
 0x12c   : > { %3718 = vmatpush3.bf16.msra.mxu1 %v3715_v42  ;;  %683 = vmatmul.mubr.f32.gmra.mrb[6].mxu0 %v534_v53 }
 0x12d   : > { %3690 = vmatpush1.bf16.msra.mxu0 %v3689_v50  ;;  %3720 = vmatprep.subr.bf16.mxu1 %v3719_v52 }
 0x12e   : > { %3692 = vmatprep.subr.bf16.mxu0 %v3691_v54  ;;  %919 = vmatprep.mubr.f32.mxu0 %v4763_v8 }
 0x12f   : > { %3325 = vmatprep.mubr.f32.mxu1 %v786_v3 }
 0x130   : > { %3722 = vmatpush3.bf16.msra.mxu1 %v3719_v52 }
 0x131   : > { %3694 = vmatpush1.bf16.msra.mxu0 %v3693_v60  ;;  %3724 = vmatprep.subr.bf16.mxu1 %v3723_v63 }
 0x132   : > { %3696 = vmatprep.subr.bf16.mxu0 %v3695_v0 }
 0x134   : > { %3726 = vmatpush3.bf16.msra.mxu1 %v3723_v63 }
 0x135   : > { %3698 = vmatpush1.bf16.msra.mxu0 %v3697_v6  ;;  %3728 = vmatprep.subr.bf16.mxu1 %v3727_v9 }
 0x136   : > { %3700 = vmatprep.subr.bf16.mxu0 %v3699_v10 }
 0x138   : > { %3730 = vmatpush3.bf16.msra.mxu1 %v3727_v9 }
 0x139   : > { %3702 = vmatpush1.bf16.msra.mxu0 %v3701_v16  ;;  %3732 = vmatprep.subr.bf16.mxu1 %v3731_v18 }
 0x13a   : > { %3704 = vmatprep.subr.bf16.mxu0 %v3703_v19 }
 0x13c   : > { %3734 = vmatpush3.bf16.msra.mxu1 %v3731_v18 }
 0x13d   : > { %3706 = vmatpush1.bf16.msra.mxu0 %v3705_v23  ;;  %3736 = vmatprep.subr.bf16.mxu1 %v3735_v24 }
 0x140   : > { %920 = vmatmul.mubr.f32.vlgmr.msra.gmra.mrb[8].mxu0 %v786_v3  ;;  %3738 = vmatpush3.bf16.msra.mxu1 %v3735_v24 }
 0x141   : > { %925 = vmatprep.mubr.f32.mxu0 %v4763_v8 }
 0x143   : > { %3326 = vmatmul.mubr.f32.vlgmr.msra.gmra.mrb[4].mxu1 %v787_v25 }
 0x144   : > { %926 = vmatmul.mubr.f32.gmra.mrb[10].mxu0 %v787_v25  ;;  %3328 = vmatprep.mubr.f32.mxu1 %v788_v26 }
 0x145   : > { %931 = vmatprep.mubr.f32.mxu0 %v4763_v8 }
 0x147   : > { %3329 = vmatmul.mubr.f32.gmra.mrb[6].mxu1 %v789_v27 }
 0x148   : > { %932 = vmatmul.mubr.f32.gmra.mrb[12].mxu0 %v788_v26 }
 0x149   : > { %937 = vmatprep.mubr.f32.mxu0 %v4763_v8 }
 0x14c   : > { %938 = vmatmul.mubr.f32.gmra.mrb[14].mxu0 %v789_v27 }
 0x1f6   : > { %v3289_v40 = vpop.f32.mrb[0].mxu1 }
 0x1f7   : > { %v761_v41 = vadd.f32 %v3289_v40, %v596_v39  ;;  %v755_v42 = vpop.f32.mrb[1].mxu1 }
 0x1f8   : > { %v756_v43 = vadd.f32 %v755_v42, %v596_v39 }
 0x1f9   : > { %779 = vst [vmem:[#allocation2 + $0x28] sm:$0xff] %v761_v41 }
 0x1fa   : > { %776 = vst [vmem:[#allocation2 + $0x10] sm:$0xff] %v756_v43 }
 0x1fe   : > { %v3292_v44 = vpop.f32.mrb[2].mxu1 }
 0x1ff   : > { %v771_v45 = vadd.f32 %v3292_v44, %v596_v39  ;;  %v765_v46 = vpop.f32.mrb[3].mxu1 }
 0x200   : > { %v766_v47 = vadd.f32 %v765_v46, %v596_v39 }
 0x201   : > { %785 = vst [vmem:[#allocation2 + $0x58] sm:$0xff] %v771_v45 }
 0x202   : > { %782 = vst [vmem:[#allocation2 + $0x40] sm:$0xff] %v766_v47 }
 0x216   : > { %v3327_v49 = vpop.f32.mrb[4].mxu1 }
 0x217   : > { %v927_v50 = vpop.f32.mrb[10].mxu0  ;;  %v1016_v51 = vadd.f32 %v3327_v49, %v851_v48  ;;  %v1010_v52 = vpop.f32.mrb[5].mxu1 }
 0x218   : > { %v928_v53 = vadd.f32 %v927_v50, %v843_v34  ;;  %v929_v54 = vpop.f32.mrb[11].mxu0  ;;  %v1011_v55 = vadd.f32 %v1010_v52, %v851_v48 }
 0x219   : > { %v930_v56 = vadd.f32 %v929_v54, %v847_v36  ;;  %1034 = vst [vmem:[#allocation3 + $0x28] sm:$0xff] %v1016_v51 }
 0x21a   : > { %1032 = vst [vmem:[#allocation3 + $0x18] sm:$0xff] %v928_v53  ;;  %1031 = vst [vmem:[#allocation3 + $0x10] sm:$0xff] %v1011_v55  ;;  %v3330_v57 = vpop.f32.mrb[6].mxu1 }
 0x21b   : > { %1033 = vst [vmem:[#allocation3 + $0x20] sm:$0xff] %v930_v56  ;;  %v933_v58 = vpop.f32.mrb[12].mxu0  ;;  %v1026_v59 = vadd.f32 %v3330_v57, %v851_v48  ;;  %v1020_v60 = vpop.f32.mrb[7].mxu1 }
 0x21c   : > { %v934_v61 = vadd.f32 %v933_v58, %v843_v34  ;;  %v935_v62 = vpop.f32.mrb[13].mxu0  ;;  %v1021_v63 = vadd.f32 %v1020_v60, %v851_v48  ;;  %1044 = vst [vmem:[#allocation3 + $0x20] sm:$0xff] (!%p5889_p2), %v4764_v5 }
 0x21d   : > { %v936_v0 = vadd.f32 %v935_v62, %v847_v36  ;;  %1040 = vst [vmem:[#allocation3 + $0x58] sm:$0xff] %v1026_v59  ;;  %1043 = sbr.rel (%p5889_p2) target bundleno = 549 (0x225), region = 92 }
 0x21e   : > { %1035 = vst [vmem:[#allocation3 + $0x30] sm:$0xff] %v934_v61  ;;  %1037 = vst [vmem:[#allocation3 + $0x40] sm:$0xff] %v1021_v63 }
 0x21f   : > { %1036 = vst [vmem:[#allocation3 + $0x38] sm:$0xff] %v936_v0  ;;  %v939_v1 = vpop.f32.mrb[14].mxu0 }
 0x220   : > { %v940_v2 = vadd.f32 %v939_v1, %v843_v34  ;;  %v941_v3 = vpop.f32.mrb[15].mxu0  ;;  %1045 = vst [vmem:[#allocation3 + $0x38] sm:$0xff] (!%p5889_p2), %v4764_v5 }
 0x221   : > { %v942_v4 = vadd.f32 %v941_v3, %v847_v36 }
 0x222   : > { %1038 = vst [vmem:[#allocation3 + $0x48] sm:$0xff] %v940_v2 }
 0x223   : > { %1039 = vst [vmem:[#allocation3 + $0x50] sm:$0xff] %v942_v4 }
 0x224   : > { %1046 = vst [vmem:[#allocation3 + $0x50] sm:$0xff] %v4764_v5 }
 0x225 PF: > { %v1076_v6 = vld [vmem:[#allocation14 + $0x8] sm:$0xff]  ;;  %v1079_v7 = vld [vmem:[#allocation14 + $0x20] sm:$0xff]  ;;  %1187 = vmatprep.mubr.f32.mxu0 %v4763_v8  ;;  %v1078_v11 = vld [vmem:[#allocation14 + $0x18] sm:$0xff]  ;;  %v4765_v14 = vmov 0.0|0.0   ;;  %vm4766_vm0 = vmmov 0   ;;  %s5890_s7 = sld [smem:[#allocation34_spill]] }
 0x226   : > { %v1075_v9 = vld [vmem:[#allocation14] sm:$0xff]  ;;  %v5211_v10 = vpack.c.bf16 %v1079_v7, %v1076_v6  ;;  %v1082_v12 = vld [vmem:[#allocation14 + $0x38] sm:$0xff]  ;;  %v1085_v13 = vld [vmem:[#allocation14 + $0x50] sm:$0xff]  ;;  %3771 = vmatprep.subr.bf16.mxu1 %v4765_v14  ;;  %3363 = vmatprep.mubr.msk.f32.mxu1 %vm4766_vm0, %v4763_v8  ;;  %s5891_s15 = sld [smem:[#allocation35_spill]]  ;;  %s3077_s28 = sshll.u32 %s4867_s24, 9 }
 0x227   : > { %v5216_v15 = vpack.c.bf16 %v1078_v11, %v1075_v9  ;;  %v5218_v16 = vpack.c.bf16 %v1085_v13, %v1082_v12  ;;  %v1081_v17 = vld [vmem:[#allocation14 + $0x30] sm:$0xff]  ;;  %v1084_v18 = vld [vmem:[#allocation14 + $0x48] sm:$0xff]  ;;  %v1091_v20 = vld [vmem:[#allocation14 + $0x80] sm:$0xff]  ;;  %s2830_s26 = sshll.u32 %s5180_s25, 4  ;;  %s5892_s3 = sld [smem:[#allocation36_spill]]  ;;  %s5717_s26 = int_to_ptr.vmem [resolvable:$true] %s2830_s26 }
 0x228   : > { %v1088_v19 = vld [vmem:[#allocation14 + $0x68] sm:$0xff]  ;;  %3740 = vmatprep.subr.bf16.mxu0 %v5211_v10  ;;  %v5222_v21 = vpack.c.bf16 %v1084_v18, %v1081_v17  ;;  %v1087_v23 = vld [vmem:[#allocation14 + $0x60] sm:$0xff]  ;;  %v1090_v24 = vld [vmem:[#allocation14 + $0x78] sm:$0xff]  ;;  %s4612_s29 = scalar_lea.vmem %s5717_s26, 512  ;;  %p5893_p0 = scmp.ne.s32.totalorder %s5863_s2, 0 }
 0x229   : > { %3742 = vmatpush1.bf16.msra.mxu0 %v5216_v15  ;;  %v5225_v22 = vpack.c.bf16 %v1091_v20, %v1088_v19  ;;  %v1094_v25 = vld [vmem:[#allocation14 + $0x98] sm:$0xff]  ;;  %v1097_v26 = vld [vmem:[#allocation14 + $0xb0] sm:$0xff]  ;;  %v5228_v27 = vpack.c.bf16 %v1090_v24, %v1087_v23  ;;  %v1096_v30 = vld [vmem:[#allocation14 + $0xa8] sm:$0xff]  ;;  %p4613_p10 = scmp.ne.s32.totalorder %s5717_s26, %s4612_s29  ;;  %s4767_s6 = smov [#allocation17]  }
 0x22a   : > { %3744 = vmatprep.subr.bf16.mxu0 %v5218_v16  ;;  %v1093_v28 = vld [vmem:[#allocation14 + $0x90] sm:$0xff]  ;;  %v5231_v29 = vpack.c.bf16 %v1097_v26, %v1094_v25  ;;  %v1080_v32 = vld [vmem:[#allocation14 + $0x28] sm:$0xff]  ;;  %v1103_v34 = vld [vmem:[#allocation14 + $0xe0] sm:$0xff]  ;;  %s4616_s12 = sshll.u32 %s4767_s6, 4  ;;  %s4617_s12 = int_to_ptr.vmem [resolvable:$false] %s4616_s12 }
 0x22b   : > { %v1077_v31 = vld [vmem:[#allocation14 + $0x10] sm:$0xff]  ;;  %v1100_v33 = vld [vmem:[#allocation14 + $0xc8] sm:$0xff]  ;;  %v1083_v36 = vld [vmem:[#allocation14 + $0x40] sm:$0xff]  ;;  %v5236_v38 = vpack.c.bf16 %v1096_v30, %v1093_v28  ;;  %p4614_p5 = pnand %p4613_p10, %p5893_p0  ;;  %p4619_p7 = scmp.lt.s32.totalorder %s5717_s26, %s4617_s12 }
 0x22c   : > { %v5233_v35 = vpack.c.bf16 %v1080_v32, %v1077_v31  ;;  %v1086_v37 = vld [vmem:[#allocation14 + $0x58] sm:$0xff]  ;;  %v5242_v40 = vpack.c.bf16 %v1103_v34, %v1100_v33  ;;  %v1099_v41 = vld [vmem:[#allocation14 + $0xc0] sm:$0xff]  ;;  %v1089_v43 = vld [vmem:[#allocation14 + $0x70] sm:$0xff] }
 0x22d   : > { %3746 = vmatpush1.bf16.msra.mxu0 %v5222_v21  ;;  %v5239_v39 = vpack.c.bf16 %v1086_v37, %v1083_v36  ;;  %v1102_v42 = vld [vmem:[#allocation14 + $0xd8] sm:$0xff]  ;;  %v1109_v45 = vld [vmem:[#allocation14 + $0x110] sm:$0xff]  ;;  %v1092_v46 = vld [vmem:[#allocation14 + $0x88] sm:$0xff]  ;;  %s5715_s13 = scalar_lea.hbm %s5892_s3, %s3077_s28  ;;  %p4615_p9 = pneg %p4614_p5 }
 0x22e   : > { %3748 = vmatprep.subr.bf16.mxu0 %v5225_v22  ;;  %3773 = vmatpush3.bf16.msra.mxu1 %v5233_v35  ;;  %v1106_v44 = vld [vmem:[#allocation14 + $0xf8] sm:$0xff]  ;;  %v5246_v47 = vpack.c.bf16 %v1102_v42, %v1099_v41  ;;  %v1105_v48 = vld [vmem:[#allocation14 + $0xf0] sm:$0xff]  ;;  %v5249_v49 = vpack.c.bf16 %v1092_v46, %v1089_v43  ;;  %v1108_v51 = vld [vmem:[#allocation14 + $0x108] sm:$0xff]  ;;  %s4618_s28 = scalar_lea.vmem %s4617_s12, 1024 }
 0x22f   : > { %3774 = vmatprep.subr.bf16.mxu1 %v4765_v14  ;;  %v5252_v50 = vpack.c.bf16 %v1109_v45, %v1106_v44  ;;  %v1095_v52 = vld [vmem:[#allocation14 + $0xa0] sm:$0xff]  ;;  %v1098_v53 = vld [vmem:[#allocation14 + $0xb8] sm:$0xff]  ;;  %v1112_v54 = vld [vmem:[#allocation14 + $0x128] sm:$0xff]  ;;  %v5256_v56 = vpack.c.bf16 %v1108_v51, %v1105_v48  ;;  %p4620_p6 = scmp.lt.s32.totalorder %s4618_s28, %s4612_s29 }
 0x230   : > { %v1115_v55 = vld [vmem:[#allocation14 + $0x140] sm:$0xff]  ;;  %v5259_v58 = vpack.c.bf16 %v1098_v53, %v1095_v52  ;;  %v1114_v60 = vld [vmem:[#allocation14 + $0x138] sm:$0xff]  ;;  %v1101_v61 = vld [vmem:[#allocation14 + $0xd0] sm:$0xff] }
 0x231   : > { %3750 = vmatpush1.bf16.msra.mxu0 %v5228_v27  ;;  %v1111_v57 = vld [vmem:[#allocation14 + $0x120] sm:$0xff]  ;;  %v5262_v59 = vpack.c.bf16 %v1115_v55, %v1112_v54  ;;  %v1104_v62 = vld [vmem:[#allocation14 + $0xe8] sm:$0xff]  ;;  %v1118_v63 = vld [vmem:[#allocation14 + $0x158] sm:$0xff]  ;;  %p4621_p11 = por %p4620_p6, %p4619_p7 }
 0x232   : > { %3752 = vmatprep.subr.bf16.mxu0 %v5231_v29  ;;  %3776 = vmatpush3.bf16.msra.mxu1 %v5239_v39  ;;  %v1121_v0 = vld [vmem:[#allocation14 + $0x170] sm:$0xff]  ;;  %v5266_v1 = vpack.c.bf16 %v1114_v60, %v1111_v57  ;;  %v5269_v3 = vpack.c.bf16 %v1104_v62, %v1101_v61  ;;  %v1120_v5 = vld [vmem:[#allocation14 + $0x168] sm:$0xff]  ;;  %v1107_v6 = vld [vmem:[#allocation14 + $0x100] sm:$0xff] }
 0x233   : > { %3777 = vmatprep.subr.bf16.mxu1 %v4765_v14  ;;  %v1117_v2 = vld [vmem:[#allocation14 + $0x150] sm:$0xff]  ;;  %v5272_v4 = vpack.c.bf16 %v1121_v0, %v1118_v63  ;;  %v1110_v7 = vld [vmem:[#allocation14 + $0x118] sm:$0xff]  ;;  %v1265_v9 = vld [vmem:[#allocation15 + $0x8] sm:$0xff]  ;;  %p4622_p12 = pnand %p4621_p11, %p4615_p9 }
 0x234   : > { %v1268_v11 = vld [vmem:[#allocation15 + $0x20] sm:$0xff]  ;;  %v5276_v12 = vpack.c.bf16 %v1120_v5, %v1117_v2  ;;  %v5279_v17 = vpack.c.bf16 %v1110_v7, %v1107_v6  ;;  %v1267_v19 = vld [vmem:[#allocation15 + $0x18] sm:$0xff]  ;;  %v1113_v20 = vld [vmem:[#allocation14 + $0x130] sm:$0xff] }
 0x235   : > { %3754 = vmatpush1.bf16.msra.mxu0 %v5236_v38  ;;  %v1264_v13 = vld [vmem:[#allocation15] sm:$0xff]  ;;  %v5282_v18 = vpack.c.bf16 %v1268_v11, %v1265_v9  ;;  %v1116_v23 = vld [vmem:[#allocation14 + $0x148] sm:$0xff]  ;;  %v1271_v24 = vld [vmem:[#allocation15 + $0x38] sm:$0xff] }
 0x236   : > { %3756 = vmatprep.subr.bf16.mxu0 %v5242_v40  ;;  %3779 = vmatpush3.bf16.msra.mxu1 %v5249_v49  ;;  %v1274_v25 = vld [vmem:[#allocation15 + $0x50] sm:$0xff]  ;;  %v5288_v28 = vpack.c.bf16 %v1267_v19, %v1264_v13  ;;  %v5291_v31 = vpack.c.bf16 %v1116_v23, %v1113_v20  ;;  %v1273_v33 = vld [vmem:[#allocation15 + $0x48] sm:$0xff]  ;;  %v1119_v34 = vld [vmem:[#allocation14 + $0x160] sm:$0xff] }
 0x237   : > { %3780 = vmatprep.subr.bf16.mxu1 %v4765_v14  ;;  %v5286_v26 = vld [vmem:[#allocation4] sm:$0xff]  ;;  %v5294_v32 = vpack.c.bf16 %v1274_v25, %v1271_v24  ;;  %v1122_v36 = vld [vmem:[#allocation14 + $0x178] sm:$0xff]  ;;  %v1277_v37 = vld [vmem:[#allocation15 + $0x68] sm:$0xff] }
 0x238   : > { %v1270_v30 = vld [vmem:[#allocation15 + $0x30] sm:$0xff]  ;;  %v1280_v41 = vld [vmem:[#allocation15 + $0x80] sm:$0xff]  ;;  %v5302_v44 = vpack.c.bf16 %v1122_v36, %v1119_v34  ;;  %v1279_v46 = vld [vmem:[#allocation15 + $0x78] sm:$0xff] }
 0x239   : > { %3758 = vmatpush1.bf16.msra.mxu0 %v5246_v47  ;;  %v5299_v42 = vpack.c.bf16 %v1273_v33, %v1270_v30  ;;  %v1276_v43 = vld [vmem:[#allocation15 + $0x60] sm:$0xff]  ;;  %v5305_v45 = vpack.c.bf16 %v1280_v41, %v1277_v37  ;;  %v1266_v48 = vld [vmem:[#allocation15 + $0x10] sm:$0xff]  ;;  %v1269_v51 = vld [vmem:[#allocation15 + $0x28] sm:$0xff] }
 0x23a   : > { %3760 = vmatprep.subr.bf16.mxu0 %v5252_v50  ;;  %3782 = vmatpush3.bf16.msra.mxu1 %v5259_v58  ;;  %v1283_v52 = vld [vmem:[#allocation15 + $0x98] sm:$0xff]  ;;  %v1286_v53 = vld [vmem:[#allocation15 + $0xb0] sm:$0xff]  ;;  %v5310_v54 = vpack.c.bf16 %v1279_v46, %v1276_v43  ;;  %v5313_v57 = vpack.c.bf16 %v1269_v51, %v1266_v48  ;;  %v1285_v61 = vld [vmem:[#allocation15 + $0xa8] sm:$0xff] }
 0x23b   : > { %3783 = vmatprep.subr.bf16.mxu1 %v4765_v14  ;;  %v1282_v55 = vld [vmem:[#allocation15 + $0x90] sm:$0xff]  ;;  %v5316_v60 = vpack.c.bf16 %v1286_v53, %v1283_v52  ;;  %v1272_v62 = vld [vmem:[#allocation15 + $0x40] sm:$0xff]  ;;  %v1275_v63 = vld [vmem:[#allocation15 + $0x58] sm:$0xff] }
 0x23c   : > { %v1289_v0 = vld [vmem:[#allocation15 + $0xc8] sm:$0xff]  ;;  %v1292_v2 = vld [vmem:[#allocation15 + $0xe0] sm:$0xff]  ;;  %v5321_v5 = vpack.c.bf16 %v1285_v61, %v1282_v55  ;;  %v5324_v7 = vpack.c.bf16 %v1275_v63, %v1272_v62  ;;  %v1291_v11 = vld [vmem:[#allocation15 + $0xd8] sm:$0xff] }
 0x23d   : > { %3762 = vmatpush1.bf16.msra.mxu0 %v5256_v56  ;;  %v1288_v6 = vld [vmem:[#allocation15 + $0xc0] sm:$0xff]  ;;  %v5327_v9 = vpack.c.bf16 %v1292_v2, %v1289_v0  ;;  %v1278_v13 = vld [vmem:[#allocation15 + $0x70] sm:$0xff]  ;;  %v1281_v19 = vld [vmem:[#allocation15 + $0x88] sm:$0xff] }
 0x23e   : > { %3764 = vmatprep.subr.bf16.mxu0 %v5262_v59  ;;  %3785 = vmatpush3.bf16.msra.mxu1 %v5269_v3  ;;  %v1295_v20 = vld [vmem:[#allocation15 + $0xf8] sm:$0xff]  ;;  %v1298_v23 = vld [vmem:[#allocation15 + $0x110] sm:$0xff]  ;;  %v5333_v24 = vpack.c.bf16 %v1291_v11, %v1288_v6  ;;  %v5336_v30 = vpack.c.bf16 %v1281_v19, %v1278_v13  ;;  %v1297_v34 = vld [vmem:[#allocation15 + $0x108] sm:$0xff] }
 0x23f   : > { %3786 = vmatprep.subr.bf16.mxu1 %v4765_v14  ;;  %v1294_v25 = vld [vmem:[#allocation15 + $0xf0] sm:$0xff]  ;;  %v5339_v33 = vpack.c.bf16 %v1298_v23, %v1295_v20  ;;  %v1284_v36 = vld [vmem:[#allocation15 + $0xa0] sm:$0xff]  ;;  %v1287_v37 = vld [vmem:[#allocation15 + $0xb8] sm:$0xff] }
 0x240   : > { %v1301_v41 = vld [vmem:[#allocation15 + $0x128] sm:$0xff]  ;;  %v1304_v43 = vld [vmem:[#allocation15 + $0x140] sm:$0xff]  ;;  %v5343_v46 = vpack.c.bf16 %v1297_v34, %v1294_v25  ;;  %v5346_v51 = vpack.c.bf16 %v1287_v37, %v1284_v36  ;;  %v1303_v53 = vld [vmem:[#allocation15 + $0x138] sm:$0xff] }
 0x241   : > { %3766 = vmatpush1.bf16.msra.mxu0 %v5266_v1  ;;  %v1300_v48 = vld [vmem:[#allocation15 + $0x120] sm:$0xff]  ;;  %v5349_v52 = vpack.c.bf16 %v1304_v43, %v1301_v41  ;;  %v1290_v55 = vld [vmem:[#allocation15 + $0xd0] sm:$0xff]  ;;  %v1293_v61 = vld [vmem:[#allocation15 + $0xe8] sm:$0xff] }
 0x242   : > { %3768 = vmatprep.subr.bf16.mxu0 %v5272_v4  ;;  %3788 = vmatpush3.bf16.msra.mxu1 %v5279_v17  ;;  %v1307_v62 = vld [vmem:[#allocation15 + $0x158] sm:$0xff]  ;;  %v1310_v63 = vld [vmem:[#allocation15 + $0x170] sm:$0xff]  ;;  %v5353_v0 = vpack.c.bf16 %v1303_v53, %v1300_v48  ;;  %v5356_v6 = vpack.c.bf16 %v1293_v61, %v1290_v55  ;;  %v1309_v13 = vld [vmem:[#allocation15 + $0x168] sm:$0xff] }
 0x243   : > { %3789 = vmatprep.subr.bf16.mxu1 %v4765_v14  ;;  %v1306_v2 = vld [vmem:[#allocation15 + $0x150] sm:$0xff]  ;;  %v5359_v11 = vpack.c.bf16 %v1310_v63, %v1307_v62  ;;  %v1296_v19 = vld [vmem:[#allocation15 + $0x100] sm:$0xff]  ;;  %v1299_v20 = vld [vmem:[#allocation15 + $0x118] sm:$0xff] }
 0x244   : > { %v5363_v23 = vpack.c.bf16 %v1309_v13, %v1306_v2  ;;  %v5366_v25 = vpack.c.bf16 %v1299_v20, %v1296_v19  ;;  %v1302_v34 = vld [vmem:[#allocation15 + $0x130] sm:$0xff]  ;;  %v1305_v36 = vld [vmem:[#allocation15 + $0x148] sm:$0xff]  ;;  %v5371_v37 = vld [vmem:[#allocation5] sm:$0xff] }
 0x245   : > { %3770 = vmatpush1.bf16.msra.mxu0 %v5276_v12  ;;  %v5374_v41 = vpack.c.bf16 %v1305_v36, %v1302_v34  ;;  %v1308_v43 = vld [vmem:[#allocation15 + $0x160] sm:$0xff]  ;;  %v1311_v48 = vld [vmem:[#allocation15 + $0x178] sm:$0xff] }
 0x246   : > { %3796 = vmatprep.subr.bf16.mxu0 %v5282_v18  ;;  %3791 = vmatpush3.bf16.msra.mxu1 %v5291_v31  ;;  %v5380_v53 = vpack.c.bf16 %v1311_v48, %v1308_v43  ;;  %v1068_v62 = vld [vmem:[#allocation2 + $0x10] sm:$0xff]  ;;  %v1072_v2 = vld [vmem:[#allocation3 + $0x48] sm:$0xff] }
 0x247   : > { %3792 = vmatprep.subr.bf16.mxu1 %v4765_v14  ;;  %v1073_v34 = vld [vmem:[#allocation3 + $0x50] sm:$0xff] }
 0x248   : > { %1188 = vmatmul.mubr.f32.vlgmr.msra.gmra.mrb[0].mxu0 %v5286_v26 }
 0x249   : > { %3798 = vmatpush1.bf16.msra.mxu0 %v5288_v28  ;;  %1376 = vmatprep.mubr.f32.mxu0 %v4763_v8 }
 0x24a   : > { %3800 = vmatprep.subr.bf16.mxu0 %v5294_v32  ;;  %3794 = vmatpush3.bf16.msra.mxu1 %v5302_v44 }
 0x24b   : > { %3827 = vmatprep.subr.bf16.mxu1 %v4765_v14 }
 0x24d   : > { %3802 = vmatpush1.bf16.msra.mxu0 %v5299_v42  ;;  %3364 = vmatmul.mubr.f32.vlgmr.msra.gmra.mrb[8].mxu1 %v5286_v26 }
 0x24e   : > { %3804 = vmatprep.subr.bf16.mxu0 %v5305_v45  ;;  %3829 = vmatpush3.bf16.msra.mxu1 %v5313_v57 }
 0x24f   : > { %3830 = vmatprep.subr.bf16.mxu1 %v4765_v14  ;;  %3398 = vmatprep.mubr.msk.f32.mxu1 %vm4766_vm0, %v4763_v8 }
 0x251   : > { %3806 = vmatpush1.bf16.msra.mxu0 %v5310_v54 }
 0x252   : > { %3808 = vmatprep.subr.bf16.mxu0 %v5316_v60  ;;  %3832 = vmatpush3.bf16.msra.mxu1 %v5324_v7 }
 0x253   : > { %3833 = vmatprep.subr.bf16.mxu1 %v4765_v14 }
 0x255   : > { %3810 = vmatpush1.bf16.msra.mxu0 %v5321_v5 }
 0x256   : > { %3812 = vmatprep.subr.bf16.mxu0 %v5327_v9  ;;  %3835 = vmatpush3.bf16.msra.mxu1 %v5336_v30 }
 0x257   : > { %3836 = vmatprep.subr.bf16.mxu1 %v4765_v14 }
 0x259   : > { %3814 = vmatpush1.bf16.msra.mxu0 %v5333_v24 }
 0x25a   : > { %3816 = vmatprep.subr.bf16.mxu0 %v5339_v33  ;;  %3838 = vmatpush3.bf16.msra.mxu1 %v5346_v51 }
 0x25b   : > { %3839 = vmatprep.subr.bf16.mxu1 %v4765_v14 }
 0x25d   : > { %3818 = vmatpush1.bf16.msra.mxu0 %v5343_v46 }
 0x25e   : > { %3820 = vmatprep.subr.bf16.mxu0 %v5349_v52  ;;  %3841 = vmatpush3.bf16.msra.mxu1 %v5356_v6 }
 0x25f   : > { %3842 = vmatprep.subr.bf16.mxu1 %v4765_v14 }
 0x261   : > { %3822 = vmatpush1.bf16.msra.mxu0 %v5353_v0 }
 0x262   : > { %3824 = vmatprep.subr.bf16.mxu0 %v5359_v11  ;;  %3844 = vmatpush3.bf16.msra.mxu1 %v5366_v25 }
 0x263   : > { %3845 = vmatprep.subr.bf16.mxu1 %v4765_v14 }
 0x265   : > { %3826 = vmatpush1.bf16.msra.mxu0 %v5363_v23 }
 0x266   : > { %3852 = vmatprep.subr.bf16.mxu0 %v5211_v10  ;;  %3847 = vmatpush3.bf16.msra.mxu1 %v5374_v41 }
 0x267   : > { %3848 = vmatprep.subr.bf16.mxu1 %v4765_v14 }
 0x268   : > { %1377 = vmatmul.mubr.f32.vlgmr.msra.gmra.mrb[16].mxu0 %v5371_v37 }
 0x269   : > { %3854 = vmatpush1.bf16.msra.mxu0 %v5216_v15  ;;  %1624 = vmatprep.mubr.f32.mxu0 %v4763_v8 }
 0x26a   : > { %3856 = vmatprep.subr.bf16.mxu0 %v5218_v16  ;;  %3850 = vmatpush3.bf16.msra.mxu1 %v5380_v53  ;;  %v4188_v16 = vld [vmem:[#allocation2] sm:$0xff] }
 0x26b   : > { %3883 = vmatprep.subr.bf16.mxu1 %v4765_v14 }
 0x26d   : > { %3858 = vmatpush1.bf16.msra.mxu0 %v5222_v21  ;;  %3399 = vmatmul.mubr.f32.vlgmr.msra.gmra.mrb[10].mxu1 %v5371_v37 }
 0x26e   : > { %3860 = vmatprep.subr.bf16.mxu0 %v5225_v22  ;;  %3885 = vmatpush3.bf16.msra.mxu1 %v5233_v35 }
 0x26f   : > { %3886 = vmatprep.subr.bf16.mxu1 %v4765_v14  ;;  %3433 = vmatprep.mubr.msk.f32.mxu1 %vm4766_vm0, %v4763_v8 }
 0x271   : > { %3862 = vmatpush1.bf16.msra.mxu0 %v5228_v27 }
 0x272   : > { %3864 = vmatprep.subr.bf16.mxu0 %v5231_v29  ;;  %3888 = vmatpush3.bf16.msra.mxu1 %v5239_v39  ;;  %v4191_v29 = vld [vmem:[#allocation2 + $0x8] sm:$0xff] }
 0x273   : > { %3889 = vmatprep.subr.bf16.mxu1 %v4765_v14 }
 0x275   : > { %3866 = vmatpush1.bf16.msra.mxu0 %v5236_v38 }
 0x276   : > { %3868 = vmatprep.subr.bf16.mxu0 %v5242_v40  ;;  %3891 = vmatpush3.bf16.msra.mxu1 %v5249_v49 }
 0x277   : > { %3892 = vmatprep.subr.bf16.mxu1 %v4765_v14 }
 0x279   : > { %3870 = vmatpush1.bf16.msra.mxu0 %v5246_v47 }
 0x27a   : > { %3872 = vmatprep.subr.bf16.mxu0 %v5252_v50  ;;  %3894 = vmatpush3.bf16.msra.mxu1 %v5259_v58 }
 0x27b   : > { %3895 = vmatprep.subr.bf16.mxu1 %v4765_v14 }
 0x27d   : > { %3874 = vmatpush1.bf16.msra.mxu0 %v5256_v56 }
 0x27e   : > { %3876 = vmatprep.subr.bf16.mxu0 %v5262_v59  ;;  %3897 = vmatpush3.bf16.msra.mxu1 %v5269_v3 }
 0x27f   : > { %3898 = vmatprep.subr.bf16.mxu1 %v4765_v14 }
 0x281   : > { %3878 = vmatpush1.bf16.msra.mxu0 %v5266_v1 }
 0x282   : > { %3880 = vmatprep.subr.bf16.mxu0 %v5272_v4  ;;  %3900 = vmatpush3.bf16.msra.mxu1 %v5279_v17 }
 0x283   : > { %3901 = vmatprep.subr.bf16.mxu1 %v4765_v14 }
 0x285   : > { %3882 = vmatpush1.bf16.msra.mxu0 %v5276_v12  ;;  %v5424_v12 = vld [vmem:[%s5890_s7] ss:$0 sm:$0xff] }
 0x286   : > { %3908 = vmatprep.subr.bf16.mxu0 %v5282_v18  ;;  %3903 = vmatpush3.bf16.msra.mxu1 %v5291_v31 }
 0x287   : > { %3904 = vmatprep.subr.bf16.mxu1 %v4765_v14 }
 0x28a   : > { %3906 = vmatpush3.bf16.msra.mxu1 %v5302_v44 }
 0x28b   : > { %3939 = vmatprep.subr.bf16.mxu1 %v4765_v14 }
 0x31b   : > { %v1189_v21 = vpop.f32.mrb[0].mxu0 }
 0x31c   : > { %v4189_v22 = vadd.f32 %v4188_v16, %v1189_v21  ;;  %v1191_v27 = vpop.f32.mrb[1].mxu0 }
 0x31d   : > { %v4192_v40 = vadd.f32 %v4191_v29, %v1191_v27 }
 0x31e   : > { %v3045_v38 = vmul.f32 -1.442695, %v4189_v22 }
 0x31f   : > { %v3046_v47 = vmul.f32 -1.442695, %v4192_v40 }
 0x320   : > { %4359 = vpow2.f32 %v3045_v38  ;;  %v1260_v50 = vpop.f32.mrb[8].mxu1 }
 0x321   : > { %v3365_v56 = vpop.f32.mrb[9].mxu1  ;;  %4361 = vpow2.f32 %v3046_v47  ;;  %v1467_v55 = vadd.f32 %v5424_v12, %v1260_v50 }
 0x32a   : > { %v4360_v59 = vpop.eup %4359 }
 0x32b   : > { %v1457_v1 = vadd.f32 1.0, %v4360_v59  ;;  %v4362_v4 = vpop.eup %4361 }
 0x32c   : > { %v1464_v18 = vadd.f32 1.0, %v4362_v4 }
 0x32d   : > { %4363 = vrcp.f32 %v1457_v1 }
 0x32e   : > { %4365 = vrcp.f32 %v1464_v18 }
 0x337   : > { %v4364_v61 = vpop.eup %4363 }
 0x338   : > { %v1468_v63 = vmul.f32 %v4364_v61, %v1467_v55  ;;  %v4366_v16 = vpop.eup %4365  ;;  %v1976_v55 = vld [vmem:[#allocation14 + $0xe0] sm:$0xff] }
 0x339   : > { %v1471_v29 = vsub.f32 1.0, %v4366_v16  ;;  %v1473_v47 = vmul.f32 %v4366_v16, %v5286_v26  ;;  %v1988_v16 = vld [vmem:[#allocation14 + $0x140] sm:$0xff] }
 0x33a   : > { %v1469_v13 = vadd.f32 %v1468_v63, %v1068_v62  ;;  %v1972_v62 = vld [vmem:[#allocation14 + $0xc0] sm:$0xff]  ;;  %v1975_v63 = vld [vmem:[#allocation14 + $0xd8] sm:$0xff] }
 0x33b   : > { %v1378_v19 = vpop.f32.mrb[16].mxu0 }
 0x33c   : > { %4367 = vtanh.f32 %v1469_v13  ;;  %v1475_v20 = vadd.f32 %v1378_v19, %v1072_v2  ;;  %v1380_v36 = vpop.f32.mrb[17].mxu0  ;;  %v5522_v2 = vpack.c.bf16 %v1975_v63, %v1972_v62  ;;  %v1979_v13 = vld [vmem:[#allocation14 + $0xf8] sm:$0xff]  ;;  %v1982_v19 = vld [vmem:[#allocation14 + $0x110] sm:$0xff]  ;;  %v1510_v63 = vld [vmem:[#allocation3 + $0x38] sm:$0xff] }
 0x33d   : > { %v1482_v48 = vadd.f32 %v1380_v36, %v1073_v34  ;;  %v1978_v34 = vld [vmem:[#allocation14 + $0xf0] sm:$0xff]  ;;  %v1981_v36 = vld [vmem:[#allocation14 + $0x108] sm:$0xff] }
 0x33e   : > { %v3047_v43 = vmul.f32 -1.442695, %v1475_v20  ;;  %v5526_v20 = vpack.c.bf16 %v1982_v19, %v1979_v13 }
 0x33f   : > { %v3048_v21 = vmul.f32 -1.442695, %v1482_v48  ;;  %v1985_v48 = vld [vmem:[#allocation14 + $0x128] sm:$0xff] }
 0x340   : > { %4369 = vpow2.f32 %v3047_v43  ;;  %v1449_v22 = vpop.f32.mrb[10].mxu1  ;;  %v5528_v43 = vpack.c.bf16 %v1981_v36, %v1978_v34 }
 0x341   : > { %v3400_v27 = vpop.f32.mrb[11].mxu1  ;;  %4371 = vpow2.f32 %v3048_v21  ;;  %v5532_v21 = vpack.c.bf16 %v1988_v16, %v1985_v48 }
 0x342   : > { %v1987_v27 = vld [vmem:[#allocation14 + $0x138] sm:$0xff] }
 0x346   : > { %v4368_v38 = vpop.eup %4367 }
 0x347   : > { %v1472_v40 = vmul.f32 %v4368_v38, %v1471_v29  ;;  %v1991_v38 = vld [vmem:[#allocation14 + $0x158] sm:$0xff] }
 0x349   : > { %v5428_v50 = vadd.f32 %v1473_v47, %v1472_v40  ;;  %v1994_v40 = vld [vmem:[#allocation14 + $0x170] sm:$0xff] }
 0x34a   : > { %v4370_v56 = vpop.eup %4369  ;;  %v5538_v47 = vpack.c.bf16 %v1994_v40, %v1991_v38  ;;  %v2140_v38 = vld [vmem:[#allocation15 + $0x18] sm:$0xff] }
 0x34b   : > { %v1479_v59 = vadd.f32 1.0, %v4370_v56  ;;  %1497 = vst [vmem:[%s5180_s25] sm:$0xff] %v5428_v50  ;;  %1625 = vmatmul.mubr.f32.vlgmr.msra.gmra.mrb[2].mxu0 %v5428_v50  ;;  %3434 = vmatmul.mubr.f32.vlgmr.msra.gmra.mrb[12].mxu1 %v5428_v50  ;;  %v4372_v26 = vpop.eup %4371  ;;  %v1990_v56 = vld [vmem:[#allocation14 + $0x150] sm:$0xff] }
 0x34c   : > { %3910 = vmatpush1.bf16.msra.mxu0 %v5288_v28  ;;  %3941 = vmatpush3.bf16.msra.mxu1 %v5313_v57  ;;  %v5448_v28 = vld [vmem:[%s5891_s15] ss:$0 sm:$0xff] }
 0x34d   : > { %4373 = vrcp.f32 %v1479_v59  ;;  %3912 = vmatprep.subr.bf16.mxu0 %v5294_v32  ;;  %3942 = vmatprep.subr.bf16.mxu1 %v4765_v14  ;;  %v1486_v32 = vadd.f32 1.0, %v4372_v26  ;;  %v1489_v1 = vadd.f32 %v5448_v28, %v1449_v22  ;;  %v1984_v22 = vld [vmem:[#allocation14 + $0x120] sm:$0xff]  ;;  %v1993_v59 = vld [vmem:[#allocation14 + $0x168] sm:$0xff] }
 0x34e   : > { %1813 = vmatprep.mubr.f32.mxu0 %v4763_v8  ;;  %3468 = vmatprep.mubr.msk.f32.mxu1 %vm4766_vm0, %v4763_v8  ;;  %v5534_v29 = vpack.c.bf16 %v1987_v27, %v1984_v22  ;;  %v5540_v26 = vpack.c.bf16 %v1993_v59, %v1990_v56  ;;  %v2137_v27 = vld [vmem:[#allocation15] sm:$0xff]  ;;  %v2144_v56 = vld [vmem:[#allocation15 + $0x38] sm:$0xff]  ;;  %v2147_v59 = vld [vmem:[#allocation15 + $0x50] sm:$0xff] }
 0x34f   : > { %4375 = vrcp.f32 %v1486_v32  ;;  %v2138_v32 = vld [vmem:[#allocation15 + $0x8] sm:$0xff] }
 0x350   : > { %3914 = vmatpush1.bf16.msra.mxu0 %v5299_v42  ;;  %3944 = vmatpush3.bf16.msra.mxu1 %v5324_v7 }
 0x351   : > { %3916 = vmatprep.subr.bf16.mxu0 %v5305_v45  ;;  %3945 = vmatprep.subr.bf16.mxu1 %v4765_v14  ;;  %v1074_v45 = vld [vmem:[#allocation3 + $0x58] sm:$0xff] }
 0x354   : > { %3918 = vmatpush1.bf16.msra.mxu0 %v5310_v54  ;;  %3947 = vmatpush3.bf16.msra.mxu1 %v5336_v30 }
 0x355   : > { %3920 = vmatprep.subr.bf16.mxu0 %v5316_v60  ;;  %3948 = vmatprep.subr.bf16.mxu1 %v4765_v14 }
 0x357   : > { %v4374_v42 = vpop.eup %4373 }
 0x358   : > { %v1490_v4 = vmul.f32 %v4374_v42, %v1489_v1  ;;  %3922 = vmatpush1.bf16.msra.mxu0 %v5321_v5  ;;  %3950 = vmatpush3.bf16.msra.mxu1 %v5346_v51  ;;  %v2141_v1 = vld [vmem:[#allocation15 + $0x20] sm:$0xff] }
 0x359   : > { %3924 = vmatprep.subr.bf16.mxu0 %v5327_v9  ;;  %3951 = vmatprep.subr.bf16.mxu1 %v4765_v14  ;;  %v4376_v54 = vpop.eup %4375  ;;  %v5544_v42 = vpack.c.bf16 %v2141_v1, %v2138_v32 }
 0x35a   : > { %v1491_v18 = vadd.f32 %v1490_v4, %v1074_v45  ;;  %v1493_v60 = vsub.f32 1.0, %v4376_v54  ;;  %v4194_v45 = vld [vmem:[#allocation2 + $0x18] sm:$0xff] }
 0x35c   : > { %4377 = vtanh.f32 %v1491_v18  ;;  %3926 = vmatpush1.bf16.msra.mxu0 %v5333_v24  ;;  %3953 = vmatpush3.bf16.msra.mxu1 %v5356_v6  ;;  %v1495_v24 = vmul.f32 %v4376_v54, %v5371_v37  ;;  %v1969_v37 = vld [vmem:[#allocation14 + $0xa8] sm:$0xff] }
 0x35d   : > { %3928 = vmatprep.subr.bf16.mxu0 %v5339_v33  ;;  %3954 = vmatprep.subr.bf16.mxu1 %v4765_v14 }
 0x360   : > { %3930 = vmatpush1.bf16.msra.mxu0 %v5343_v46  ;;  %3956 = vmatpush3.bf16.msra.mxu1 %v5366_v25  ;;  %v1960_v46 = vld [vmem:[#allocation14 + $0x60] sm:$0xff]  ;;  %v1966_v25 = vld [vmem:[#allocation14 + $0x90] sm:$0xff] }
 0x361   : > { %3932 = vmatprep.subr.bf16.mxu0 %v5349_v52  ;;  %3957 = vmatprep.subr.bf16.mxu1 %v4765_v14 }
 0x364   : > { %3934 = vmatpush1.bf16.msra.mxu0 %v5353_v0  ;;  %3959 = vmatpush3.bf16.msra.mxu1 %v5374_v41  ;;  %v1967_v0 = vld [vmem:[#allocation14 + $0x98] sm:$0xff]  ;;  %v5516_v41 = vpack.c.bf16 %v1969_v37, %v1966_v25  ;;  %v1509_v25 = vld [vmem:[#allocation3 + $0x30] sm:$0xff] }
 0x365   : > { %3936 = vmatprep.subr.bf16.mxu0 %v5359_v11  ;;  %3960 = vmatprep.subr.bf16.mxu1 %v4765_v14  ;;  %v1970_v11 = vld [vmem:[#allocation14 + $0xb0] sm:$0xff] }
 0x366   : > { %v4378_v5 = vpop.eup %4377 }
 0x367   : > { %v1494_v9 = vmul.f32 %v4378_v5, %v1493_v60  ;;  %v4197_v5 = vld [vmem:[#allocation2 + $0x20] sm:$0xff] }
 0x368   : > { %3938 = vmatpush1.bf16.msra.mxu0 %v5363_v23  ;;  %3962 = vmatpush3.bf16.msra.mxu1 %v5380_v53  ;;  %v5514_v23 = vpack.c.bf16 %v1970_v11, %v1967_v0  ;;  %v1973_v53 = vld [vmem:[#allocation14 + $0xc8] sm:$0xff]  ;;  %v1505_v0 = vld [vmem:[#allocation2 + $0x28] sm:$0xff] }
 0x369   : > { %v5474_v33 = vadd.f32 %v1495_v24, %v1494_v9  ;;  %3964 = vmatprep.subr.bf16.mxu0 %v5211_v10  ;;  %3995 = vmatprep.subr.bf16.mxu1 %v4765_v14  ;;  %v1955_v10 = vld [vmem:[#allocation14 + $0x38] sm:$0xff]  ;;  %v5520_v61 = vpack.c.bf16 %v1976_v55, %v1973_v53 }
 0x36b   : > { %3049 = vst [vmem:[%s5182_s9 + $0x18] sm:$0xff] %v5474_v33  ;;  %1814 = vmatmul.mubr.f32.vlgmr.msra.gmra.mrb[18].mxu0 %v5474_v33  ;;  %3469 = vmatmul.mubr.f32.vlgmr.msra.gmra.mrb[14].mxu1 %v5474_v33 }
 0x36c   : > { %3966 = vmatpush1.bf16.msra.mxu0 %v5216_v15  ;;  %3997 = vmatpush3.bf16.msra.mxu1 %v5233_v35  ;;  %v1958_v15 = vld [vmem:[#allocation14 + $0x50] sm:$0xff] }
 0x36d   : > { %3998 = vmatprep.subr.bf16.mxu1 %v4765_v14  ;;  %2060 = vmatprep.mubr.f32.mxu0 %v4763_v8  ;;  %v5502_v35 = vpack.c.bf16 %v1958_v15, %v1955_v10 }
 0x36e   : > { %3503 = vmatprep.mubr.msk.f32.mxu1 %vm4766_vm0, %v4763_v8 }
 0x36f   : > { %3968 = vmatprep.subr.bf16.mxu0 %v5502_v35 }
 0x370   : > { %4000 = vmatpush3.bf16.msra.mxu1 %v5239_v39  ;;  %v1954_v39 = vld [vmem:[#allocation14 + $0x30] sm:$0xff] }
 0x371   : > { %4001 = vmatprep.subr.bf16.mxu1 %v4765_v14 }
 0x374   : > { %4003 = vmatpush3.bf16.msra.mxu1 %v5249_v49  ;;  %v1957_v49 = vld [vmem:[#allocation14 + $0x48] sm:$0xff] }
 0x375   : > { %4004 = vmatprep.subr.bf16.mxu1 %v4765_v14 }
 0x378   : > { %4006 = vmatpush3.bf16.msra.mxu1 %v5259_v58  ;;  %v5504_v58 = vpack.c.bf16 %v1957_v49, %v1954_v39 }
 0x379   : > { %4007 = vmatprep.subr.bf16.mxu1 %v4765_v14 }
 0x37a   : > { %3970 = vmatpush1.bf16.msra.mxu0 %v5504_v58 }
 0x37c   : > { %4009 = vmatpush3.bf16.msra.mxu1 %v5269_v3  ;;  %v1961_v3 = vld [vmem:[#allocation14 + $0x68] sm:$0xff] }
 0x37d   : > { %4010 = vmatprep.subr.bf16.mxu1 %v4765_v14 }
 0x380   : > { %4012 = vmatpush3.bf16.msra.mxu1 %v5279_v17  ;;  %v1964_v17 = vld [vmem:[#allocation14 + $0x80] sm:$0xff] }
 0x381   : > { %4013 = vmatprep.subr.bf16.mxu1 %v4765_v14 }
 0x384   : > { %4015 = vmatpush3.bf16.msra.mxu1 %v5291_v31  ;;  %v5508_v31 = vpack.c.bf16 %v1964_v17, %v1961_v3 }
 0x385   : > { %4016 = vmatprep.subr.bf16.mxu1 %v4765_v14 }
 0x386   : > { %3972 = vmatprep.subr.bf16.mxu0 %v5508_v31 }
 0x388   : > { %4018 = vmatpush3.bf16.msra.mxu1 %v5302_v44  ;;  %v1963_v44 = vld [vmem:[#allocation14 + $0x78] sm:$0xff] }
 0x389   : > { %4051 = vmatprep.subr.bf16.mxu1 %v4765_v14  ;;  %v5510_v52 = vpack.c.bf16 %v1963_v44, %v1960_v46 }
 0x38b   : > { %3974 = vmatpush1.bf16.msra.mxu0 %v5510_v52 }
 0x38c   : > { %3976 = vmatprep.subr.bf16.mxu0 %v5514_v23 }
 0x38f   : > { %3978 = vmatpush1.bf16.msra.mxu0 %v5516_v41 }
 0x390   : > { %3980 = vmatprep.subr.bf16.mxu0 %v5520_v61 }
 0x393   : > { %3982 = vmatpush1.bf16.msra.mxu0 %v5522_v2 }
 0x394   : > { %3984 = vmatprep.subr.bf16.mxu0 %v5526_v20 }
 0x397   : > { %3986 = vmatpush1.bf16.msra.mxu0 %v5528_v43 }
 0x398   : > { %3988 = vmatprep.subr.bf16.mxu0 %v5532_v21 }
 0x39b   : > { %3990 = vmatpush1.bf16.msra.mxu0 %v5534_v29 }
 0x39c   : > { %3992 = vmatprep.subr.bf16.mxu0 %v5538_v47 }
 0x39f   : > { %3994 = vmatpush1.bf16.msra.mxu0 %v5540_v26 }
 0x3a0   : > { %4020 = vmatprep.subr.bf16.mxu0 %v5544_v42 }
 0x41e   : > { %v1626_v4 = vpop.f32.mrb[2].mxu0  ;;  %v1697_v18 = vpop.f32.mrb[12].mxu1 }
 0x41f   : > { %v4195_v54 = vadd.f32 %v4194_v45, %v1626_v4  ;;  %v1628_v60 = vpop.f32.mrb[3].mxu0  ;;  %v3435_v9 = vpop.f32.mrb[13].mxu1  ;;  %v1904_v46 = vadd.f32 %v5424_v12, %v1697_v18  ;;  %v5551_v45 = vpack.c.bf16 %v2140_v38, %v2137_v27  ;;  %v5555_v18 = vpack.c.bf16 %v2147_v59, %v2144_v56  ;;  %v2167_v27 = vld [vmem:[#allocation15 + $0xf0] sm:$0xff]  ;;  %v2172_v56 = vld [vmem:[#allocation15 + $0x118] sm:$0xff] }
 0x420   : > { %v4198_v10 = vadd.f32 %v4197_v5, %v1628_v60  ;;  %v2146_v60 = vld [vmem:[#allocation15 + $0x48] sm:$0xff] }
 0x421   : > { %v3050_v24 = vmul.f32 -1.442695, %v4195_v54  ;;  %v2143_v54 = vld [vmem:[#allocation15 + $0x30] sm:$0xff]  ;;  %v2150_v9 = vld [vmem:[#allocation15 + $0x68] sm:$0xff] }
 0x422   : > { %v3051_v15 = vmul.f32 -1.442695, %v4198_v10 }
 0x423   : > { %4379 = vpow2.f32 %v3050_v24  ;;  %v2153_v24 = vld [vmem:[#allocation15 + $0x80] sm:$0xff] }
 0x424   : > { %4381 = vpow2.f32 %v3051_v15  ;;  %v5567_v15 = vpack.c.bf16 %v2153_v24, %v2150_v9  ;;  %v2176_v9 = vld [vmem:[#allocation15 + $0x138] sm:$0xff]  ;;  %v2175_v24 = vld [vmem:[#allocation15 + $0x130] sm:$0xff] }
 0x42d   : > { %v4380_v39 = vpop.eup %4379 }
 0x42e   : > { %v1894_v49 = vadd.f32 1.0, %v4380_v39  ;;  %v4382_v3 = vpop.eup %4381  ;;  %v2149_v39 = vld [vmem:[#allocation15 + $0x60] sm:$0xff] }
 0x42f   : > { %v1901_v17 = vadd.f32 1.0, %v4382_v3  ;;  %v2156_v3 = vld [vmem:[#allocation15 + $0x98] sm:$0xff] }
 0x430   : > { %4383 = vrcp.f32 %v1894_v49  ;;  %v2152_v49 = vld [vmem:[#allocation15 + $0x78] sm:$0xff] }
 0x431   : > { %4385 = vrcp.f32 %v1901_v17  ;;  %v2159_v17 = vld [vmem:[#allocation15 + $0xb0] sm:$0xff] }
 0x43a   : > { %v4384_v44 = vpop.eup %4383 }
 0x43b   : > { %v1905_v11 = vmul.f32 %v4384_v44, %v1904_v46  ;;  %v4386_v48 = vpop.eup %4385  ;;  %v5578_v44 = vpack.c.bf16 %v2159_v17, %v2156_v3  ;;  %v2179_v17 = vld [vmem:[#allocation15 + $0x150] sm:$0xff] }
 0x43c   : > { %v1908_v22 = vsub.f32 1.0, %v4386_v48  ;;  %v1910_v1 = vmul.f32 %v4386_v48, %v5428_v50  ;;  %v5563_v50 = vpack.c.bf16 %v2146_v60, %v2143_v54  ;;  %v2173_v60 = vld [vmem:[#allocation15 + $0x120] sm:$0xff] }
 0x43d   : > { %v1906_v37 = vadd.f32 %v1905_v11, %v1505_v0  ;;  %v2155_v0 = vld [vmem:[#allocation15 + $0x90] sm:$0xff]  ;;  %v2158_v11 = vld [vmem:[#allocation15 + $0xa8] sm:$0xff] }
 0x43e   : > { %v1815_v53 = vpop.f32.mrb[18].mxu0  ;;  %v5548_v55 = vpop.f32.mrb[14].mxu1 }
 0x43f   : > { %4387 = vtanh.f32 %v1906_v37  ;;  %v1912_v62 = vadd.f32 %v1815_v53, %v1509_v25  ;;  %v1817_v13 = vpop.f32.mrb[19].mxu0  ;;  %v3470_v19 = vpop.f32.mrb[15].mxu1  ;;  %v2162_v25 = vld [vmem:[#allocation15 + $0xc8] sm:$0xff]  ;;  %v2165_v37 = vld [vmem:[#allocation15 + $0xe0] sm:$0xff] }
 0x440   : > { %v1919_v36 = vadd.f32 %v1817_v13, %v1510_v63  ;;  %v2161_v63 = vld [vmem:[#allocation15 + $0xc0] sm:$0xff]  ;;  %v2164_v13 = vld [vmem:[#allocation15 + $0xd8] sm:$0xff]  ;;  %v1926_v19 = vadd.f32 %v5448_v28, %v5548_v55  ;;  %v2170_v55 = vld [vmem:[#allocation15 + $0x108] sm:$0xff] }
 0x441   : > { %v3052_v34 = vmul.f32 -1.442695, %v1912_v62  ;;  %v5582_v62 = vpack.c.bf16 %v2158_v11, %v2155_v0  ;;  %v2182_v0 = vld [vmem:[#allocation15 + $0x168] sm:$0xff]  ;;  %v2181_v11 = vld [vmem:[#allocation15 + $0x160] sm:$0xff] }
 0x442   : > { %v3053_v16 = vmul.f32 -1.442695, %v1919_v36  ;;  %v2171_v36 = vld [vmem:[#allocation15 + $0x110] sm:$0xff] }
 0x443   : > { %4389 = vpow2.f32 %v3052_v34  ;;  %v2168_v34 = vld [vmem:[#allocation15 + $0xf8] sm:$0xff] }
 0x444   : > { %4391 = vpow2.f32 %v3053_v16  ;;  %v1511_v16 = vld [vmem:[#allocation3 + $0x40] sm:$0xff]  ;;  %v5596_v38 = vpack.c.bf16 %v2171_v36, %v2168_v34 }
 0x449   : > { %v4388_v40 = vpop.eup %4387 }
 0x44a   : > { %v1909_v32 = vmul.f32 %v4388_v40, %v1908_v22  ;;  %v2169_v40 = vld [vmem:[#allocation15 + $0x100] sm:$0xff] }
 0x44b   : > { %v5602_v54 = vpack.c.bf16 %v2172_v56, %v2169_v40  ;;  %v2386_v40 = vld [vmem:[#allocation14 + $0x10] sm:$0xff] }
 0x44c   : > { %v5553_v4 = vadd.f32 %v1910_v1, %v1909_v32  ;;  %v2174_v32 = vld [vmem:[#allocation15 + $0x128] sm:$0xff]  ;;  %v2177_v1 = vld [vmem:[#allocation15 + $0x140] sm:$0xff] }
 0x44d   : > { %v4390_v5 = vpop.eup %4389 }
 0x44e   : > { %v1916_v10 = vadd.f32 1.0, %v4390_v5  ;;  %3054 = vst [vmem:[%s5180_s25 + $0x8] sm:$0xff] %v5553_v4  ;;  %2061 = vmatmul.mubr.f32.vlgmr.msra.gmra.mrb[4].mxu0 %v5553_v4  ;;  %3504 = vmatmul.mubr.f32.vlgmr.msra.gmra.mrb[16].mxu1 %v5553_v4  ;;  %v4392_v46 = vpop.eup %4391  ;;  %v5606_v5 = vpack.c.bf16 %v2177_v1, %v2174_v32  ;;  %v2392_v1 = vld [vmem:[#allocation14 + $0x40] sm:$0xff] }
 0x44f   : > { %4022 = vmatpush1.bf16.msra.mxu0 %v5551_v45  ;;  %4053 = vmatpush3.bf16.msra.mxu1 %v5313_v57  ;;  %v5574_v57 = vpack.c.bf16 %v2152_v49, %v2149_v39  ;;  %v1923_v53 = vadd.f32 1.0, %v4392_v46  ;;  %v2180_v39 = vld [vmem:[#allocation15 + $0x158] sm:$0xff]  ;;  %v2183_v49 = vld [vmem:[#allocation15 + $0x170] sm:$0xff] }
 0x450   : > { %4393 = vrcp.f32 %v1916_v10  ;;  %4024 = vmatprep.subr.bf16.mxu0 %v5555_v18  ;;  %4054 = vmatprep.subr.bf16.mxu1 %v4765_v14  ;;  %v2178_v10 = vld [vmem:[#allocation15 + $0x148] sm:$0xff]  ;;  %v5616_v46 = vpack.c.bf16 %v2183_v49, %v2180_v39  ;;  %v2407_v49 = vld [vmem:[#allocation14 + $0xb8] sm:$0xff] }
 0x451   : > { %2249 = vmatprep.mubr.f32.mxu0 %v4763_v8  ;;  %3538 = vmatprep.mubr.msk.f32.mxu1 %vm4766_vm0, %v4763_v8  ;;  %4395 = vrcp.f32 %v1923_v53  ;;  %v5612_v3 = vpack.c.bf16 %v2178_v10, %v2175_v24  ;;  %v5620_v53 = vpack.c.bf16 %v2182_v0, %v2179_v17  ;;  %v2398_v24 = vld [vmem:[#allocation14 + $0x70] sm:$0xff]  ;;  %v2401_v10 = vld [vmem:[#allocation14 + $0x88] sm:$0xff] }
 0x452   : > { %v4114_v39 = vpack.c.bf16 %v2401_v10, %v2398_v24  ;;  %v1946_v10 = vld [vmem:[#allocation3 + $0x20] sm:$0xff] }
 0x453   : > { %4026 = vmatpush1.bf16.msra.mxu0 %v5563_v50  ;;  %4056 = vmatpush3.bf16.msra.mxu1 %v5324_v7  ;;  %v5586_v7 = vpack.c.bf16 %v2165_v37, %v2162_v25  ;;  %v2184_v25 = vld [vmem:[#allocation15 + $0x178] sm:$0xff] }
 0x454   : > { %4028 = vmatprep.subr.bf16.mxu0 %v5567_v15  ;;  %4057 = vmatprep.subr.bf16.mxu1 %v4765_v14 }
 0x457   : > { %4030 = vmatpush1.bf16.msra.mxu0 %v5574_v57  ;;  %4059 = vmatpush3.bf16.msra.mxu1 %v5336_v30  ;;  %v5592_v30 = vpack.c.bf16 %v2164_v13, %v2161_v63  ;;  %v5622_v63 = vpack.c.bf16 %v2184_v25, %v2181_v11 }
 0x458   : > { %4032 = vmatprep.subr.bf16.mxu0 %v5578_v44  ;;  %4060 = vmatprep.subr.bf16.mxu1 %v4765_v14 }
 0x45a   : > { %v4394_v48 = vpop.eup %4393 }
 0x45b   : > { %v1927_v22 = vmul.f32 %v4394_v48, %v1926_v19  ;;  %4034 = vmatpush1.bf16.msra.mxu0 %v5582_v62  ;;  %4062 = vmatpush3.bf16.msra.mxu1 %v5346_v51  ;;  %v5600_v51 = vpack.c.bf16 %v2170_v55, %v2167_v27  ;;  %v4396_v37 = vpop.eup %4395  ;;  %v2384_v27 = vld [vmem:[#allocation14] sm:$0xff]  ;;  %v2387_v55 = vld [vmem:[#allocation14 + $0x18] sm:$0xff] }
 0x45c   : > { %4036 = vmatprep.subr.bf16.mxu0 %v5586_v7  ;;  %4063 = vmatprep.subr.bf16.mxu1 %v4765_v14  ;;  %v1930_v13 = vsub.f32 1.0, %v4396_v37  ;;  %v1932_v36 = vmul.f32 %v4396_v37, %v5474_v33  ;;  %v2385_v33 = vld [vmem:[#allocation14 + $0x8] sm:$0xff]  ;;  %v4077_v56 = vpack.c.bf16 %v2387_v55, %v2384_v27 }
 0x45d   : > { %v1928_v59 = vadd.f32 %v1927_v22, %v1511_v16  ;;  %v2388_v16 = vld [vmem:[#allocation14 + $0x20] sm:$0xff] }
 0x45e   : > { %v4075_v22 = vpack.c.bf16 %v2388_v16, %v2385_v33 }
 0x45f   : > { %4397 = vtanh.f32 %v1928_v59  ;;  %4038 = vmatpush1.bf16.msra.mxu0 %v5592_v30  ;;  %4065 = vmatpush3.bf16.msra.mxu1 %v5356_v6  ;;  %v5610_v6 = vpack.c.bf16 %v2176_v9, %v2173_v60  ;;  %v2389_v59 = vld [vmem:[#allocation14 + $0x28] sm:$0xff]  ;;  %v2395_v60 = vld [vmem:[#allocation14 + $0x58] sm:$0xff] }
 0x460   : > { %4040 = vmatprep.subr.bf16.mxu0 %v5596_v38  ;;  %4066 = vmatprep.subr.bf16.mxu1 %v4765_v14  ;;  %v4108_v32 = vpack.c.bf16 %v2389_v59, %v2386_v40  ;;  %v4111_v9 = vpack.c.bf16 %v2395_v60, %v2392_v1 }
 0x463   : > { %4042 = vmatpush1.bf16.msra.mxu0 %v5600_v51  ;;  %4068 = vmatpush3.bf16.msra.mxu1 %v5602_v54 }
 0x464   : > { %4044 = vmatprep.subr.bf16.mxu0 %v5606_v5  ;;  %4069 = vmatprep.subr.bf16.mxu1 %v4765_v14 }
 0x467   : > { %4046 = vmatpush1.bf16.msra.mxu0 %v5610_v6  ;;  %4071 = vmatpush3.bf16.msra.mxu1 %v5612_v3 }
 0x468   : > { %4048 = vmatprep.subr.bf16.mxu0 %v5616_v46  ;;  %4072 = vmatprep.subr.bf16.mxu1 %v4765_v14 }
 0x469   : > { %v4398_v19 = vpop.eup %4397 }
 0x46a   : > { %v1931_v34 = vmul.f32 %v4398_v19, %v1930_v13 }
 0x46b   : > { %4050 = vmatpush1.bf16.msra.mxu0 %v5620_v53  ;;  %4074 = vmatpush3.bf16.msra.mxu1 %v5622_v63 }
 0x46c   : > { %v5629_v48 = vadd.f32 %v1932_v36, %v1931_v34  ;;  %4107 = vmatprep.subr.bf16.mxu1 %v4765_v14  ;;  %4076 = vmatprep.subr.bf16.mxu0 %v4075_v22  ;;  %v4203_v34 = vld [vmem:[#allocation2 + $0x38] sm:$0xff] }
 0x46e   : > { %3055 = vst [vmem:[%s5182_s9 + $0x10] sm:$0xff] %v5629_v48  ;;  %2250 = vmatmul.mubr.f32.vlgmr.msra.gmra.mrb[20].mxu0 %v5629_v48  ;;  %3539 = vmatmul.mubr.f32.vlgmr.msra.gmra.mrb[18].mxu1 %v5629_v48 }
 0x46f   : > { %2496 = vmatprep.mubr.f32.mxu0 %v4763_v8  ;;  %3573 = vmatprep.mubr.msk.f32.mxu1 %vm4766_vm0, %v4763_v8 }
 0x470   : > { %4078 = vmatpush1.bf16.msra.mxu0 %v4077_v56  ;;  %4109 = vmatpush3.bf16.msra.mxu1 %v4108_v32  ;;  %v1942_v56 = vld [vmem:[#allocation2 + $0x40] sm:$0xff]  ;;  %v1945_v32 = vld [vmem:[#allocation3 + $0x18] sm:$0xff] }
 0x471   : > { %4080 = vmatprep.subr.bf16.mxu0 %v5502_v35  ;;  %4110 = vmatprep.subr.bf16.mxu1 %v4765_v14  ;;  %v2404_v35 = vld [vmem:[#allocation14 + $0xa0] sm:$0xff] }
 0x472   : > { %v4117_v17 = vpack.c.bf16 %v2407_v49, %v2404_v35 }
 0x474   : > { %4082 = vmatpush1.bf16.msra.mxu0 %v5504_v58  ;;  %4112 = vmatpush3.bf16.msra.mxu1 %v4111_v9  ;;  %v2410_v58 = vld [vmem:[#allocation14 + $0xd0] sm:$0xff] }
 0x475   : > { %4084 = vmatprep.subr.bf16.mxu0 %v5508_v31  ;;  %4113 = vmatprep.subr.bf16.mxu1 %v4765_v14  ;;  %v2413_v31 = vld [vmem:[#allocation14 + $0xe8] sm:$0xff] }
 0x476   : > { %v4120_v0 = vpack.c.bf16 %v2413_v31, %v2410_v58 }
 0x478   : > { %4086 = vmatpush1.bf16.msra.mxu0 %v5510_v52  ;;  %4115 = vmatpush3.bf16.msra.mxu1 %v4114_v39  ;;  %v2416_v52 = vld [vmem:[#allocation14 + $0x100] sm:$0xff] }
 0x479   : > { %4088 = vmatprep.subr.bf16.mxu0 %v5514_v23  ;;  %4116 = vmatprep.subr.bf16.mxu1 %v4765_v14  ;;  %v2419_v23 = vld [vmem:[#allocation14 + $0x118] sm:$0xff] }
 0x47a   : > { %v4123_v11 = vpack.c.bf16 %v2419_v23, %v2416_v52  ;;  %v2578_v52 = vld [vmem:[#allocation15 + $0x28] sm:$0xff] }
 0x47c   : > { %4090 = vmatpush1.bf16.msra.mxu0 %v5516_v41  ;;  %4118 = vmatpush3.bf16.msra.mxu1 %v4117_v17  ;;  %v2422_v41 = vld [vmem:[#allocation14 + $0x130] sm:$0xff] }
 0x47d   : > { %4092 = vmatprep.subr.bf16.mxu0 %v5520_v61  ;;  %4119 = vmatprep.subr.bf16.mxu1 %v4765_v14  ;;  %v2425_v61 = vld [vmem:[#allocation14 + $0x148] sm:$0xff] }
 0x47e   : > { %v4126_v25 = vpack.c.bf16 %v2425_v61, %v2422_v41 }
 0x480   : > { %4094 = vmatpush1.bf16.msra.mxu0 %v5522_v2  ;;  %4121 = vmatpush3.bf16.msra.mxu1 %v4120_v0  ;;  %v2428_v2 = vld [vmem:[#allocation14 + $0x160] sm:$0xff]  ;;  %v2575_v0 = vld [vmem:[#allocation15 + $0x10] sm:$0xff] }
 0x481   : > { %4096 = vmatprep.subr.bf16.mxu0 %v5526_v20  ;;  %4122 = vmatprep.subr.bf16.mxu1 %v4765_v14  ;;  %v2431_v20 = vld [vmem:[#allocation14 + $0x178] sm:$0xff]  ;;  %v4164_v61 = vpack.c.bf16 %v2578_v52, %v2575_v0 }
 0x482   : > { %v4129_v37 = vpack.c.bf16 %v2431_v20, %v2428_v2  ;;  %v2581_v2 = vld [vmem:[#allocation15 + $0x40] sm:$0xff]  ;;  %v2584_v20 = vld [vmem:[#allocation15 + $0x58] sm:$0xff] }
 0x484   : > { %4098 = vmatpush1.bf16.msra.mxu0 %v5528_v43  ;;  %4124 = vmatpush3.bf16.msra.mxu1 %v4123_v11  ;;  %v4200_v43 = vld [vmem:[#allocation2 + $0x30] sm:$0xff] }
 0x485   : > { %4100 = vmatprep.subr.bf16.mxu0 %v5532_v21  ;;  %4125 = vmatprep.subr.bf16.mxu1 %v4765_v14 }
 0x488   : > { %4102 = vmatpush1.bf16.msra.mxu0 %v5534_v29  ;;  %4127 = vmatpush3.bf16.msra.mxu1 %v4126_v25 }
 0x489   : > { %4104 = vmatprep.subr.bf16.mxu0 %v5538_v47  ;;  %4128 = vmatprep.subr.bf16.mxu1 %v4765_v14 }
 0x48c   : > { %4106 = vmatpush1.bf16.msra.mxu0 %v5540_v26  ;;  %4130 = vmatpush3.bf16.msra.mxu1 %v4129_v37 }
 0x48d   : > { %4132 = vmatprep.subr.bf16.mxu0 %v5544_v42  ;;  %4163 = vmatprep.subr.bf16.mxu1 %v4765_v14 }
 0x521   : > { %v2062_v21 = vpop.f32.mrb[4].mxu0  ;;  %v2133_v13 = vpop.f32.mrb[16].mxu1 }
 0x522   : > { %v4201_v19 = vadd.f32 %v4200_v43, %v2062_v21  ;;  %v2064_v29 = vpop.f32.mrb[5].mxu0  ;;  %v3505_v36 = vpop.f32.mrb[17].mxu1  ;;  %v2340_v42 = vadd.f32 %v5424_v12, %v2133_v13  ;;  %v4167_v21 = vpack.c.bf16 %v2584_v20, %v2581_v2  ;;  %v2590_v13 = vld [vmem:[#allocation15 + $0x88] sm:$0xff] }
 0x523   : > { %v4204_v33 = vadd.f32 %v4203_v34, %v2064_v29 }
 0x524   : > { %v3056_v47 = vmul.f32 -1.442695, %v4201_v19 }
 0x525   : > { %v3057_v16 = vmul.f32 -1.442695, %v4204_v33 }
 0x526   : > { %4399 = vpow2.f32 %v3056_v47 }
 0x527   : > { %4401 = vpow2.f32 %v3057_v16  ;;  %v1947_v16 = vld [vmem:[#allocation3 + $0x28] sm:$0xff] }
 0x530   : > { %v4400_v22 = vpop.eup %4399 }
 0x531   : > { %v2330_v27 = vadd.f32 1.0, %v4400_v22  ;;  %v4402_v26 = vpop.eup %4401 }
 0x532   : > { %v2337_v55 = vadd.f32 1.0, %v4402_v26 }
 0x533   : > { %4403 = vrcp.f32 %v2330_v27 }
 0x534   : > { %4405 = vrcp.f32 %v2337_v55 }
 0x53d   : > { %v4404_v40 = vpop.eup %4403 }
 0x53e   : > { %v2341_v59 = vmul.f32 %v4404_v40, %v2340_v42  ;;  %v4406_v58 = vpop.eup %4405 }
 0x53f   : > { %v2344_v12 = vsub.f32 1.0, %v4406_v58  ;;  %v2346_v41 = vmul.f32 %v4406_v58, %v5553_v4  ;;  %v2587_v4 = vld [vmem:[#allocation15 + $0x70] sm:$0xff] }
 0x540   : > { %v2342_v1 = vadd.f32 %v2341_v59, %v1942_v56  ;;  %v4170_v19 = vpack.c.bf16 %v2590_v13, %v2587_v4  ;;  %v4439_v56 = vld [vmem:[%s5890_s7] ss:$0 sm:$0xff] }
 0x541   : > { %v2251_v60 = vpop.f32.mrb[20].mxu0  ;;  %v2322_v9 = vpop.f32.mrb[18].mxu1 }
 0x542   : > { %4407 = vtanh.f32 %v2342_v1  ;;  %v2348_v24 = vadd.f32 %v2251_v60, %v1945_v32  ;;  %v2253_v39 = vpop.f32.mrb[21].mxu0  ;;  %v3540_v35 = vpop.f32.mrb[19].mxu1  ;;  %v2362_v47 = vadd.f32 %v5448_v28, %v2322_v9  ;;  %v2378_v1 = vld [vmem:[#allocation2 + $0x58] sm:$0xff]  ;;  %v4212_v9 = vld [vmem:[#allocation3] sm:$0xff] }
 0x543   : > { %v2355_v17 = vadd.f32 %v2253_v39, %v1946_v10 }
 0x544   : > { %v3058_v49 = vmul.f32 -1.442695, %v2348_v24 }
 0x545   : > { %v3059_v31 = vmul.f32 -1.442695, %v2355_v17  ;;  %v4215_v17 = vld [vmem:[#allocation3 + $0x8] sm:$0xff] }
 0x546   : > { %4409 = vpow2.f32 %v3058_v49 }
 0x547   : > { %4411 = vpow2.f32 %v3059_v31 }
 0x54c   : > { %v4408_v23 = vpop.eup %4407 }
 0x54d   : > { %v2345_v11 = vmul.f32 %v4408_v23, %v2344_v12 }
 0x54f   : > { %v5664_v25 = vadd.f32 %v2346_v41, %v2345_v11 }
 0x550   : > { %v4410_v37 = vpop.eup %4409 }
 0x551   : > { %v2352_v43 = vadd.f32 1.0, %v4410_v37  ;;  %3060 = vst [vmem:[%s5180_s25 + $0x10] sm:$0xff] %v5664_v25  ;;  %2497 = vmatmul.mubr.f32.vlgmr.msra.gmra.mrb[6].mxu0 %v5664_v25  ;;  %3574 = vmatmul.mubr.f32.vlgmr.msra.gmra.mrb[20].mxu1 %v5664_v25  ;;  %v4412_v29 = vpop.eup %4411 }
 0x552   : > { %4134 = vmatpush1.bf16.msra.mxu0 %v5551_v45  ;;  %4165 = vmatpush3.bf16.msra.mxu1 %v4164_v61  ;;  %v2593_v45 = vld [vmem:[#allocation15 + $0xa0] sm:$0xff]  ;;  %v2359_v34 = vadd.f32 1.0, %v4412_v29 }
 0x553   : > { %4413 = vrcp.f32 %v2352_v43  ;;  %4136 = vmatprep.subr.bf16.mxu0 %v5555_v18  ;;  %4166 = vmatprep.subr.bf16.mxu1 %v4765_v14  ;;  %v2596_v18 = vld [vmem:[#allocation15 + $0xb8] sm:$0xff] }
 0x554   : > { %2685 = vmatprep.mubr.f32.mxu0 %v4763_v8  ;;  %3608 = vmatprep.mubr.msk.f32.mxu1 %vm4766_vm0, %v4763_v8  ;;  %v4173_v36 = vpack.c.bf16 %v2596_v18, %v2593_v45  ;;  %v2599_v8 = vld [vmem:[#allocation15 + $0xd0] sm:$0xff]  ;;  %4415 = vrcp.f32 %v2359_v34 }
 0x556   : > { %4138 = vmatpush1.bf16.msra.mxu0 %v5563_v50  ;;  %4168 = vmatpush3.bf16.msra.mxu1 %v4167_v21  ;;  %v2602_v50 = vld [vmem:[#allocation15 + $0xe8] sm:$0xff] }
 0x557   : > { %4140 = vmatprep.subr.bf16.mxu0 %v5567_v15  ;;  %4169 = vmatprep.subr.bf16.mxu1 %v4765_v14  ;;  %v4176_v22 = vpack.c.bf16 %v2602_v50, %v2599_v8 }
 0x55a   : > { %4142 = vmatpush1.bf16.msra.mxu0 %v5574_v57  ;;  %4171 = vmatpush3.bf16.msra.mxu1 %v4170_v19 }
 0x55b   : > { %4144 = vmatprep.subr.bf16.mxu0 %v5578_v44  ;;  %4172 = vmatprep.subr.bf16.mxu1 %v4765_v14 }
 0x55d   : > { %v4414_v33 = vpop.eup %4413 }
 0x55e   : > { %v2363_v15 = vmul.f32 %v4414_v33, %v2362_v47  ;;  %4146 = vmatpush1.bf16.msra.mxu0 %v5582_v62  ;;  %4174 = vmatpush3.bf16.msra.mxu1 %v4173_v36  ;;  %v4416_v44 = vpop.eup %4415 }
 0x55f   : > { %4148 = vmatprep.subr.bf16.mxu0 %v5586_v7  ;;  %4175 = vmatprep.subr.bf16.mxu1 %v4765_v14  ;;  %v2366_v62 = vsub.f32 1.0, %v4416_v44 }
 0x560   : > { %v2364_v57 = vadd.f32 %v2363_v15, %v1947_v16 }
 0x562   : > { %4417 = vtanh.f32 %v2364_v57  ;;  %4150 = vmatpush1.bf16.msra.mxu0 %v5592_v30  ;;  %4177 = vmatpush3.bf16.msra.mxu1 %v4176_v22 }
 0x563   : > { %4152 = vmatprep.subr.bf16.mxu0 %v5596_v38  ;;  %4178 = vmatprep.subr.bf16.mxu1 %v4765_v14  ;;  %v2368_v38 = vmul.f32 %v4416_v44, %v5629_v48 }
 0x566   : > { %4154 = vmatpush1.bf16.msra.mxu0 %v5600_v51  ;;  %4180 = vmatpush3.bf16.msra.mxu1 %v5602_v54  ;;  %v4206_v54 = vld [vmem:[#allocation2 + $0x48] sm:$0xff] }
 0x567   : > { %4156 = vmatprep.subr.bf16.mxu0 %v5606_v5  ;;  %4181 = vmatprep.subr.bf16.mxu1 %v4765_v14 }
 0x56a   : > { %4158 = vmatpush1.bf16.msra.mxu0 %v5610_v6  ;;  %4183 = vmatpush3.bf16.msra.mxu1 %v5612_v3 }
 0x56b   : > { %4160 = vmatprep.subr.bf16.mxu0 %v5616_v46  ;;  %4184 = vmatprep.subr.bf16.mxu1 %v4765_v14  ;;  %v4209_v46 = vld [vmem:[#allocation2 + $0x50] sm:$0xff] }
 0x56c   : > { %v4418_v7 = vpop.eup %4417 }
 0x56d   : > { %v2367_v30 = vmul.f32 %v4418_v7, %v2366_v62 }
 0x56e   : > { %4162 = vmatpush1.bf16.msra.mxu0 %v5620_v53  ;;  %4186 = vmatpush3.bf16.msra.mxu1 %v5622_v63 }
 0x56f   : > { %v5700_v51 = vadd.f32 %v2368_v38, %v2367_v30 }
 0x571   : > { %3061 = vst [vmem:[%s5182_s9 + $0x8] sm:$0xff] %v5700_v51  ;;  %2686 = vmatmul.mubr.f32.vlgmr.msra.gmra.mrb[8].mxu0 %v5700_v51  ;;  %3609 = vmatmul.mubr.f32.vlgmr.msra.gmra.mrb[22].mxu1 %v5700_v51 }
 0x624   : > { %v2498_v5 = vpop.f32.mrb[6].mxu0  ;;  %v2569_v14 = vpop.f32.mrb[20].mxu1 }
 0x625   : > { %v4207_v6 = vadd.f32 %v4206_v54, %v2498_v5  ;;  %v2500_v3 = vpop.f32.mrb[7].mxu0  ;;  %v3575_v27 = vpop.f32.mrb[21].mxu1  ;;  %v2776_v59 = vadd.f32 %v4439_v56, %v2569_v14 }
 0x626   : > { %v4210_v26 = vadd.f32 %v4209_v46, %v2500_v3 }
 0x627   : > { %v3062_v48 = vmul.f32 -1.442695, %v4207_v6 }
 0x628   : > { %v3063_v53 = vmul.f32 -1.442695, %v4210_v26 }
 0x629   : > { %4419 = vpow2.f32 %v3062_v48 }
 0x62a   : > { %4421 = vpow2.f32 %v3063_v53 }
 0x633   : > { %v4420_v63 = vpop.eup %4419 }
 0x634   : > { %v2766_v55 = vadd.f32 1.0, %v4420_v63  ;;  %v4422_v42 = vpop.eup %4421 }
 0x635   : > { %v2773_v40 = vadd.f32 1.0, %v4422_v42 }
 0x636   : > { %4423 = vrcp.f32 %v2766_v55 }
 0x637   : > { %4425 = vrcp.f32 %v2773_v40 }
 0x640   : > { %v4424_v32 = vpop.eup %4423 }
 0x641   : > { %v2777_v60 = vmul.f32 %v4424_v32, %v2776_v59  ;;  %v4426_v0 = vpop.eup %4425 }
 0x642   : > { %v2780_v23 = vsub.f32 1.0, %v4426_v0  ;;  %v2782_v61 = vmul.f32 %v4426_v0, %v5664_v25 }
 0x643   : > { %v2778_v24 = vadd.f32 %v2777_v60, %v2378_v1 }
 0x644   : > { %v2687_v10 = vpop.f32.mrb[8].mxu0  ;;  %v2758_v39 = vpop.f32.mrb[22].mxu1 }
 0x645   : > { %4427 = vtanh.f32 %v2778_v24  ;;  %v4213_v35 = vadd.f32 %v4212_v9, %v2687_v10  ;;  %v2689_v49 = vpop.f32.mrb[9].mxu0  ;;  %v3610_v58 = vpop.f32.mrb[23].mxu1 }
 0x646   : > { %v4216_v12 = vadd.f32 %v4215_v17, %v2689_v49 }
 0x647   : > { %v3064_v31 = vmul.f32 -1.442695, %v4213_v35 }
 0x648   : > { %v3065_v52 = vmul.f32 -1.442695, %v4216_v12 }
 0x649   : > { %4429 = vpow2.f32 %v3064_v31 }
 0x64a   : > { %4431 = vpow2.f32 %v3065_v52 }
 0x64f   : > { %v4428_v11 = vpop.eup %4427 }
 0x650   : > { %v2781_v41 = vmul.f32 %v4428_v11, %v2780_v23 }
 0x652   : > { %v2783_v2 = vadd.f32 %v2782_v61, %v2781_v41 }
 0x653   : > { %v4430_v20 = vpop.eup %4429 }
 0x654   : > { %2809 = vst [vmem:[#allocation4] sm:$0xff] %v2783_v2  ;;  %3066 = vst [vmem:[%s5180_s25 + $0x18] sm:$0xff] %v2783_v2  ;;  %v2788_v37 = vadd.f32 1.0, %v4430_v20 }
 0x655   : > { %4625 = shalt.err (!%p4622_p12)
}
 0x656   : > { %s4626_s25 = scalar_lea.hbm %s5715_s13, 512  ;;  %s4630_s6 = scalar_lea.hbm %s5892_s3, 1536 }
 0x657   : > { %p4627_p4 = scmp.ne.s32.totalorder %s5715_s13, %s4626_s25  ;;  %p4631_p1 = scmp.lt.u32.totalorder %s5715_s13, %s5892_s3 }
 0x658   : > { %p4632_p13 = scmp.lt.u32.totalorder %s4630_s6, %s4626_s25  ;;  %p4634_p10 = scmp.lt.u32.totalorder %s4626_s25, %s5715_s13 }
 0x659   : > { %p4628_p3 = pnand %p4627_p4, %p5893_p0 }
 0x65a   : > { %p4633_p2 = por %p4632_p13, %p4631_p1 }
 0x65b   : > { %p4629_p8 = pneg %p4628_p3 }
 0x65c   : > { %p4635_p5 = por %p4634_p10, %p4633_p2 }
 0x65e   : > { %p4636_p9 = pnand %p4635_p5, %p4629_p8 }
 0x660   : > { %4639 = shalt.err (!%p4636_p9)
}
 0x661   : > { %s4768_s29 = smov 128   ;;  %s4769_s28 = smov 8   ;;  %4433 = vrcp.f32 %v2788_v37  ;;  %v4432_v25 = vpop.eup %4431  ;;  %v2798_v21 = vadd.f32 %v5448_v28, %v2758_v39  ;;  %v2383_v13 = vld [vmem:[#allocation3 + $0x10] sm:$0xff] }
 0x662   : > { %s5894_s8 = scalar_lea.sflag [#allocation8], %s5148_s16  ;;  %v2795_v43 = vadd.f32 1.0, %v4432_v25  ;;  %s2840_s2 = ssub.s32 2, %s4867_s24 }
 0x663   : > { %4247 = dma.vmem_to_hbm [thread:$0]  (%p5893_p0), %s5717_s26, 512, %s5715_s13, %s5894_s8, %s4768_s29, %s4768_s29, %s4769_s28  }
 0x664   : > { %4435 = vrcp.f32 %v2795_v43  ;;  %s3078_s16 = sshll.u32 %s2840_s2, 9  ;;  %s2847_s26 = sshll.u32 %s5182_s9, 4  ;;  %s5756_s26 = int_to_ptr.vmem [resolvable:$true] %s2847_s26 }
 0x665   : > { %s5895_s25 = sld [smem:[#allocation37_spill]]  ;;  %s5896_s24 = sand.u32 1, %s4730_s18  }
 0x666   : > { %s5761_s6 = scalar_lea.sflag [#allocation19], %s5896_s24  ;;  %s4640_s12 = scalar_lea.vmem %s5756_s26, 512 }
 0x667   : > { %p4641_p0 = scmp.ne.s32.totalorder %s5756_s26, %s4640_s12  ;;  %p5897_p7 = scmp.ne.s32.totalorder %s5873_s30, 0 }
 0x668   : > { %s4770_s8 = smov [#allocation18]  }
 0x669   : > { %p4642_p6 = pnand %p4641_p0, %p5897_p7  ;;  %s4644_s2 = sshll.u32 %s4770_s8, 4  ;;  %s4645_s2 = int_to_ptr.vmem [resolvable:$false] %s4644_s2 }
 0x66a   : > { %p4647_p12 = scmp.lt.s32.totalorder %s5756_s26, %s4645_s2 }
 0x66b   : > { %v4434_v4 = vpop.eup %4433  ;;  %s5754_s27 = scalar_lea.hbm %s5895_s25, %s3078_s16  ;;  %p4643_p11 = pneg %p4642_p6 }
 0x66c   : > { %v2799_v19 = vmul.f32 %v4434_v4, %v2798_v21  ;;  %s4646_s16 = scalar_lea.vmem %s4645_s2, 1024 }
 0x66d   : > { %p4648_p4 = scmp.lt.s32.totalorder %s4646_s16, %s4640_s12 }
 0x66e   : > { %v2800_v29 = vadd.f32 %v2799_v19, %v2383_v13  ;;  %v4436_v45 = vpop.eup %4435 }
 0x66f   : > { %v2802_v18 = vsub.f32 1.0, %v4436_v45  ;;  %v2804_v8 = vmul.f32 %v4436_v45, %v5700_v51  ;;  %p4649_p3 = por %p4648_p4, %p4647_p12 }
 0x670   : > { %4437 = vtanh.f32 %v2800_v29 }
 0x671   : > { %p4650_p8 = pnand %p4649_p3, %p4643_p11 }
 0x67a   : > { %v4438_v34 = vpop.eup %4437 }
 0x67b   : > { %v2803_v36 = vmul.f32 %v4438_v34, %v2802_v18 }
 0x67d   : > { %v2805_v50 = vadd.f32 %v2804_v8, %v2803_v36 }
 0x67f   : > { %2810 = vst [vmem:[#allocation5] sm:$0xff] %v2805_v50  ;;  %2808 = vst [vmem:[%s5182_s9] sm:$0xff] %v2805_v50 }
 0x680   : > { %4653 = shalt.err (!%p4650_p8)
}
 0x681   : > { %s4654_s9 = scalar_lea.hbm %s5754_s27, 512  ;;  %s4658_s24 = scalar_lea.hbm %s5895_s25, 1536 }
 0x682   : > { %p4655_p1 = scmp.ne.s32.totalorder %s5754_s27, %s4654_s9  ;;  %p4659_p10 = scmp.lt.u32.totalorder %s5754_s27, %s5895_s25 }
 0x683   : > { %p4660_p5 = scmp.lt.u32.totalorder %s4658_s24, %s4654_s9  ;;  %p4662_p0 = scmp.lt.u32.totalorder %s4654_s9, %s5754_s27 }
 0x684   : > { %p4656_p13 = pnand %p4655_p1, %p5897_p7 }
 0x685   : > { %p4661_p9 = por %p4660_p5, %p4659_p10 }
 0x686   : > { %p4657_p2 = pneg %p4656_p13 }
 0x687   : > { %p4663_p6 = por %p4662_p0, %p4661_p9 }
 0x689   : > { %p4664_p11 = pnand %p4663_p6, %p4657_p2 }
 0x68b   : > { %4667 = shalt.err (!%p4664_p11)
}
 0x68c   : > { %4248 = dma.vmem_to_hbm [thread:$0]  (%p5897_p7), %s5756_s26, 512, %s5754_s27, %s5761_s6, %s4768_s29, %s4768_s29, %s4769_s28  }
 0x68d PF: > { %p4287_p12 = scmp.ge.s32.totalorder %s4750_s23, 2  ;;  %s2862_s12 = sand.u32 1, %s4738_s20  }
 0x68e   : > { %p5898_p4 = scmp.ne.s32.totalorder %s5866_s11, 0  ;;  %s2863_s16 = scalar_lea.sflag [#allocation8], %s2862_s12 }
 0x690   : > { %p4272_p3 = pnand %p4287_p12, %p5898_p4 }
 0x692   : > { %4717 = dma.done.wait (!%p4272_p3), %s2863_s16, 512  }
 0x693   : > { %4719 = vsyncadd (!%p4272_p3), %s2863_s16, 4294966784  ;;  %s2871_s30 = sand.u32 1, %s4726_s17   ;;  %p5899_p8 = scmp.ne.s32.totalorder %s5868_s14, 0 }
 0x694   : > { %s2872_s9 = scalar_lea.sflag [#allocation19], %s2871_s30 }
 0x695   : > { %p4275_p1 = pnand %p4287_p12, %p5899_p8 }
 0x697   : > { %4721 = dma.done.wait (!%p4275_p1), %s2872_s9, 512  }
 0x698   : > { %4723 = vsyncadd (!%p4275_p1), %s2872_s9, 4294966784  ;;  %p33_p7 = scmp.ge.s32.totalorder %s5074_s10, 5   ;;  %s5900_s17 = smov %s4730_s18 }
 0x699   : > { %s5901_s18 = smov %s4734_s19  ;;  %s5902_s19 = smov %s5091_s4 }
 0x69a   : > { %s5903_s20 = smov %s4742_s21  ;;  %s5904_s21 = smov %s4746_s22 }
 0x69b   : > { %s5905_s22 = smov %s5084_s0  ;;  %s5906_s23 = smov %s5074_s10 }
 0x69c   :  { %35 = sbr.rel (!%p33_p7) target bundleno = 24 (0x18), region = 173 }
 0x6a3   :  { %2877 = vsyncpa [#allocation7], 1 }
 0x6a4   :  { %2879 = vsyncpa [#allocation7 + $0x1], 1 }
 0x6a5   :  { %2880 = vsyncpa [#allocation10], 1 }
 0x6a6   :  { %2882 = vsyncpa [#allocation10 + $0x1], 1 }
 0x6a7   :  { %2883 = vsyncpa [#allocation13], 1 }
 0x6a8   :  { %2884 = vsyncpa [#allocation16], 1 }
 0x6a9   :  { %2885 = vsyncpa [#allocation8], 1 }
 0x6aa   :  { %2887 = vsyncpa [#allocation8 + $0x1], 1 }
 0x6ab   :  { %2888 = vsyncpa [#allocation19], 1 }
 0x6ac   :  { %2890 = vsyncpa [#allocation19 + $0x1], 1 }

</bundles_post_ra>
